<compile_context>
chip_gen: v6e
topology: v6e:2x2x1
jax: 0.10.0
libtpu: 0.0.40
codegen_flags: <defaults>
</compile_context>

<pallas_src>
import functools

import jax
import jax.numpy as jnp
from jax import lax
from jax.experimental import pallas as pl
from jax.experimental.pallas import tpu as pltpu


def _round_up(x, m):
    return ((x + m - 1) // m) * m


def _cdiv(a, b):
    return (a + b - 1) // b


def _vmem_limit_bytes():
    """Per-generation scoped-VMEM budget (v5e/v6e: 128 MiB physical, v7x: 64 MiB)."""
    try:
        cap = pltpu.get_tpu_info().vmem_capacity_bytes
    except Exception:                      # unknown backend -> assume the small (v7x) VMEM
        cap = 64 * 1024 * 1024
    return int(cap * 0.78)                 # ~100 MiB on v5e/v6e, ~50 MiB on v7x


def _pick_tm(m_full, cin_p, cp, taps, max_off, budget):
    """Pass-1 row-tile size from the VMEM budget.

    Per-grid-step VMEM (bytes):
      weight (resident but allocated double-buffered):   2 * taps*cin_p*cp * 2
      xc + xn input blocks (2 specs, 2 buffers, bf16):   8 * tm * cin_p
      in-kernel concat temporary (2*tm rows, bf16):      4 * tm * cin_p
      output block (2 buffers, f32):                     8 * tm * cp
      f32 accumulator + matmul temporaries:             ~8 * tm * cp
    """
    w_bytes = 2 * taps * cin_p * cp * 2
    per_row = 12 * cin_p + 16 * cp
    avail = max(budget - w_bytes, 2 << 20)
    tm = avail // per_row
    tm = min(tm, 1024)                                         # diminishing returns past ~1K rows
    tm = min(tm, max(_round_up(_cdiv(m_full, 2), 8), 128))     # keep >=2 row tiles (v7x megacore)
    tm = max(tm, max_off, 256)                                 # halo reach + MXU-friendly M dim
    return _round_up(tm, 128)


# --------------------- pass 1: tap-accumulated conv + BN partial stats ---------------------
def _conv_stats_kernel(xc_ref, xn_ref, w_ref, mask_ref, o_ref, s1_ref, s2_ref, *, offsets):
    # xc_ref:   (TM, Cin_p)        bf16  rows [m*TM, (m+1)*TM) of the flattened padded input
    # xn_ref:   (TM, Cin_p)        bf16  rows [(m+1)*TM, (m+2)*TM)  (halo for the row shifts)
    # w_ref:    (taps, Cin_p, Cp)  bf16  full weight, constant block index -> VMEM-resident
    # mask_ref: (TM, 1)            f32   1.0 on valid (non-pad) output rows
    # o_ref:    (TM, Cp)           f32   conv output tile
    # s1_ref:   (1, 1, Cp) f32, s2_ref: (1, 1, Cp) f32  per-tile BN partial sums
    tm = xc_ref.shape[0]
    x2 = jnp.concatenate([xc_ref[...], xn_ref[...]], axis=0)        # (2*TM, Cin_p)

    acc = None
    for t, off in enumerate(offsets):                               # static unroll over KH*KW taps
        part = jnp.dot(x2[off:off + tm, :], w_ref[t],
                       preferred_element_type=jnp.float32)
        acc = part if acc is None else acc + part

    o_ref[...] = acc                                                # single lane-dense store
    masked = acc * mask_ref[...]                                    # drop pad-position garbage rows
    s1_ref[0] = jnp.sum(masked, axis=0, keepdims=True)
    s2_ref[0] = jnp.sum(masked * acc, axis=0, keepdims=True)


# --------------------------- pass 2: BN apply + LeakyReLU(0.1) ---------------------------
def _bn_lrelu_kernel(x_ref, scale_ref, shift_ref, o_ref):
    y = x_ref[...] * scale_ref[...] + shift_ref[...]
    o_ref[...] = jnp.where(y > 0, y, 0.1 * y)


def darknet19_conv2d(x_nchw, w_oihw, gamma, beta, *, padding=1, eps=1e-6):
    """Conv2d(bias=False, stride=1, padding) + BatchNorm2d(batch stats, eps) + LeakyReLU(0.1)."""
    # TODO(synk): stride > 1, Cout tiling for weights that exceed VMEM, and NHWC-resident
    # chaining between layers so the NCHW<->NHWC transposes only happen at network boundaries.
    N, Cin, H, W = x_nchw.shape
    Cout, _, KH, KW = w_oihw.shape
    Hp, Wp = H + 2 * padding, W + 2 * padding
    Ho, Wo = Hp - KH + 1, Wp - KW + 1
    taps = KH * KW

    cin_p = _round_up(Cin, 8)            # sublane-friendly contraction dim (zero padded)
    cp = _round_up(Cout, 128)            # lane-dense output channels

    # ---- layout glue: NHWC, spatial pad, flatten rows.  No im2col materialization. ----
    x_nhwc = jnp.transpose(x_nchw, (0, 2, 3, 1)).astype(jnp.float32)
    x_pad = jnp.pad(x_nhwc, ((0, 0), (padding, padding), (padding, padding), (0, cin_p - Cin)))
    x_flat = x_pad.reshape(N * Hp * Wp, cin_p).astype(jnp.bfloat16)

    m_full = N * Hp * Wp                         # output rows computed over *padded* positions
    max_off = (KH - 1) * Wp + (KW - 1)           # largest in-kernel row shift (halo reach)

    budget = _vmem_limit_bytes()
    tile_budget = int(budget * 0.85)
    tm = _pick_tm(m_full, cin_p, cp, taps, max_off, tile_budget)
    nm = _cdiv(m_full, tm)
    mp = nm * tm

    # X gets nm+1 row blocks so tile m can also read block m+1 (halo for the shifted taps).
    x_flat = jnp.pad(x_flat, ((0, (nm + 1) * tm - m_full), (0, 0)))

    # Weights -> (taps, Cin_p, Cp) bf16, fully VMEM-resident across all row tiles.
    w_hwio = jnp.transpose(w_oihw, (2, 3, 1, 0)).astype(jnp.float32)         # (KH, KW, Cin, Cout)
    w_hwio = jnp.pad(w_hwio, ((0, 0), (0, 0), (0, cin_p - Cin), (0, cp - Cout)))
    w3 = w_hwio.reshape(taps, cin_p, cp).astype(jnp.bfloat16)

    # Validity mask over flattened padded positions: pad rows/cols wrap around and produce
    # garbage conv rows; they are discarded at the end and must not enter the BN statistics.
    hh = jnp.arange(Hp) < Ho
    ww = jnp.arange(Wp) < Wo
    valid = (hh[:, None] & ww[None, :]).astype(jnp.float32)                  # (Hp, Wp)
    mask = jnp.broadcast_to(valid[None], (N, Hp, Wp)).reshape(m_full, 1)
    mask = jnp.pad(mask, ((0, mp - m_full), (0, 0)))

    offsets = tuple(kh * Wp + kw for kh in range(KH) for kw in range(KW))

    gamma_p = jnp.pad(gamma.astype(jnp.float32), (0, cp - Cout))
    beta_p = jnp.pad(beta.astype(jnp.float32), (0, cp - Cout))

    conv_out, s1, s2 = pl.pallas_call(
        functools.partial(_conv_stats_kernel, offsets=offsets),
        out_shape=(jax.ShapeDtypeStruct((mp, cp), jnp.float32),
                   jax.ShapeDtypeStruct((nm, 1, cp), jnp.float32),
                   jax.ShapeDtypeStruct((nm, 1, cp), jnp.float32)),
        grid_spec=pltpu.PrefetchScalarGridSpec(
            num_scalar_prefetch=0,
            grid=(nm,),
            in_specs=[pl.BlockSpec((tm, cin_p), lambda m: (m, 0)),          # current rows
                      pl.BlockSpec((tm, cin_p), lambda m: (m + 1, 0)),      # halo rows
                      pl.BlockSpec((taps, cin_p, cp), lambda m: (0, 0, 0)),  # resident weight
                      pl.BlockSpec((tm, 1), lambda m: (m, 0))],
            out_specs=[pl.BlockSpec((tm, cp), lambda m: (m, 0)),
                       pl.BlockSpec((1, 1, cp), lambda m: (m, 0, 0)),
                       pl.BlockSpec((1, 1, cp), lambda m: (m, 0, 0))]),
        compiler_params=pltpu.CompilerParams(
            dimension_semantics=("parallel",),         # row tiles shard across v7x's 2 TCs
            vmem_limit_bytes=budget),
    )(x_flat, x_flat, w3, mask)

    # ---- tiny glue: global batch stats (biased var, training mode) -> scale/shift ----
    # NOTE: single-pass E[x^2]-E[x]^2 in f32; fine at these magnitudes (see review concern).
    m_valid = float(N * Ho * Wo)
    mean = jnp.sum(s1, axis=(0, 1)) / m_valid
    var = jnp.maximum(jnp.sum(s2, axis=(0, 1)) / m_valid - mean * mean, 0.0)
    inv = lax.rsqrt(var + eps)
    scale = (gamma_p * inv)[None, :]                     # (1, Cp)
    shift = (beta_p - mean * gamma_p * inv)[None, :]     # (1, Cp)

    # ---- pass 2: y = conv*scale + shift, LeakyReLU.  Large row tiles, in-place write. ----
    k2 = 1
    for cand in (8, 4, 2):                               # enlarge tiles while keeping >=2 steps
        if nm % cand == 0 and nm // cand >= 2 and cand * tm * cp * 16 <= tile_budget:
            k2 = cand
            break
    tm2 = tm * k2

    out2d = pl.pallas_call(
        _bn_lrelu_kernel,
        out_shape=jax.ShapeDtypeStruct((mp, cp), jnp.float32),
        grid_spec=pltpu.PrefetchScalarGridSpec(
            num_scalar_prefetch=0,
            grid=(mp // tm2,),
            in_specs=[pl.BlockSpec((tm2, cp), lambda m: (m, 0)),
                      pl.BlockSpec((1, cp), lambda m: (0, 0)),
                      pl.BlockSpec((1, cp), lambda m: (0, 0))],
            out_specs=pl.BlockSpec((tm2, cp), lambda m: (m, 0))),
        compiler_params=pltpu.CompilerParams(
            dimension_semantics=("parallel",),
            vmem_limit_bytes=budget),
        input_output_aliases={0: 0},                     # overwrite conv_out in place in HBM
    )(conv_out, scale, shift)

    out = out2d[:m_full].reshape(N, Hp, Wp, cp)[:, :Ho, :Wo, :Cout]
    return jnp.transpose(out, (0, 3, 1, 2))              # back to NCHW at the module boundary


def _reference(x_nchw, w_oihw, gamma, beta, *, padding=1):
    """Pure-JAX reference (f32 conv + training-mode BN + leaky relu)."""
    x_nhwc = jnp.transpose(x_nchw, (0, 2, 3, 1)).astype(jnp.float32)
    w_hwio = jnp.transpose(w_oihw, (2, 3, 1, 0)).astype(jnp.float32)
    y = lax.conv_general_dilated(
        x_nhwc, w_hwio, window_strides=(1, 1),
        padding=[(padding, padding), (padding, padding)],
        dimension_numbers=("NHWC", "HWIO", "NHWC"))
    mean = jnp.mean(y, axis=(0, 1, 2), keepdims=True)
    var = jnp.mean((y - mean) ** 2, axis=(0, 1, 2), keepdims=True)
    y = (y - mean) * lax.rsqrt(var + 1e-6) * gamma + beta
    y = jnp.where(y > 0, y, 0.1 * y)
    return jnp.transpose(y, (0, 3, 1, 2))


if __name__ == "__main__":
    key = jax.random.PRNGKey(0)
    kx, kw_key = jax.random.split(key)

    # Small shapes consistent with the module: NCHW input, 3x3 conv, pad=1.
    N, Cin, H, W = 2, 4, 16, 16
    Cout, KH, KW = 8, 3, 3

    x = jax.random.normal(kx, (N, Cin, H, W), dtype=jnp.float32)

    fan_in = Cin * KH * KW
    bound = 1.0 / (fan_in ** 0.5)
    w = jax.random.uniform(kw_key, (Cout, Cin, KH, KW), dtype=jnp.float32,
                           minval=-bound, maxval=bound)
    gamma = jnp.ones((Cout,), jnp.float32)   # BN weight default
    beta = jnp.zeros((Cout,), jnp.float32)   # BN bias default

    out = darknet19_conv2d(x, w, gamma, beta, padding=1)
    out = jax.block_until_ready(out)

    ref = _reference(x, w, gamma, beta, padding=1)
    assert out.shape == (N, Cout, H, W), out.shape
    max_err = float(jnp.max(jnp.abs(out - ref)))
    assert jnp.allclose(out, ref, atol=2e-2, rtol=2e-2), max_err

    print("KERNEL_OK")
</pallas_src>

<mosaic_0001>
module attributes {stable_mosaic.version = 11 : i64} {
  func.func @_conv_stats_kernel(%arg0: i32, %arg1: memref<384x8xbf16, #tpu.memory_space<vmem>>, %arg2: memref<384x8xbf16, #tpu.memory_space<vmem>>, %arg3: memref<9x8x128xbf16, #tpu.memory_space<vmem>>, %arg4: memref<384x1xf32, #tpu.memory_space<vmem>>, %arg5: memref<384x128xf32, #tpu.memory_space<vmem>>, %arg6: memref<1x1x128xf32, #tpu.memory_space<vmem>>, %arg7: memref<1x1x128xf32, #tpu.memory_space<vmem>>) attributes {dimension_semantics = [#tpu.dimension_semantics<parallel>], iteration_bounds = array<i64: 2>, scalar_prefetch = 0 : i64, scratch_operands = 0 : i64, tpu.core_type = #tpu.core_type<tc>, window_params = [{transform_indices = @transform_0, window_bounds = array<i64: 384, 8>}, {transform_indices = @transform_1, window_bounds = array<i64: 384, 8>}, {pipeline_mode = #tpu.pipeline_mode<synchronous>, transform_indices = @transform_2, window_bounds = array<i64: 9, 8, 128>}, {transform_indices = @transform_3, window_bounds = array<i64: 384, 1>}, {transform_indices = @transform_4, window_bounds = array<i64: 384, 128>}, {transform_indices = @transform_5, window_bounds = array<i64: 1, 1, 128>}, {transform_indices = @transform_6, window_bounds = array<i64: 1, 1, 128>}]} {
    %c0 = arith.constant 0 : index
    %c0_0 = arith.constant 0 : index
    %0 = vector.load %arg1[%c0, %c0_0] : memref<384x8xbf16, #tpu.memory_space<vmem>>, vector<384x8xbf16>
    %c0_1 = arith.constant 0 : index
    %c0_2 = arith.constant 0 : index
    %1 = vector.load %arg2[%c0_1, %c0_2] : memref<384x8xbf16, #tpu.memory_space<vmem>>, vector<384x8xbf16>
    %2 = tpu.concatenate %0, %1 in 0 : vector<384x8xbf16>, vector<384x8xbf16> -> vector<768x8xbf16>
    %3 = vector.extract_strided_slice %2 {offsets = [0, 0], sizes = [384, 8], strides = [1, 1]} : vector<768x8xbf16> to vector<384x8xbf16>
    %c0_3 = arith.constant 0 : index
    %c0_4 = arith.constant 0 : index
    %c0_5 = arith.constant 0 : index
    %4 = vector.load %arg3[%c0_3, %c0_4, %c0_5] : memref<9x8x128xbf16, #tpu.memory_space<vmem>>, vector<1x8x128xbf16>
    %5 = vector.shape_cast %4 : vector<1x8x128xbf16> to vector<8x128xbf16>
    %cst = arith.constant dense<0.000000e+00> : vector<384x128xf32>
    %6 = tpu.matmul %3, %5, %cst {dimension_numbers = #tpu.dot_dimension_numbers<[1], [0], [0], [1], [0, 0, 1, 1], [], []>} : vector<384x8xbf16>, vector<8x128xbf16>, vector<384x128xf32> -> vector<384x128xf32>
    %7 = vector.extract_strided_slice %2 {offsets = [1, 0], sizes = [384, 8], strides = [1, 1]} : vector<768x8xbf16> to vector<384x8xbf16>
    %c1 = arith.constant 1 : index
    %c0_6 = arith.constant 0 : index
    %c0_7 = arith.constant 0 : index
    %8 = vector.load %arg3[%c1, %c0_6, %c0_7] : memref<9x8x128xbf16, #tpu.memory_space<vmem>>, vector<1x8x128xbf16>
    %9 = vector.shape_cast %8 : vector<1x8x128xbf16> to vector<8x128xbf16>
    %cst_8 = arith.constant dense<0.000000e+00> : vector<384x128xf32>
    %10 = tpu.matmul %7, %9, %cst_8 {dimension_numbers = #tpu.dot_dimension_numbers<[1], [0], [0], [1], [0, 0, 1, 1], [], []>} : vector<384x8xbf16>, vector<8x128xbf16>, vector<384x128xf32> -> vector<384x128xf32>
    %11 = arith.addf %6, %10 : vector<384x128xf32>
    %12 = vector.extract_strided_slice %2 {offsets = [2, 0], sizes = [384, 8], strides = [1, 1]} : vector<768x8xbf16> to vector<384x8xbf16>
    %c2 = arith.constant 2 : index
    %c0_9 = arith.constant 0 : index
    %c0_10 = arith.constant 0 : index
    %13 = vector.load %arg3[%c2, %c0_9, %c0_10] : memref<9x8x128xbf16, #tpu.memory_space<vmem>>, vector<1x8x128xbf16>
    %14 = vector.shape_cast %13 : vector<1x8x128xbf16> to vector<8x128xbf16>
    %cst_11 = arith.constant dense<0.000000e+00> : vector<384x128xf32>
    %15 = tpu.matmul %12, %14, %cst_11 {dimension_numbers = #tpu.dot_dimension_numbers<[1], [0], [0], [1], [0, 0, 1, 1], [], []>} : vector<384x8xbf16>, vector<8x128xbf16>, vector<384x128xf32> -> vector<384x128xf32>
    %16 = arith.addf %11, %15 : vector<384x128xf32>
    %17 = vector.extract_strided_slice %2 {offsets = [18, 0], sizes = [384, 8], strides = [1, 1]} : vector<768x8xbf16> to vector<384x8xbf16>
    %c3 = arith.constant 3 : index
    %c0_12 = arith.constant 0 : index
    %c0_13 = arith.constant 0 : index
    %18 = vector.load %arg3[%c3, %c0_12, %c0_13] : memref<9x8x128xbf16, #tpu.memory_space<vmem>>, vector<1x8x128xbf16>
    %19 = vector.shape_cast %18 : vector<1x8x128xbf16> to vector<8x128xbf16>
    %cst_14 = arith.constant dense<0.000000e+00> : vector<384x128xf32>
    %20 = tpu.matmul %17, %19, %cst_14 {dimension_numbers = #tpu.dot_dimension_numbers<[1], [0], [0], [1], [0, 0, 1, 1], [], []>} : vector<384x8xbf16>, vector<8x128xbf16>, vector<384x128xf32> -> vector<384x128xf32>
    %21 = arith.addf %16, %20 : vector<384x128xf32>
    %22 = vector.extract_strided_slice %2 {offsets = [19, 0], sizes = [384, 8], strides = [1, 1]} : vector<768x8xbf16> to vector<384x8xbf16>
    %c4 = arith.constant 4 : index
    %c0_15 = arith.constant 0 : index
    %c0_16 = arith.constant 0 : index
    %23 = vector.load %arg3[%c4, %c0_15, %c0_16] : memref<9x8x128xbf16, #tpu.memory_space<vmem>>, vector<1x8x128xbf16>
    %24 = vector.shape_cast %23 : vector<1x8x128xbf16> to vector<8x128xbf16>
    %cst_17 = arith.constant dense<0.000000e+00> : vector<384x128xf32>
    %25 = tpu.matmul %22, %24, %cst_17 {dimension_numbers = #tpu.dot_dimension_numbers<[1], [0], [0], [1], [0, 0, 1, 1], [], []>} : vector<384x8xbf16>, vector<8x128xbf16>, vector<384x128xf32> -> vector<384x128xf32>
    %26 = arith.addf %21, %25 : vector<384x128xf32>
    %27 = vector.extract_strided_slice %2 {offsets = [20, 0], sizes = [384, 8], strides = [1, 1]} : vector<768x8xbf16> to vector<384x8xbf16>
    %c5 = arith.constant 5 : index
    %c0_18 = arith.constant 0 : index
    %c0_19 = arith.constant 0 : index
    %28 = vector.load %arg3[%c5, %c0_18, %c0_19] : memref<9x8x128xbf16, #tpu.memory_space<vmem>>, vector<1x8x128xbf16>
    %29 = vector.shape_cast %28 : vector<1x8x128xbf16> to vector<8x128xbf16>
    %cst_20 = arith.constant dense<0.000000e+00> : vector<384x128xf32>
    %30 = tpu.matmul %27, %29, %cst_20 {dimension_numbers = #tpu.dot_dimension_numbers<[1], [0], [0], [1], [0, 0, 1, 1], [], []>} : vector<384x8xbf16>, vector<8x128xbf16>, vector<384x128xf32> -> vector<384x128xf32>
    %31 = arith.addf %26, %30 : vector<384x128xf32>
    %32 = vector.extract_strided_slice %2 {offsets = [36, 0], sizes = [384, 8], strides = [1, 1]} : vector<768x8xbf16> to vector<384x8xbf16>
    %c6 = arith.constant 6 : index
    %c0_21 = arith.constant 0 : index
    %c0_22 = arith.constant 0 : index
    %33 = vector.load %arg3[%c6, %c0_21, %c0_22] : memref<9x8x128xbf16, #tpu.memory_space<vmem>>, vector<1x8x128xbf16>
    %34 = vector.shape_cast %33 : vector<1x8x128xbf16> to vector<8x128xbf16>
    %cst_23 = arith.constant dense<0.000000e+00> : vector<384x128xf32>
    %35 = tpu.matmul %32, %34, %cst_23 {dimension_numbers = #tpu.dot_dimension_numbers<[1], [0], [0], [1], [0, 0, 1, 1], [], []>} : vector<384x8xbf16>, vector<8x128xbf16>, vector<384x128xf32> -> vector<384x128xf32>
    %36 = arith.addf %31, %35 : vector<384x128xf32>
    %37 = vector.extract_strided_slice %2 {offsets = [37, 0], sizes = [384, 8], strides = [1, 1]} : vector<768x8xbf16> to vector<384x8xbf16>
    %c7 = arith.constant 7 : index
    %c0_24 = arith.constant 0 : index
    %c0_25 = arith.constant 0 : index
    %38 = vector.load %arg3[%c7, %c0_24, %c0_25] : memref<9x8x128xbf16, #tpu.memory_space<vmem>>, vector<1x8x128xbf16>
    %39 = vector.shape_cast %38 : vector<1x8x128xbf16> to vector<8x128xbf16>
    %cst_26 = arith.constant dense<0.000000e+00> : vector<384x128xf32>
    %40 = tpu.matmul %37, %39, %cst_26 {dimension_numbers = #tpu.dot_dimension_numbers<[1], [0], [0], [1], [0, 0, 1, 1], [], []>} : vector<384x8xbf16>, vector<8x128xbf16>, vector<384x128xf32> -> vector<384x128xf32>
    %41 = arith.addf %36, %40 : vector<384x128xf32>
    %42 = vector.extract_strided_slice %2 {offsets = [38, 0], sizes = [384, 8], strides = [1, 1]} : vector<768x8xbf16> to vector<384x8xbf16>
    %c8 = arith.constant 8 : index
    %c0_27 = arith.constant 0 : index
    %c0_28 = arith.constant 0 : index
    %43 = vector.load %arg3[%c8, %c0_27, %c0_28] : memref<9x8x128xbf16, #tpu.memory_space<vmem>>, vector<1x8x128xbf16>
    %44 = vector.shape_cast %43 : vector<1x8x128xbf16> to vector<8x128xbf16>
    %cst_29 = arith.constant dense<0.000000e+00> : vector<384x128xf32>
    %45 = tpu.matmul %42, %44, %cst_29 {dimension_numbers = #tpu.dot_dimension_numbers<[1], [0], [0], [1], [0, 0, 1, 1], [], []>} : vector<384x8xbf16>, vector<8x128xbf16>, vector<384x128xf32> -> vector<384x128xf32>
    %46 = arith.addf %41, %45 : vector<384x128xf32>
    %c0_30 = arith.constant 0 : index
    %c0_31 = arith.constant 0 : index
    %47 = vector.load %arg5[%c0_30, %c0_31] : memref<384x128xf32, #tpu.memory_space<vmem>>, vector<384x128xf32>
    tpu.vector_store %arg5[%c0_30, %c0_31], %46 {strides = array<i32>} : memref<384x128xf32, #tpu.memory_space<vmem>>, vector<384x128xf32>,
    %c0_32 = arith.constant 0 : index
    %c0_33 = arith.constant 0 : index
    %48 = vector.load %arg4[%c0_32, %c0_33] : memref<384x1xf32, #tpu.memory_space<vmem>>, vector<384x1xf32>
    %49 = vector.broadcast %48 : vector<384x1xf32> to vector<384x128xf32>
    %50 = arith.mulf %46, %49 : vector<384x128xf32>
    %cst_34 = arith.constant dense<0.000000e+00> : vector<128xf32>
    %51 = vector.multi_reduction <add>, %50, %cst_34 [0] : vector<384x128xf32> to vector<128xf32>
    %52 = vector.shape_cast %51 : vector<128xf32> to vector<1x128xf32>
    %c0_35 = arith.constant 0 : index
    %c0_36 = arith.constant 0 : index
    %c0_37 = arith.constant 0 : index
    %53 = vector.load %arg6[%c0_35, %c0_36, %c0_37] : memref<1x1x128xf32, #tpu.memory_space<vmem>>, vector<1x1x128xf32>
    %54 = vector.shape_cast %53 : vector<1x1x128xf32> to vector<1x128xf32>
    %55 = vector.shape_cast %52 : vector<1x128xf32> to vector<1x1x128xf32>
    tpu.vector_store %arg6[%c0_35, %c0_36, %c0_37], %55 {strides = array<i32>} : memref<1x1x128xf32, #tpu.memory_space<vmem>>, vector<1x1x128xf32>,
    %56 = arith.mulf %50, %46 : vector<384x128xf32>
    %cst_38 = arith.constant dense<0.000000e+00> : vector<128xf32>
    %57 = vector.multi_reduction <add>, %56, %cst_38 [0] : vector<384x128xf32> to vector<128xf32>
    %58 = vector.shape_cast %57 : vector<128xf32> to vector<1x128xf32>
    %c0_39 = arith.constant 0 : index
    %c0_40 = arith.constant 0 : index
    %c0_41 = arith.constant 0 : index
    %59 = vector.load %arg7[%c0_39, %c0_40, %c0_41] : memref<1x1x128xf32, #tpu.memory_space<vmem>>, vector<1x1x128xf32>
    %60 = vector.shape_cast %59 : vector<1x1x128xf32> to vector<1x128xf32>
    %61 = vector.shape_cast %58 : vector<1x128xf32> to vector<1x1x128xf32>
    tpu.vector_store %arg7[%c0_39, %c0_40, %c0_41], %61 {strides = array<i32>} : memref<1x1x128xf32, #tpu.memory_space<vmem>>, vector<1x1x128xf32>,
    return
  }
  func.func @transform_0(%arg0: i32) -> (i32, i32) {
    %c0_i32 = arith.constant 0 : i32
    %c0_i32_0 = arith.constant 0 : i32
    return %arg0, %c0_i32 : i32, i32
  }
  func.func @transform_1(%arg0: i32) -> (i32, i32) {
    %c1_i32 = arith.constant 1 : i32
    %0 = arith.addi %arg0, %c1_i32 : i32
    %c0_i32 = arith.constant 0 : i32
    %c0_i32_0 = arith.constant 0 : i32
    return %0, %c0_i32 : i32, i32
  }
  func.func @transform_2(%arg0: i32) -> (i32, i32, i32) {
    %c0_i32 = arith.constant 0 : i32
    %c0_i32_0 = arith.constant 0 : i32
    %c0_i32_1 = arith.constant 0 : i32
    %c0_i32_2 = arith.constant 0 : i32
    return %c0_i32, %c0_i32_0, %c0_i32_1 : i32, i32, i32
  }
  func.func @transform_3(%arg0: i32) -> (i32, i32) {
    %c0_i32 = arith.constant 0 : i32
    %c0_i32_0 = arith.constant 0 : i32
    return %arg0, %c0_i32 : i32, i32
  }
  func.func @transform_4(%arg0: i32) -> (i32, i32) {
    %c0_i32 = arith.constant 0 : i32
    %c0_i32_0 = arith.constant 0 : i32
    return %arg0, %c0_i32 : i32, i32
  }
  func.func @transform_5(%arg0: i32) -> (i32, i32, i32) {
    %c0_i32 = arith.constant 0 : i32
    %c0_i32_0 = arith.constant 0 : i32
    %c0_i32_1 = arith.constant 0 : i32
    return %arg0, %c0_i32, %c0_i32_0 : i32, i32, i32
  }
  func.func @transform_6(%arg0: i32) -> (i32, i32, i32) {
    %c0_i32 = arith.constant 0 : i32
    %c0_i32_0 = arith.constant 0 : i32
    %c0_i32_1 = arith.constant 0 : i32
    return %arg0, %c0_i32, %c0_i32_0 : i32, i32, i32
  }
}

</mosaic_0001>

<bundles_post_ra>
// kernel: tpu_custom_call.1
= control target key start
LH: loop header
LB: loop body
LE: loop exit
PB: predicated region body
PF: predicated region fallthrough
CT: control target
= control target key end

     0   :  { %12 = vsyncpa [#allocation3], 0  ;;  %s7996_s0 = inlined_call_operand.vmem [shape: bf16[1152,8], index: 0, kind: input, shape index: {}]   ;;  %s7997_s1 = inlined_call_operand.vmem [shape: bf16[1152,8], index: 1, kind: input, shape index: {}]   ;;  %s7998_s2 = inlined_call_operand.vmem [shape: bf16[9,8,128], index: 2, kind: input, shape index: {}]   ;;  %s7999_s3 = inlined_call_operand.vmem [shape: f32[768,1], index: 3, kind: input, shape index: {}]   ;;  %s8000_s4 = inlined_call_operand.hbm [shape: f32[768,128], index: 4, kind: output, shape index: {0}]   ;;  %s8001_s5 = inlined_call_operand.hbm [shape: f32[2,1,128], index: 5, kind: output, shape index: {1}]   ;;  %s8002_s6 = inlined_call_operand.hbm [shape: f32[2,1,128], index: 6, kind: output, shape index: {2}]  }
   0x1   :  { %14 = vsyncpa [#allocation3 + $0x1], 0 }
   0x2   :  { %15 = vsyncpa [#allocation5], 0 }
   0x3   :  { %17 = vsyncpa [#allocation5 + $0x1], 0  ;;  %s5910_s21 = smov 0   ;;  %s5912_s22 = smov 0  }
   0x4   :  { %s5914_s23 = smov 0   ;;  %s5916_s24 = smov 0  }
   0x5 LB: > { %s5931_s25 = sadd.s32 4294967295, %s5867_s24   ;;  %s8096_s26 = sadd.s32 4294967294, %s5867_s24   ;;  %s5867_s24 = sphi %s5916_s24, %s8353_s24   ;;  %s5863_s23 = sphi %s5914_s23, %s8352_s23   ;;  %s5859_s22 = sphi %s5912_s22, %s8351_s22   ;;  %s5855_s21 = sphi %s5910_s21, %s8350_s21  }
   0x6   : > { %s5935_s27 = sadd.s32 1, %s5867_s24   ;;  %s131_s28 = sadd.s32 1, %s5863_s23 }
   0x7   : > { %s128_s29 = ssub.s32 %s5867_s24, %s5935_s27  ;;  %p141_p0 = scmp.ne.s32.totalorder %s5863_s23, %s5859_s22 }
   0x8   : > { %p129_p1 = scmp.eq.s32.totalorder %s128_s29, 0  ;;  %p142_p2 = scmp.eq.s32.totalorder %s5931_s25, 1 }
   0x9   : > { %p147_p3 = scmp.ne.s32.totalorder %s5859_s22, %s5855_s21  ;;  %p148_p4 = scmp.eq.s32.totalorder %s8096_s26, 1 }
   0xa   : > { %s5948_s30 = scalar_select %p129_p1, %s5863_s23, %s131_s28  }
   0xb   : > { %p5950_p5 = por %p142_p2, %p141_p0  ;;  %p5954_p6 = por %p148_p4, %p147_p3 }
   0xc   : > { %p4696_p7 = scmp.ge.s32.totalorder %s5867_s24, 1  ;;  %p250_p8 = scmp.lt.s32.totalorder %s5867_s24, 3 }
   0xe   : > { %p251_p9 = pnand %p4696_p7, %p250_p8 }
  0x10   : > { %254 = sbr.rel (%p251_p9) target bundleno = 732 (0x2dc), region = 36 }
  0x15   : > { %v4727_v0 = vld [vmem:[%s7998_s2 + $0x4] sm:$0xf]  ;;  %vm783_vm0 = vcmask 1043456   ;;  %s5964_s11 = smul.u32 48, %s5931_s25  ;;  %v510_v2 = vld [vmem:[%s7998_s2] sm:$0xf] }
  0x16   : > { %5635 = vmatprep.subr.msk.bf16.mxu1 %vm783_vm0, %v4727_v0  ;;  %5634 = vmatprep.subr.msk.bf16.mxu0 %vm783_vm0, %v4727_v0  ;;  %v785_v1 = vsel %vm783_vm0, %v4727_v0, 0  ;;  %v4776_v3 = vld [vmem:[%s7998_s2 + $0x8] sm:$0xf]  ;;  %s305_s18 = sadd.s32 1, %s5931_s25  ;;  %vm513_vm1 = vsmask.f32 7424 }
  0x17   : > { %5633 = vmatpush3.bf16.msra.mxu1 %v785_v1  ;;  %5183 = vmatpush3.bf16.msra.mxu0 %v785_v1  ;;  %p300_p10 = scmp.lt.s32.totalorder %s5964_s11, 143  ;;  %vm710_vm2 = vcmask 64512   ;;  %s5991_s29 = smul.u32 48, %s305_s18  ;;  %v1061_v12 = vsel %vm783_vm0, %v510_v2, 0  ;;  %v1413_v13 = vsel %vm783_vm0, %v4776_v3, 0  ;;  %vm1290_vm3 = vcmask 1046528  }
  0x18   : > { %5636 = vmatprep.subr.msk.bf16.mxu1 %vm783_vm0, %v510_v2  ;;  %5637 = vmatprep.subr.msk.bf16.mxu0 %vm783_vm0, %v4776_v3  ;;  %v6047_v32 = vld [vmem:[%s7998_s2 + $0x10] sm:$0xf]  ;;  %v6075_v43 = vld [vmem:[%s7998_s2 + $0xc] sm:$0xf]  ;;  %vm1973_vm4 = vsmask.f32 6400 }
  0x19   : > { %s301_s16 = scalar_select %p300_p10, %s5964_s11, 143  ;;  %vm2430_vm5 = vcmask 1045504   ;;  %vm3568_vm6 = vcmask 1044480   ;;  %vm3113_vm7 = vsmask.f32 5376 }
  0x1a   : > { %p307_p11 = scmp.lt.s32.totalorder %s5991_s29, 143  ;;  %p314_p12 = scmp.lt.s32.totalorder %s5964_s11, 95 }
  0x1b   : > { %s4697_s17 = sshll.u32 %s301_s16, 2  ;;  %s4956_s19 = smul.u32 6144, %s5931_s25 }
  0x1c   : > { %s5983_s28 = scalar_lea.vmem %s7996_s0, %s4697_s17  ;;  %s8355_s29 = smov (!%p307_p11, %s5991_s29), 143 }
  0x1d   : > { %v5986_v4 = vld [vmem:[%s5983_s28] sm:$0xff]   ;;  %v5989_v5 = vld [vmem:[%s5983_s28 + $0x8] sm:$0xff]   ;;  %v6008_v16 = vld [vmem:[%s5983_s28 + $0x10] sm:$0xff]   ;;  %s4698_s14 = sshll.u32 %s8355_s29, 2  ;;  %s8357_s11 = smov (!%p314_p12, %s5964_s11), 95 }
  0x1e   : > { %v515_v6 = vshrl.u32 %v5986_v4, 16  ;;  %v517_v7 = vshll.u32 %v5986_v4, 16  ;;  %v8005_v8 = vshll.u32 %v5989_v5, 16  ;;  %v8004_v9 = vshrl.u32 %v5989_v5, 16  ;;  %v5998_v10 = vld [vmem:[%s5983_s28 + $0x60] sm:$0xff]   ;;  %v6001_v11 = vld [vmem:[%s5983_s28 + $0x68] sm:$0xff]   ;;  %s6257_s17 = scalar_lea.vmem %s7997_s1, %s4698_s14  ;;  %s7883_s10 = scalar_lea.hbm %s8000_s4, %s4956_s19 }
  0x1f   : > { %v6012_v17 = vshll.u32 %v5998_v10, 16  ;;  %v6015_v18 = vshrl.u32 %v5998_v10, 16  ;;  %v6018_v19 = vshll.u32 %v6001_v11, 16  ;;  %v6021_v20 = vshrl.u32 %v6001_v11, 16  ;;  %v6029_v24 = vld [vmem:[%s5983_s28 + $0x70] sm:$0xff]   ;;  %v6034_v27 = vld [vmem:[%s5983_s28 + $0x18] sm:$0xff]  }
  0x20   : > { %v519_v14 = vrot.slane %v517_v7, 1  ;;  %v524_v15 = vrot.slane %v8005_v8, 1  ;;  %v6026_v23 = vshll.u32 %v6008_v16, 16  ;;  %v6037_v28 = vshrl.u32 %v6008_v16, 16  ;;  %v6058_v36 = vld [vmem:[%s5983_s28 + $0x78] sm:$0xff]   ;;  %v6064_v38 = vld [vmem:[%s5983_s28 + $0x20] sm:$0xff]  }
  0x21   : > { %8099 = vst [vmem:[#allocation9_spill] sm:$0xff] %v6012_v17  ;;  %8100 = vst [vmem:[#allocation10_spill] sm:$0xff] %v6015_v18  ;;  %v8003_v25 = vrot.slane %v6012_v17, 1  ;;  %v620_v26 = vrot.slane %v6018_v19, 1  ;;  %v6042_v31 = vshll.u32 %v6029_v24, 16  ;;  %v6055_v35 = vshll.u32 %v6034_v27, 16 }
  0x22   : > { %8101 = vst [vmem:[#allocation11_spill] sm:$0xff] %v6018_v19  ;;  %8102 = vst [vmem:[#allocation12_spill] sm:$0xff] %v6021_v20  ;;  %v520_v21 = vor.u32 %v519_v14, %v515_v6  ;;  %v528_v22 = vor.u32 %v8004_v9, %v524_v15  ;;  %v532_v30 = vrot.slane %v6026_v23, 1  ;;  %v6061_v37 = vshrl.u32 %v6029_v24, 16  ;;  %v6087_v48 = vld [vmem:[%s5983_s28 + $0x80] sm:$0xff]   ;;  %v6096_v52 = vld [vmem:[%s5983_s28 + $0x28] sm:$0xff]  }
  0x23   : > { %8103 = vst [vmem:[#allocation13_spill] sm:$0xff] %v6042_v31  ;;  %v616_v33 = vor.u32 %v6015_v18, %v8003_v25  ;;  %v624_v34 = vor.u32 %v6021_v20, %v620_v26  ;;  %v628_v40 = vrot.slane %v6042_v31, 1  ;;  %v6070_v42 = vshrl.u32 %v6034_v27, 16  ;;  %v6116_v60 = vld [vmem:[%s5983_s28 + $0x88] sm:$0xff]   ;;  %v6119_v61 = vld [vmem:[%s5983_s28 + $0x30] sm:$0xff]   ;;  %v6300_v19 = vld [vmem:[%s6257_s17] sm:$0xff]  }
  0x24   : > { %v525_v29 = vsel %vm513_vm1, %v520_v21, %v524_v15  ;;  %8104 = vst [vmem:[#allocation14_spill] sm:$0xff] %v6061_v37  ;;  %v533_v39 = vsel %vm513_vm1, %v528_v22, %v532_v30  ;;  %v536_v41 = vor.u32 %v6037_v28, %v532_v30  ;;  %v540_v45 = vrot.slane %v6055_v35, 1  ;;  %v6127_v1 = vld [vmem:[%s5983_s28 + $0x90] sm:$0xff]   ;;  %v6215_v25 = vld [vmem:[%s5983_s28 + $0xa8] sm:$0xff]   ;;  %8135 = vst [vmem:[#allocation45_spill] sm:$0xff] %v6300_v19  ;;  %s4699_s14 = sshll.u32 %s8357_s11, 3 }
  0x25   : > { %5184 = vmatprep.mubr.msk.bf16.mxu0 %vm710_vm2, %v525_v29  ;;  %v621_v44 = vsel %vm513_vm1, %v616_v33, %v620_v26  ;;  %v6081_v46 = vshll.u32 %v6058_v36, 16  ;;  %v6084_v47 = vshll.u32 %v6064_v38, 16  ;;  %v629_v49 = vsel %vm513_vm1, %v624_v34, %v628_v40  ;;  %v6163_v33 = vld [vmem:[%s5983_s28 + $0x98] sm:$0xff]   ;;  %v6227_v8 = vld [vmem:[%s5983_s28 + $0x50] sm:$0xff]   ;;  %s6668_s18 = scalar_lea.vmem %s7999_s3, %s4699_s14  ;;  %s7684_s11 = sand.u32 1, %s5859_s22  }
  0x26   : > { %5185 = vmatmul.mubr.msk.bf16.vlgmr.msra.gmra.mxu0 %vm710_vm2, %v533_v39  ;;  %5208 = vmatprep.mubr.msk.bf16.mxu1 %vm710_vm2, %v621_v44  ;;  %v632_v50 = vor.u32 %v6061_v37, %v628_v40  ;;  %v6093_v51 = vshrl.u32 %v6058_v36, 16  ;;  %v541_v53 = vsel %vm513_vm1, %v536_v41, %v540_v45  ;;  %v544_v55 = vor.u32 %v6070_v42, %v540_v45  ;;  %v6173_v44 = vld [vmem:[%s5983_s28 + $0x40] sm:$0xff]   ;;  %s4507_s12 = scalar_lea.sflag [#allocation3], %s7684_s11  ;;  %s5870_s14 = smov [#allocation2]  }
  0x27   : > { %8105 = vst [vmem:[#allocation15_spill] sm:$0xff] %v6081_v46  ;;  %5283 = vmatpush3.bf16.msra.mxu0 %v1413_v13  ;;  %5209 = vmatmul.mubr.msk.bf16.vlgmr.msra.gmra.mxu1 %vm710_vm2, %v629_v49  ;;  %v636_v54 = vrot.slane %v6081_v46, 1  ;;  %v548_v56 = vrot.slane %v6084_v47, 1  ;;  %v6107_v57 = vshll.u32 %v6087_v48, 16  ;;  %v6110_v58 = vshrl.u32 %v6064_v38, 16  ;;  %s5755_s15 = sshll.u32 %s5870_s14, 4  ;;  %s5756_s15 = int_to_ptr.vmem [resolvable:$false] %s5755_s15 }
  0x28   : > { %8106 = vst [vmem:[#allocation16_spill] sm:$0xff] %v6093_v51  ;;  %5639 = vmatprep.subr.msk.bf16.mxu0 %vm783_vm0, %v6047_v32  ;;  %5233 = vmatpush3.bf16.msra.mxu1 %v1061_v12  ;;  %v6113_v59 = vshll.u32 %v6096_v52, 16  ;;  %v6124_v0 = vshrl.u32 %v6087_v48, 16  ;;  %v6137_v12 = vld [vmem:[%s5983_s28 + $0x38] sm:$0xff]   ;;  %v6145_v13 = vshll.u32 %v6116_v60, 16  ;;  %v6148_v14 = vshrl.u32 %v6096_v52, 16 }
  0x29   : > { %5188 = vmatprep.mubr.msk.bf16.mxu0 %vm710_vm2, %v541_v53  ;;  %8107 = vst [vmem:[#allocation17_spill] sm:$0xff] %v6107_v57  ;;  %v637_v62 = vsel %vm513_vm1, %v632_v50, %v636_v54  ;;  %v640_v63 = vor.u32 %v6093_v51, %v636_v54  ;;  %5638 = vmatprep.subr.msk.bf16.mxu1 %vm783_vm0, %v6075_v43  ;;  %v644_v3 = vrot.slane %v6107_v57, 1  ;;  %v6151_v15 = vshll.u32 %v6119_v61, 16  ;;  %s5757_s16 = scalar_lea.vmem %s5756_s15, 12288 }
  0x2a   : > { %8108 = vst [vmem:[#allocation18_spill] sm:$0xff] %v6113_v59  ;;  %8109 = vst [vmem:[#allocation19_spill] sm:$0xff] %v6124_v0  ;;  %5212 = vmatprep.mubr.msk.bf16.mxu1 %vm710_vm2, %v637_v62  ;;  %v549_v2 = vsel %vm513_vm1, %v544_v55, %v548_v56  ;;  %v552_v6 = vor.u32 %v6110_v58, %v548_v56  ;;  %v556_v7 = vrot.slane %v6113_v59, 1  ;;  %v6154_v21 = vshrl.u32 %v6116_v60, 16 }
  0x2b   : > { %8110 = vst [vmem:[#allocation20_spill] sm:$0xff] %v6145_v13  ;;  %8111 = vst [vmem:[#allocation21_spill] sm:$0xff] %v6148_v14  ;;  %v645_v22 = vsel %vm513_vm1, %v640_v63, %v644_v3  ;;  %v648_v29 = vor.u32 %v6124_v0, %v644_v3  ;;  %v6160_v30 = vshll.u32 %v6127_v1, 16  ;;  %v652_v34 = vrot.slane %v6145_v13, 1  ;;  %v6193_v63 = vld [vmem:[%s5983_s28 + $0xa0] sm:$0xff]  }
  0x2c   : > { %8112 = vst [vmem:[#allocation22_spill] sm:$0xff] %v6151_v15  ;;  %8113 = vst [vmem:[#allocation23_spill] sm:$0xff] %v6154_v21  ;;  %v557_v26 = vsel %vm513_vm1, %v552_v6, %v556_v7  ;;  %v560_v39 = vor.u32 %v6148_v14, %v556_v7  ;;  %v564_v40 = vrot.slane %v6151_v15, 1  ;;  %v6170_v41 = vshrl.u32 %v6119_v61, 16 }
  0x2d   : > { %8114 = vst [vmem:[#allocation24_spill] sm:$0xff] %v6160_v30  ;;  %v660_v45 = vrot.slane %v6160_v30, 1  ;;  %v6178_v49 = vshll.u32 %v6137_v12, 16  ;;  %v6181_v50 = vshrl.u32 %v6127_v1, 16  ;;  %v6184_v53 = vshll.u32 %v6163_v33, 16 }
  0x2e   : > { %5189 = vmatmul.mubr.msk.bf16.gmra.mxu0 %vm710_vm2, %v549_v2  ;;  %8115 = vst [vmem:[#allocation25_spill] sm:$0xff] %v6170_v41  ;;  %v653_v54 = vsel %vm513_vm1, %v648_v29, %v652_v34  ;;  %v568_v55 = vor.u32 %v6170_v41, %v564_v40  ;;  %v656_v56 = vor.u32 %v6154_v21, %v652_v34  ;;  %v6198_v6 = vshll.u32 %v6173_v44, 16  ;;  %v6247_v21 = vld [vmem:[%s5983_s28 + $0x58] sm:$0xff]  }
  0x2f   : > { %5192 = vmatprep.mubr.msk.bf16.mxu0 %vm710_vm2, %v557_v26  ;;  %8116 = vst [vmem:[#allocation26_spill] sm:$0xff] %v6178_v49  ;;  %8117 = vst [vmem:[#allocation27_spill] sm:$0xff] %v6181_v50  ;;  %5213 = vmatmul.mubr.msk.bf16.gmra.mxu1 %vm710_vm2, %v645_v22  ;;  %v572_v62 = vrot.slane %v6178_v49, 1  ;;  %v664_v2 = vor.u32 %v6181_v50, %v660_v45  ;;  %v668_v3 = vrot.slane %v6184_v53, 1  ;;  %v6202_v22 = vshrl.u32 %v6137_v12, 16  ;;  %v6205_v26 = vld [vmem:[%s5983_s28 + $0x48] sm:$0xff]  }
  0x30   : > { %8118 = vst [vmem:[#allocation28_spill] sm:$0xff] %v6184_v53  ;;  %5216 = vmatprep.mubr.msk.bf16.mxu1 %vm710_vm2, %v653_v54  ;;  %8119 = vst [vmem:[#allocation29_spill] sm:$0xff] %v6198_v6  ;;  %v565_v7 = vsel %vm513_vm1, %v560_v39, %v564_v40  ;;  %v6209_v34 = vshll.u32 %v6193_v63, 16  ;;  %v6212_v54 = vshrl.u32 %v6173_v44, 16  ;;  %v661_v9 = vsel %vm513_vm1, %v656_v56, %v660_v45 }
  0x31   : > { %8120 = vst [vmem:[#allocation30_spill] sm:$0xff] %v6202_v22  ;;  %v573_v29 = vsel %vm513_vm1, %v568_v55, %v572_v62  ;;  %v580_v39 = vrot.slane %v6198_v6, 1  ;;  %v6221_v40 = vshrl.u32 %v6163_v33, 16  ;;  %v6224_v55 = vshll.u32 %v6205_v26, 16 }
  0x32   : > { %8121 = vst [vmem:[#allocation31_spill] sm:$0xff] %v6209_v34  ;;  %8122 = vst [vmem:[#allocation32_spill] sm:$0xff] %v6212_v54  ;;  %v669_v53 = vsel %vm513_vm1, %v664_v2, %v668_v3  ;;  %v6232_v30 = vshrl.u32 %v6193_v63, 16  ;;  %v6235_v45 = vshll.u32 %v6215_v25, 16  ;;  %v576_v56 = vor.u32 %v6202_v22, %v572_v62  ;;  %v6244_v2 = vld [vmem:[%s5983_s28 + $0xb0] sm:$0xff]  }
  0x33   : > { %8123 = vst [vmem:[#allocation33_spill] sm:$0xff] %v6221_v40  ;;  %8124 = vst [vmem:[#allocation34_spill] sm:$0xff] %v6224_v55  ;;  %v676_v50 = vrot.slane %v6209_v34, 1  ;;  %v584_v13 = vor.u32 %v6212_v54, %v580_v39  ;;  %v672_v57 = vor.u32 %v6221_v40, %v668_v3  ;;  %v6262_v34 = vld [vmem:[%s5983_s28 + $0xb8] sm:$0xff]   ;;  %v6270_v40 = vshll.u32 %v6244_v2, 16 }
  0x34   : > { %8125 = vst [vmem:[#allocation35_spill] sm:$0xff] %v6232_v30  ;;  %8126 = vst [vmem:[#allocation36_spill] sm:$0xff] %v6235_v45  ;;  %v684_v62 = vrot.slane %v6235_v45, 1  ;;  %v581_v0 = vsel %vm513_vm1, %v576_v56, %v580_v39  ;;  %v6273_v46 = vshrl.u32 %v6227_v8, 16  ;;  %v6276_v51 = vshll.u32 %v6247_v21, 16 }
  0x35   : > { %8129 = vst [vmem:[#allocation39_spill] sm:$0xff] %v6270_v40  ;;  %v677_v45 = vsel %vm513_vm1, %v672_v57, %v676_v50  ;;  %v6281_v39 = vshrl.u32 %v6215_v25, 16  ;;  %v6286_v56 = vshrl.u32 %v6244_v2, 16  ;;  %v6289_v31 = vshll.u32 %v6262_v34, 16 }
  0x36   : > { %5193 = vmatmul.mubr.msk.bf16.gmra.mxu0 %vm710_vm2, %v565_v7  ;;  %v588_v7 = vrot.slane %v6224_v55, 1  ;;  %8130 = vst [vmem:[#allocation40_spill] sm:$0xff] %v6273_v46  ;;  %8131 = vst [vmem:[#allocation41_spill] sm:$0xff] %v6276_v51  ;;  %v692_v57 = vrot.slane %v6270_v40, 1 }
  0x37   : > { %5196 = vmatprep.mubr.msk.bf16.mxu0 %vm710_vm2, %v573_v29  ;;  %5217 = vmatmul.mubr.msk.bf16.gmra.mxu1 %vm710_vm2, %v661_v9  ;;  %v6252_v29 = vshll.u32 %v6227_v8, 16  ;;  %v680_v9 = vor.u32 %v6232_v30, %v676_v50  ;;  %8132 = vst [vmem:[#allocation42_spill] sm:$0xff] %v6281_v39  ;;  %8133 = vst [vmem:[#allocation43_spill] sm:$0xff] %v6286_v56 }
  0x38   : > { %5220 = vmatprep.mubr.msk.bf16.mxu1 %vm710_vm2, %v669_v53  ;;  %v6266_v53 = vshrl.u32 %v6205_v26, 16  ;;  %v589_v3 = vsel %vm513_vm1, %v584_v13, %v588_v7  ;;  %8134 = vst [vmem:[#allocation44_spill] sm:$0xff] %v6289_v31  ;;  %v696_v20 = vor.u32 %v6286_v56, %v692_v57 }
  0x39   : > { %8127 = vst [vmem:[#allocation37_spill] sm:$0xff] %v6252_v29  ;;  %v596_v30 = vrot.slane %v6252_v29, 1  ;;  %v685_v13 = vsel %vm513_vm1, %v680_v9, %v684_v62  ;;  %v688_v9 = vor.u32 %v6281_v39, %v684_v62  ;;  %v6314_v62 = vshll.u32 %v6300_v19, 16 }
  0x3a   : > { %8128 = vst [vmem:[#allocation38_spill] sm:$0xff] %v6266_v53  ;;  %v592_v37 = vor.u32 %v6266_v53, %v588_v7 }
  0x3b   : > { %v600_v50 = vor.u32 %v6273_v46, %v596_v30  ;;  %v693_v18 = vsel %vm513_vm1, %v688_v9, %v692_v57  ;;  %8138 = vst [vmem:[#allocation48_spill] sm:$0xff] %v6314_v62  ;;  %v1291_v57 = vrot.slane %v5986_v4, 1 }
  0x3c   : > { %v597_v7 = vsel %vm513_vm1, %v592_v37, %v596_v30  ;;  %v8139_v30 = vshll.u32 %v5989_v5, 16 }
  0x3e   : > { %5197 = vmatmul.mubr.msk.bf16.gmra.mxu0 %vm710_vm2, %v581_v0  ;;  %v604_v0 = vrot.slane %v6276_v51, 1  ;;  %v6311_v51 = vshrl.u32 %v6262_v34, 16 }
  0x3f   : > { %5200 = vmatprep.mubr.msk.bf16.mxu0 %vm710_vm2, %v589_v3  ;;  %5221 = vmatmul.mubr.msk.bf16.gmra.mxu1 %vm710_vm2, %v677_v45  ;;  %v700_v3 = vrot.slane %v6289_v31, 1  ;;  %v6306_v45 = vshrl.u32 %v6247_v21, 16  ;;  %v6322_v31 = vrot.slane %v8139_v30, 2 }
  0x40   : > { %5224 = vmatprep.mubr.msk.bf16.mxu1 %vm710_vm2, %v685_v13  ;;  %v605_v40 = vsel %vm513_vm1, %v600_v50, %v604_v0  ;;  %8137 = vst [vmem:[#allocation47_spill] sm:$0xff] %v6311_v51  ;;  %v1292_v50 = vrot.slane %v5989_v5, 1 }
  0x41   : > { %8136 = vst [vmem:[#allocation46_spill] sm:$0xff] %v6306_v45  ;;  %v701_v13 = vsel %vm513_vm1, %v696_v20, %v700_v3  ;;  %v608_v37 = vor.u32 %v6306_v45, %v604_v0  ;;  %v704_v9 = vor.u32 %v6311_v51, %v700_v3  ;;  %v708_v20 = vrot.slane %v6314_v62, 1 }
  0x42   : > { %v1985_v3 = vrot.slane %v6110_v58, 1  ;;  %v1986_v62 = vrot.slane %v6084_v47, 2 }
  0x46   : > { %5201 = vmatmul.mubr.msk.bf16.gmra.mxu0 %vm710_vm2, %v597_v7  ;;  %v8141_v7 = vrot.slane %v6012_v17, 1 }
  0x47   : > { %5204 = vmatprep.mubr.msk.bf16.mxu0 %vm710_vm2, %v605_v40  ;;  %5225 = vmatmul.mubr.msk.bf16.gmra.mxu1 %vm710_vm2, %v693_v18  ;;  %v8140_v40 = vshrl.u32 %v5989_v5, 16  ;;  %v1293_v18 = vsel %vm1290_vm3, %v1291_v57, %v1292_v50  ;;  %v6348_v57 = vor.u32 %v1986_v62, %v1985_v3  ;;  %v6375_v62 = vld [vmem:[%s7998_s2 + $0x14] sm:$0xf] }
  0x48   : > { %5228 = vmatprep.mubr.msk.bf16.mxu1 %vm710_vm2, %v701_v13  ;;  %v613_v30 = vsel %vm513_vm1, %v608_v37, %v8141_v7  ;;  %v709_v13 = vsel %vm513_vm1, %v704_v9, %v708_v20  ;;  %v1296_v37 = vrot.slane %v6034_v27, 1  ;;  %v2153_v20 = vsel %vm783_vm0, %v6047_v32, 0 }
  0x49   : > { %v6332_v0 = vrot.slane %v8140_v40, 1  ;;  %v1294_v40 = vrot.slane %v6008_v16, 1  ;;  %v1298_v32 = vrot.slane %v6064_v38, 1 }
  0x4b   : > { %v1976_v56 = vor.u32 %v6322_v31, %v6332_v0  ;;  %v6353_v9 = vsel %vm1290_vm3, %v1292_v50, %v1294_v40  ;;  %v6358_v7 = vsel %vm1290_vm3, %v1294_v40, %v1296_v37  ;;  %v1300_v50 = vrot.slane %v6096_v52, 1 }
  0x4c   : > { %v1306_v40 = vrot.slane %v6173_v44, 1  ;;  %v1990_v31 = vrot.slane %v6113_v59, 2 }
  0x4e   : > { %5205 = vmatmul.mubr.msk.bf16.gmra.mxu0 %vm710_vm2, %v613_v30  ;;  %v6363_v30 = vld [vmem:[%s7998_s2 + $0x18] sm:$0xf] }
  0x4f   : > { %5284 = vmatprep.mubr.msk.bf16.mxu0 %vm710_vm2, %v1293_v18  ;;  %5229 = vmatmul.mubr.msk.bf16.gmra.mxu1 %vm710_vm2, %v709_v13  ;;  %v6390_v18 = vsel %vm1290_vm3, %v1298_v32, %v1300_v50 }
  0x50   : > { %5234 = vmatprep.mubr.msk.bf16.mxu1 %vm710_vm2, %v5986_v4  ;;  %v1696_v4 = vsel %vm783_vm0, %v6075_v43, 0  ;;  %v6387_v43 = vsel %vm1290_vm3, %v1296_v37, %v1298_v32  ;;  %v1314_v32 = vrot.slane %v5998_v10, 1 }
  0x56   : > { %5285 = vmatmul.mubr.msk.bf16.vlgmr.msra.gmra.mxu0 %vm710_vm2, %v6353_v9 }
  0x57   : > { %5383 = vmatpush3.bf16.msra.mxu0 %v2153_v20  ;;  %5288 = vmatprep.mubr.msk.bf16.mxu0 %vm710_vm2, %v6358_v7  ;;  %v1310_v20 = vrot.slane %v6227_v8, 1 }
  0x58   : > { %5235 = vmatmul.mubr.msk.bf16.vlgmr.msra.gmra.mxu1 %vm710_vm2, %v5989_v5  ;;  %5641 = vmatprep.subr.msk.bf16.mxu0 %vm783_vm0, %v6363_v30  ;;  %v1302_v5 = vrot.slane %v6119_v61, 1 }
  0x59   : > { %5333 = vmatpush3.bf16.msra.mxu1 %v1696_v4  ;;  %5238 = vmatprep.mubr.msk.bf16.mxu1 %vm710_vm2, %v6008_v16  ;;  %v1304_v16 = vrot.slane %v6137_v12, 1 }
  0x5a   : > { %5640 = vmatprep.subr.msk.bf16.mxu1 %vm783_vm0, %v6375_v62  ;;  %v6403_v13 = vsel %vm1290_vm3, %v1300_v50, %v1302_v5 }
  0x5b   : > { %v6406_v3 = vsel %vm1290_vm3, %v1302_v5, %v1304_v16  ;;  %v1318_v5 = vrot.slane %v6029_v24, 1 }
  0x5e   : > { %5289 = vmatmul.mubr.msk.bf16.gmra.mxu0 %vm710_vm2, %v6387_v43 }
  0x5f   : > { %5292 = vmatprep.mubr.msk.bf16.mxu0 %vm710_vm2, %v6390_v18 }
  0x60   : > { %5239 = vmatmul.mubr.msk.bf16.gmra.mxu1 %vm710_vm2, %v6034_v27  ;;  %v1308_v27 = vrot.slane %v6205_v26, 1 }
  0x61   : > { %5242 = vmatprep.mubr.msk.bf16.mxu1 %vm710_vm2, %v6064_v38  ;;  %v6419_v38 = vsel %vm1290_vm3, %v1304_v16, %v1306_v40 }
  0x62   : > { %v6422_v37 = vsel %vm1290_vm3, %v1306_v40, %v1308_v27  ;;  %v1322_v40 = vrot.slane %v6087_v48, 1 }
  0x66   : > { %5293 = vmatmul.mubr.msk.bf16.gmra.mxu0 %vm710_vm2, %v6403_v13 }
  0x67   : > { %5296 = vmatprep.mubr.msk.bf16.mxu0 %vm710_vm2, %v6406_v3 }
  0x68   : > { %5243 = vmatmul.mubr.msk.bf16.gmra.mxu1 %vm710_vm2, %v6096_v52  ;;  %v1312_v52 = vrot.slane %v6247_v21, 1 }
  0x69   : > { %5246 = vmatprep.mubr.msk.bf16.mxu1 %vm710_vm2, %v6119_v61  ;;  %v6435_v61 = vsel %vm1290_vm3, %v1308_v27, %v1310_v20 }
  0x6a   : > { %v6438_v4 = vsel %vm1290_vm3, %v1310_v20, %v1312_v52  ;;  %v1326_v20 = vrot.slane %v6127_v1, 1 }
  0x6e   : > { %5297 = vmatmul.mubr.msk.bf16.gmra.mxu0 %vm710_vm2, %v6419_v38 }
  0x6f   : > { %5300 = vmatprep.mubr.msk.bf16.mxu0 %vm710_vm2, %v6422_v37 }
  0x70   : > { %5247 = vmatmul.mubr.msk.bf16.gmra.mxu1 %vm710_vm2, %v6137_v12  ;;  %v1316_v12 = vrot.slane %v6001_v11, 1 }
  0x71   : > { %5250 = vmatprep.mubr.msk.bf16.mxu1 %vm710_vm2, %v6173_v44  ;;  %v6451_v44 = vsel %vm1290_vm3, %v1312_v52, %v1314_v32 }
  0x72   : > { %v6454_v50 = vsel %vm1290_vm3, %v1314_v32, %v1316_v12  ;;  %v1330_v32 = vrot.slane %v6193_v63, 1 }
  0x76   : > { %5301 = vmatmul.mubr.msk.bf16.gmra.mxu0 %vm710_vm2, %v6435_v61 }
  0x77   : > { %5304 = vmatprep.mubr.msk.bf16.mxu0 %vm710_vm2, %v6438_v4 }
  0x78   : > { %5251 = vmatmul.mubr.msk.bf16.gmra.mxu1 %vm710_vm2, %v6205_v26  ;;  %v1320_v26 = vrot.slane %v6058_v36, 1 }
  0x79   : > { %5254 = vmatprep.mubr.msk.bf16.mxu1 %vm710_vm2, %v6227_v8  ;;  %v6467_v8 = vsel %vm1290_vm3, %v1316_v12, %v1318_v5 }
  0x7a   : > { %v6470_v16 = vsel %vm1290_vm3, %v1318_v5, %v1320_v26  ;;  %v1334_v5 = vrot.slane %v6244_v2, 1 }
  0x7e   : > { %5305 = vmatmul.mubr.msk.bf16.gmra.mxu0 %vm710_vm2, %v6451_v44 }
  0x7f   : > { %5308 = vmatprep.mubr.msk.bf16.mxu0 %vm710_vm2, %v6454_v50 }
  0x80   : > { %5255 = vmatmul.mubr.msk.bf16.gmra.mxu1 %vm710_vm2, %v6247_v21  ;;  %v1324_v21 = vrot.slane %v6116_v60, 1 }
  0x81   : > { %5258 = vmatprep.mubr.msk.bf16.mxu1 %vm710_vm2, %v5998_v10  ;;  %v6483_v10 = vsel %vm1290_vm3, %v1320_v26, %v1322_v40 }
  0x82   : > { %v6486_v27 = vsel %vm1290_vm3, %v1322_v40, %v1324_v21  ;;  %v1977_v40 = vrot.slane %v6037_v28, 1 }
  0x86   : > { %5309 = vmatmul.mubr.msk.bf16.gmra.mxu0 %vm710_vm2, %v6467_v8 }
  0x87   : > { %5312 = vmatprep.mubr.msk.bf16.mxu0 %vm710_vm2, %v6470_v16 }
  0x88   : > { %5259 = vmatmul.mubr.msk.bf16.gmra.mxu1 %vm710_vm2, %v6001_v11  ;;  %v1328_v11 = vrot.slane %v6163_v33, 1 }
  0x89   : > { %5262 = vmatprep.mubr.msk.bf16.mxu1 %vm710_vm2, %v6029_v24  ;;  %v6499_v24 = vsel %vm1290_vm3, %v1324_v21, %v1326_v20  ;;  %v1978_v21 = vrot.slane %v6026_v23, 2 }
  0x8a   : > { %v6502_v52 = vsel %vm1290_vm3, %v1326_v20, %v1328_v11 }
  0x8e   : > { %5313 = vmatmul.mubr.msk.bf16.gmra.mxu0 %vm710_vm2, %v6483_v10 }
  0x8f   : > { %5316 = vmatprep.mubr.msk.bf16.mxu0 %vm710_vm2, %v6486_v27 }
  0x90   : > { %5263 = vmatmul.mubr.msk.bf16.gmra.mxu1 %vm710_vm2, %v6058_v36  ;;  %v1332_v36 = vrot.slane %v6215_v25, 1 }
  0x91   : > { %5266 = vmatprep.mubr.msk.bf16.mxu1 %vm710_vm2, %v6087_v48  ;;  %v6515_v48 = vsel %vm1290_vm3, %v1328_v11, %v1330_v32  ;;  %v1981_v11 = vrot.slane %v6070_v42, 1 }
  0x92   : > { %v6518_v12 = vsel %vm1290_vm3, %v1330_v32, %v1332_v36  ;;  %v1982_v32 = vrot.slane %v6055_v35, 2 }
  0x96   : > { %5317 = vmatmul.mubr.msk.bf16.gmra.mxu0 %vm710_vm2, %v6499_v24 }
  0x97   : > { %5320 = vmatprep.mubr.msk.bf16.mxu0 %vm710_vm2, %v6502_v52 }
  0x98   : > { %5267 = vmatmul.mubr.msk.bf16.gmra.mxu1 %vm710_vm2, %v6116_v60  ;;  %v1336_v60 = vrot.slane %v6262_v34, 1 }
  0x99   : > { %5270 = vmatprep.mubr.msk.bf16.mxu1 %vm710_vm2, %v6127_v1  ;;  %v6531_v1 = vsel %vm1290_vm3, %v1332_v36, %v1334_v5 }
  0x9a   : > { %v6534_v26 = vsel %vm1290_vm3, %v1334_v5, %v1336_v60  ;;  %v1989_v5 = vrot.slane %v6148_v14, 1  ;;  %v6857_v14 = vld [vmem:[%s5983_s28 + $0x20] sm:$0xff]  }
  0x9b   : > { %8176 = vst [vmem:[#allocation57_spill] sm:$0xff] %v6857_v14 }
  0x9e   : > { %5321 = vmatmul.mubr.msk.bf16.gmra.mxu0 %vm710_vm2, %v6515_v48 }
  0x9f   : > { %5324 = vmatprep.mubr.msk.bf16.mxu0 %vm710_vm2, %v6518_v12 }
  0xa0   : > { %5271 = vmatmul.mubr.msk.bf16.gmra.mxu1 %vm710_vm2, %v6163_v33  ;;  %v8052_v33 = vrot.slane %v6300_v19, 1 }
  0xa1   : > { %5274 = vmatprep.mubr.msk.bf16.mxu1 %vm710_vm2, %v6193_v63  ;;  %v1979_v63 = vor.u32 %v1978_v21, %v1977_v40  ;;  %v1994_v40 = vrot.slane %v6151_v15, 2  ;;  %v6586_v21 = vld [vmem:[%s7998_s2 + $0x1c] sm:$0xf] }
  0xa2   : > { %v6550_v20 = vsel %vm1290_vm3, %v1336_v60, %v8052_v33  ;;  %v1993_v60 = vrot.slane %v6170_v41, 1  ;;  %v8174_v41 = vrot.slane %v6300_v19, 1 }
  0xa3   : > { %v1980_v36 = vsel %vm1973_vm4, %v1976_v56, %v1979_v63  ;;  %v2836_v56 = vsel %vm783_vm0, %v6363_v30, 0  ;;  %v1991_v30 = vor.u32 %v1990_v31, %v1989_v5  ;;  %v2005_v5 = vrot.slane %v6266_v53, 1  ;;  %v6825_v53 = vld [vmem:[%s5983_s28 + $0x18] sm:$0xff]  }
  0xa4   : > { %v2006_v31 = vrot.slane %v6224_v55, 2  ;;  %8171 = vst [vmem:[#allocation53_spill] sm:$0xff] %v6825_v53 }
  0xa6   : > { %5325 = vmatmul.mubr.msk.bf16.gmra.mxu0 %vm710_vm2, %v6531_v1 }
  0xa7   : > { %5328 = vmatprep.mubr.msk.bf16.mxu0 %vm710_vm2, %v6534_v26 }
  0xa8   : > { %5275 = vmatmul.mubr.msk.bf16.gmra.mxu1 %vm710_vm2, %v6215_v25  ;;  %v1983_v25 = vor.u32 %v1982_v32, %v1981_v11  ;;  %v1997_v11 = vrot.slane %v6202_v22, 1  ;;  %v1998_v32 = vrot.slane %v6178_v49, 2  ;;  %v4032_v49 = vld [vmem:[%s6668_s18 + $0x90] sm:$0xff] }
  0xa9   : > { %5278 = vmatprep.mubr.msk.bf16.mxu1 %vm710_vm2, %v6244_v2 }
  0xaa   : > { %v1984_v2 = vsel %vm1973_vm4, %v1979_v63, %v1983_v25  ;;  %v1988_v0 = vsel %vm1973_vm4, %v1983_v25, %v6348_v57  ;;  %v1995_v63 = vor.u32 %v1994_v40, %v1993_v60  ;;  %v2002_v25 = vrot.slane %v6198_v6, 2 }
  0xab   : > { %v2010_v60 = vrot.slane %v6252_v29, 2 }
  0xae   : > { %5329 = vmatmul.mubr.msk.bf16.gmra.mxu0 %vm710_vm2, %v6550_v20 }
  0xaf   : > { %5384 = vmatprep.mubr.msk.bf16.mxu0 %vm710_vm2, %v1980_v36  ;;  %v2001_v36 = vrot.slane %v6212_v54, 1  ;;  %v4031_v54 = vld [vmem:[%s6668_s18 + $0x88] sm:$0xff] }
  0xb0   : > { %5279 = vmatmul.mubr.msk.bf16.gmra.mxu1 %vm710_vm2, %v6262_v34  ;;  %v6577_v34 = vld [vmem:[%s7998_s2 + $0x20] sm:$0xf] }
  0xb1   : > { %5334 = vmatprep.mubr.msk.bf16.mxu1 %vm710_vm2, %v6353_v9  ;;  %v2553_v9 = vsel %vm783_vm0, %v6375_v62, 0  ;;  %v1992_v62 = vsel %vm1973_vm4, %v6348_v57, %v1991_v30 }
  0xb6   : > { %5385 = vmatmul.mubr.msk.bf16.vlgmr.msra.gmra.mxu0 %vm710_vm2, %v1984_v2  ;;  %v2003_v2 = vor.u32 %v2002_v25, %v2001_v36  ;;  %v8144_v25 = vld [vmem:[#allocation12_spill] sm:$0xff] }
  0xb7   : > { %5483 = vmatpush3.bf16.msra.mxu0 %v2836_v56  ;;  %5388 = vmatprep.mubr.msk.bf16.mxu0 %vm710_vm2, %v1988_v0  ;;  %v2009_v0 = vrot.slane %v6273_v46, 1 }
  0xb8   : > { %5335 = vmatmul.mubr.msk.bf16.vlgmr.msra.gmra.mxu1 %vm710_vm2, %v6358_v7  ;;  %5643 = vmatprep.subr.msk.bf16.mxu0 %vm783_vm0, %v6577_v34  ;;  %v1996_v7 = vsel %vm1973_vm4, %v1991_v30, %v1995_v63  ;;  %v8142_v30 = vld [vmem:[#allocation41_spill] sm:$0xff] }
  0xb9   : > { %5433 = vmatpush3.bf16.msra.mxu1 %v2553_v9  ;;  %5338 = vmatprep.mubr.msk.bf16.mxu1 %vm710_vm2, %v6387_v43  ;;  %v1999_v43 = vor.u32 %v1998_v32, %v1997_v11  ;;  %v2013_v9 = vrot.slane %v6306_v45, 1  ;;  %v8143_v11 = vld [vmem:[#allocation10_spill] sm:$0xff] }
  0xba   : > { %5642 = vmatprep.subr.msk.bf16.mxu1 %vm783_vm0, %v6586_v21  ;;  %v2017_v32 = vrot.slane %v8143_v11, 1  ;;  %v8166_v11 = vld [vmem:[#allocation48_spill] sm:$0xff] }
  0xbb   : > { %v2000_v57 = vsel %vm1973_vm4, %v1995_v63, %v1999_v43  ;;  %v2004_v56 = vsel %vm1973_vm4, %v1999_v43, %v2003_v2  ;;  %v2014_v63 = vrot.slane %v8142_v30, 2  ;;  %v2021_v43 = vrot.slane %v8144_v25, 1 }
  0xbc   : > { %v2068_v30 = vrot.slane %v8166_v11, 2 }
  0xbe   : > { %5389 = vmatmul.mubr.msk.bf16.gmra.mxu0 %vm710_vm2, %v1992_v62 }
  0xbf   : > { %5392 = vmatprep.mubr.msk.bf16.mxu0 %vm710_vm2, %v1996_v7  ;;  %v2018_v7 = vrot.slane %v6012_v17, 2 }
  0xc0   : > { %5339 = vmatmul.mubr.msk.bf16.gmra.mxu1 %vm710_vm2, %v6390_v18  ;;  %v2007_v18 = vor.u32 %v2006_v31, %v2005_v5  ;;  %v8146_v31 = vld [vmem:[#allocation14_spill] sm:$0xff] }
  0xc1   : > { %5342 = vmatprep.mubr.msk.bf16.mxu1 %vm710_vm2, %v6403_v13  ;;  %v2011_v13 = vor.u32 %v2010_v60, %v2009_v0  ;;  %v8147_v0 = vld [vmem:[#allocation13_spill] sm:$0xff] }
  0xc2   : > { %v2008_v40 = vsel %vm1973_vm4, %v2003_v2, %v2007_v18  ;;  %v8145_v2 = vld [vmem:[#allocation11_spill] sm:$0xff]  ;;  %v2026_v60 = vrot.slane %v8147_v0, 2 }
  0xc3   : > { %v2012_v62 = vsel %vm1973_vm4, %v2007_v18, %v2011_v13  ;;  %v8162_v0 = vld [vmem:[#allocation39_spill] sm:$0xff] }
  0xc6   : > { %5393 = vmatmul.mubr.msk.bf16.gmra.mxu0 %vm710_vm2, %v2000_v57  ;;  %v2022_v57 = vrot.slane %v8145_v2, 2 }
  0xc7   : > { %5396 = vmatprep.mubr.msk.bf16.mxu0 %vm710_vm2, %v2004_v56  ;;  %v2025_v56 = vrot.slane %v8146_v31, 1  ;;  %v2058_v31 = vrot.slane %v8162_v0, 2  ;;  %v8164_v0 = vld [vmem:[#allocation44_spill] sm:$0xff] }
  0xc8   : > { %5343 = vmatmul.mubr.msk.bf16.gmra.mxu1 %vm710_vm2, %v6406_v3  ;;  %v2015_v3 = vor.u32 %v2014_v63, %v2013_v9  ;;  %v8149_v9 = vld [vmem:[#allocation15_spill] sm:$0xff] }
  0xc9   : > { %5346 = vmatprep.mubr.msk.bf16.mxu1 %vm710_vm2, %v6419_v38  ;;  %v2019_v38 = vor.u32 %v2018_v7, %v2017_v32  ;;  %v2030_v63 = vrot.slane %v8149_v9, 2  ;;  %v8150_v32 = vld [vmem:[#allocation19_spill] sm:$0xff] }
  0xca   : > { %v2016_v36 = vsel %vm1973_vm4, %v2011_v13, %v2015_v3  ;;  %v8148_v13 = vld [vmem:[#allocation16_spill] sm:$0xff]  ;;  %v2033_v7 = vrot.slane %v8150_v32, 1 }
  0xcb   : > { %v2020_v5 = vsel %vm1973_vm4, %v2015_v3, %v2019_v38  ;;  %v8151_v3 = vld [vmem:[#allocation17_spill] sm:$0xff] }
  0xce   : > { %5397 = vmatmul.mubr.msk.bf16.gmra.mxu0 %vm710_vm2, %v2008_v40  ;;  %v2029_v40 = vrot.slane %v8148_v13, 1 }
  0xcf   : > { %5400 = vmatprep.mubr.msk.bf16.mxu0 %vm710_vm2, %v2012_v62 }
  0xd0   : > { %5347 = vmatmul.mubr.msk.bf16.gmra.mxu1 %vm710_vm2, %v6422_v37  ;;  %v2023_v37 = vor.u32 %v2022_v57, %v2021_v43  ;;  %v8152_v43 = vld [vmem:[#allocation23_spill] sm:$0xff] }
  0xd1   : > { %5350 = vmatprep.mubr.msk.bf16.mxu1 %vm710_vm2, %v6435_v61  ;;  %v2027_v61 = vor.u32 %v2026_v60, %v2025_v56  ;;  %v2037_v57 = vrot.slane %v8152_v43, 1  ;;  %v8159_v43 = vld [vmem:[#allocation31_spill] sm:$0xff] }
  0xd2   : > { %v2024_v18 = vsel %vm1973_vm4, %v2019_v38, %v2023_v37 }
  0xd3   : > { %v2028_v62 = vsel %vm1973_vm4, %v2023_v37, %v2027_v61  ;;  %v8154_v37 = vld [vmem:[#allocation27_spill] sm:$0xff] }
  0xd6   : > { %5401 = vmatmul.mubr.msk.bf16.gmra.mxu0 %vm710_vm2, %v2016_v36  ;;  %v2034_v36 = vrot.slane %v8151_v3, 2  ;;  %v2050_v3 = vrot.slane %v8159_v43, 2 }
  0xd7   : > { %5404 = vmatprep.mubr.msk.bf16.mxu0 %vm710_vm2, %v2020_v5  ;;  %v8153_v5 = vld [vmem:[#allocation20_spill] sm:$0xff] }
  0xd8   : > { %5351 = vmatmul.mubr.msk.bf16.gmra.mxu1 %vm710_vm2, %v6438_v4  ;;  %v2031_v4 = vor.u32 %v2030_v63, %v2029_v40  ;;  %v2038_v56 = vrot.slane %v8153_v5, 2  ;;  %v8155_v40 = vld [vmem:[#allocation24_spill] sm:$0xff] }
  0xd9   : > { %5354 = vmatprep.mubr.msk.bf16.mxu1 %vm710_vm2, %v6451_v44  ;;  %v2035_v44 = vor.u32 %v2034_v36, %v2033_v7  ;;  %v2042_v63 = vrot.slane %v8155_v40, 2 }
  0xda   : > { %v2032_v38 = vsel %vm1973_vm4, %v2027_v61, %v2031_v4  ;;  %v4014_v61 = vld [vmem:[%s6668_s18] sm:$0xff] }
  0xdb   : > { %v2036_v60 = vsel %vm1973_vm4, %v2031_v4, %v2035_v44 }
  0xde   : > { %5405 = vmatmul.mubr.msk.bf16.gmra.mxu0 %vm710_vm2, %v2024_v18  ;;  %v2041_v18 = vrot.slane %v8154_v37, 1 }
  0xdf   : > { %5408 = vmatprep.mubr.msk.bf16.mxu0 %vm710_vm2, %v2028_v62  ;;  %v2039_v62 = vor.u32 %v2038_v56, %v2037_v57  ;;  %v4015_v57 = vld [vmem:[%s6668_s18 + $0x8] sm:$0xff] }
  0xe0   : > { %5355 = vmatmul.mubr.msk.bf16.gmra.mxu1 %vm710_vm2, %v6454_v50  ;;  %v2043_v4 = vor.u32 %v2042_v63, %v2041_v18 }
  0xe1   : > { %5358 = vmatprep.mubr.msk.bf16.mxu1 %vm710_vm2, %v6467_v8  ;;  %v5869_v8 = vmov 0   ;;  %v2040_v56 = vsel %vm1973_vm4, %v2035_v44, %v2039_v62  ;;  %v4017_v44 = vld [vmem:[%s6668_s18 + $0x18] sm:$0xff] }
  0xe2   : > { %5697 = vset.pattern.permute.xlu0 %v5869_v8  ;;  %5698 = vset.pattern.permute.xlu1 %v5869_v8  ;;  %v8158_v8 = vld [vmem:[#allocation35_spill] sm:$0xff] }
  0xe3   : > { %4064 = vperm.xlu0 %5697, %v4014_v61   ;;  %v8156_v61 = vld [vmem:[#allocation33_spill] sm:$0xff]  ;;  %v2049_v5 = vrot.slane %v8158_v8, 1  ;;  %v3122_v8 = vrot.slane %v6084_v47, 3 }
  0xe4   : > { %v2045_v40 = vrot.slane %v8156_v61, 1 }
  0xe5   : > { %v2051_v43 = vor.u32 %v2050_v3, %v2049_v5  ;;  %v2053_v3 = vrot.slane %v6281_v39, 1  ;;  %v8160_v5 = vld [vmem:[#allocation36_spill] sm:$0xff]  ;;  %v8165_v39 = vshrl.u32 %v6300_v19, 16 }
  0xe6   : > { %v6670_v50 = vpop.f32.mrf.mxu0  ;;  %5409 = vmatmul.mubr.msk.bf16.gmra.mxu0 %vm710_vm2, %v2032_v38 }
  0xe7   : > { %5412 = vmatprep.mubr.msk.bf16.mxu0 %vm710_vm2, %v2036_v60  ;;  %v6675_v7 = vpop.f32.mrf.mxu1  ;;  %v4016_v60 = vld [vmem:[%s6668_s18 + $0x10] sm:$0xff]  ;;  %4069 = vperm.xlu0 %5697, %v4015_v57   ;;  %v2067_v17 = vrot.slane %v8165_v39, 1 }
  0xe8   : > { %5359 = vmatmul.mubr.msk.bf16.gmra.mxu1 %vm710_vm2, %v6470_v16  ;;  %v6679_v36 = vpop.f32.mrf.mxu0  ;;  %v8157_v16 = vld [vmem:[#allocation28_spill] sm:$0xff]  ;;  %4074 = vperm.xlu1 %5698, %v4016_v60  }
  0xe9   : > { %5362 = vmatprep.mubr.msk.bf16.mxu1 %vm710_vm2, %v6483_v10  ;;  %v6683_v38 = vpop.f32.mrf.mxu1  ;;  %v2046_v37 = vrot.slane %v8157_v16, 2  ;;  %v2044_v10 = vsel %vm1973_vm4, %v2039_v62, %v2043_v4  ;;  %v4018_v60 = vld [vmem:[%s6668_s18 + $0x20] sm:$0xff] }
  0xea   : > { %v6685_v33 = vpop.f32.mrf.mxu0 }
  0xeb   : > { %v6692_v18 = vpop.f32.mrf.mxu1  ;;  %v2047_v57 = vor.u32 %v2046_v37, %v2045_v40  ;;  %4084 = vperm.xlu0 %5697, %v4018_v60   ;;  %v4019_v40 = vld [vmem:[%s6668_s18 + $0x28] sm:$0xff]  ;;  %v8161_v60 = vld [vmem:[#allocation43_spill] sm:$0xff] }
  0xec   : > { %v6694_v63 = vpop.f32.mrf.mxu0  ;;  %4079 = vperm.xlu1 %5698, %v4017_v44   ;;  %v2054_v44 = vrot.slane %v8160_v5, 2  ;;  %v2057_v13 = vrot.slane %v8161_v60, 1  ;;  %v4022_v5 = vld [vmem:[%s6668_s18 + $0x40] sm:$0xff] }
  0xed   : > { %v6699_v32 = vpop.f32.mrf.mxu1 }
  0xee   : > { %v6701_v9 = vpop.f32.mrf.mxu0  ;;  %5413 = vmatmul.mubr.msk.bf16.gmra.mxu0 %vm710_vm2, %v2040_v56  ;;  %v3121_v56 = vrot.slane %v6110_v58, 2 }
  0xef   : > { %5416 = vmatprep.mubr.msk.bf16.mxu0 %vm710_vm2, %v2044_v10  ;;  %v6707_v16 = vpop.f32.mrf.mxu1  ;;  %v4020_v10 = vld [vmem:[%s6668_s18 + $0x30] sm:$0xff] }
  0xf0   : > { %5363 = vmatmul.mubr.msk.bf16.gmra.mxu1 %vm710_vm2, %v6486_v27  ;;  %v6711_v62 = vpop.f32.mrf.mxu0  ;;  %v2048_v27 = vsel %vm1973_vm4, %v2043_v4, %v2047_v57  ;;  %4089 = vperm.xlu1 %5698, %v4019_v40   ;;  %v6733_v2 = vor.u32 %v3122_v8, %v3121_v56  ;;  %v4021_v40 = vld [vmem:[%s6668_s18 + $0x38] sm:$0xff]  ;;  %v2059_v56 = vor.u32 %v2058_v31, %v2057_v13  ;;  %v2062_v31 = vrot.slane %v8164_v0, 2  ;;  %v6762_v13 = vld [vmem:[%s6257_s17 + $0x8] sm:$0xff]   ;;  %v4026_v0 = vld [vmem:[%s6668_s18 + $0x60] sm:$0xff] }
  0xf1   : > { %5366 = vmatprep.mubr.msk.bf16.mxu1 %vm710_vm2, %v6499_v24  ;;  %v6717_v61 = vpop.f32.mrf.mxu1  ;;  %v2052_v24 = vsel %vm1973_vm4, %v2047_v57, %v2051_v43  ;;  %4094 = vperm.xlu0 %5697, %v4020_v10   ;;  %v2055_v57 = vor.u32 %v2054_v44, %v2053_v3  ;;  %v4023_v3 = vld [vmem:[%s6668_s18 + $0x48] sm:$0xff]  ;;  %v4024_v44 = vld [vmem:[%s6668_s18 + $0x50] sm:$0xff]  ;;  %v8167_v29 = vshll.u32 %v6762_v13, 16 }
  0xf2   : > { %v6719_v37 = vpop.f32.mrf.mxu0  ;;  %8163 = vst [vmem:[#allocation49_spill] sm:$0xff] %v6733_v2 }
  0xf3   : > { %v6726_v47 = vpop.f32.mrf.mxu1  ;;  %v2060_v10 = vsel %vm1973_vm4, %v2055_v57, %v2059_v56 }
  0xf4   : > { %v6728_v58 = vpop.f32.mrf.mxu0  ;;  %4099 = vperm.xlu1 %5698, %v4021_v40   ;;  %v2056_v40 = vsel %vm1973_vm4, %v2051_v43, %v2055_v57  ;;  %v8060_v57 = vshrl.u32 %v6762_v13, 16 }
  0xf5   : > { %v6735_v25 = vpop.f32.mrf.mxu1  ;;  %4104 = vperm.xlu0 %5697, %v4022_v5  }
  0xf6   : > { %v6737_v4 = vpop.f32.mrf.mxu0  ;;  %5417 = vmatmul.mubr.msk.bf16.gmra.mxu0 %vm710_vm2, %v2048_v27 }
  0xf7   : > { %5420 = vmatprep.mubr.msk.bf16.mxu0 %vm710_vm2, %v2052_v24  ;;  %v6743_v60 = vpop.f32.mrf.mxu1 }
  0xf8   : > { %5367 = vmatmul.mubr.msk.bf16.gmra.mxu1 %vm710_vm2, %v6502_v52  ;;  %v6747_v8 = vpop.f32.mrf.mxu0  ;;  %v2061_v52 = vrot.slane %v6311_v51, 1  ;;  %4109 = vperm.xlu1 %5698, %v4023_v3   ;;  %v4025_v3 = vld [vmem:[%s6668_s18 + $0x58] sm:$0xff] }
  0xf9   : > { %5370 = vmatprep.mubr.msk.bf16.mxu1 %vm710_vm2, %v6515_v48  ;;  %v6752_v27 = vpop.f32.mrf.mxu1  ;;  %4114 = vperm.xlu0 %5697, %v4024_v44  }
  0xfa   : > { %v6754_v24 = vpop.f32.mrf.mxu0  ;;  %v2063_v45 = vor.u32 %v2062_v31, %v2061_v52  ;;  %v4027_v31 = vld [vmem:[%s6668_s18 + $0x68] sm:$0xff] }
  0xfb   : > { %v6764_v5 = vpop.f32.mrf.mxu1 }
  0xfc   : > { %v6766_v48 = vpop.f32.mrf.mxu0  ;;  %4119 = vperm.xlu1 %5698, %v4025_v3   ;;  %v4028_v3 = vld [vmem:[%s6668_s18 + $0x70] sm:$0xff]  ;;  %v2064_v39 = vsel %vm1973_vm4, %v2059_v56, %v2063_v45  ;;  %v4029_v56 = vld [vmem:[%s6668_s18 + $0x78] sm:$0xff] }
  0xfd   : > { %v6772_v43 = vpop.f32.mrf.mxu1  ;;  %4124 = vperm.xlu0 %5697, %v4026_v0  }
  0xfe   : > { %v6774_v51 = vpop.f32.mrf.mxu0  ;;  %5421 = vmatmul.mubr.msk.bf16.gmra.mxu0 %vm710_vm2, %v2056_v40  ;;  %v2069_v40 = vor.u32 %v2068_v30, %v2067_v17  ;;  %v2077_v17 = vrot.slane %v8167_v29, 2 }
  0xff   : > { %5424 = vmatprep.mubr.msk.bf16.mxu0 %vm710_vm2, %v2060_v10  ;;  %v6782_v11 = vpop.f32.mrf.mxu1 }
 0x100   : > { %5371 = vmatmul.mubr.msk.bf16.gmra.mxu1 %vm710_vm2, %v6518_v12  ;;  %v6786_v44 = vpop.f32.mrf.mxu0  ;;  %v2074_v12 = vrot.slane %v8060_v57, 1  ;;  %4129 = vperm.xlu1 %5698, %v4027_v31   ;;  %v2070_v0 = vsel %vm1973_vm4, %v2063_v45, %v2069_v40  ;;  %v4030_v57 = vld [vmem:[%s6668_s18 + $0x80] sm:$0xff] }
 0x101   : > { %5374 = vmatprep.mubr.msk.bf16.mxu1 %vm710_vm2, %v6531_v1  ;;  %v6790_v10 = vpop.f32.mrf.mxu1  ;;  %4134 = vperm.xlu0 %5697, %v4028_v3   ;;  %v6821_v3 = vld [vmem:[%s5983_s28 + $0x10] sm:$0xff]  }
 0x102   : > { %v6792_v52 = vpop.f32.mrf.mxu0  ;;  %v2078_v29 = vor.u32 %v2077_v17, %v2074_v12  ;;  %8170 = vst [vmem:[#allocation52_spill] sm:$0xff] %v6821_v3  ;;  %v1690_v12 = vrot.slane %v6762_v13, 1 }
 0x103   : > { %v6801_v30 = vpop.f32.mrf.mxu1 }
 0x104   : > { %v6803_v1 = vpop.f32.mrf.mxu0  ;;  %4139 = vperm.xlu1 %5698, %v4029_v56   ;;  %v5728_v56 = vld [vmem:[%s5983_s28 + $0x8] sm:$0xff]   ;;  %v2079_v22 = vsel %vm1973_vm4, %v2069_v40, %v2078_v29  ;;  %v1691_v2 = vsel %vm1290_vm3, %v8174_v41, %v1690_v12  ;;  %v4033_v40 = vld [vmem:[%s6668_s18 + $0x98] sm:$0xff]  ;;  %v4034_v29 = vld [vmem:[%s6668_s18 + $0xa0] sm:$0xff] }
 0x105   : > { %v6806_v46 = vpop.f32.mrf.mxu1  ;;  %4144 = vperm.xlu0 %5697, %v4030_v57   ;;  %v2431_v6 = vrot.slane %v5728_v56, 2 }
 0x106   : > { %8168 = vst [vmem:[#allocation50_spill] sm:$0xff] %v6806_v46  ;;  %v6808_v55 = vpop.f32.mrf.mxu0  ;;  %5425 = vmatmul.mubr.msk.bf16.gmra.mxu0 %vm710_vm2, %v2064_v39  ;;  %v2432_v39 = vrot.slane %v6821_v3, 2  ;;  %v4040_v46 = vld [vmem:[%s6668_s18 + $0xd0] sm:$0xff] }
 0x107   : > { %5428 = vmatprep.mubr.msk.bf16.mxu0 %vm710_vm2, %v2070_v0  ;;  %v6814_v31 = vpop.f32.mrf.mxu1  ;;  %v2434_v0 = vrot.slane %v6825_v53, 2 }
 0x108   : > { %8169 = vst [vmem:[#allocation51_spill] sm:$0xff] %v6814_v31  ;;  %5375 = vmatmul.mubr.msk.bf16.gmra.mxu1 %vm710_vm2, %v6534_v26  ;;  %v6818_v45 = vpop.f32.mrf.mxu0  ;;  %4149 = vperm.xlu1 %5698, %v4031_v54   ;;  %v2433_v54 = vsel %vm2430_vm5, %v2431_v6, %v2432_v39 }
 0x109   : > { %5378 = vmatprep.mubr.msk.bf16.mxu1 %vm710_vm2, %v6550_v20  ;;  %v6831_v17 = vpop.f32.mrf.mxu1  ;;  %v2435_v15 = vsel %vm2430_vm5, %v2432_v39, %v2434_v0  ;;  %4154 = vperm.xlu0 %5697, %v4032_v49   ;;  %v2436_v49 = vrot.slane %v6857_v14, 2  ;;  %v4035_v14 = vld [vmem:[%s6668_s18 + $0xa8] sm:$0xff] }
 0x10a   : > { %8172 = vst [vmem:[#allocation54_spill] sm:$0xff] %v6831_v17  ;;  %v6833_v26 = vpop.f32.mrf.mxu0 }
 0x10b   : > { %v6839_v57 = vpop.f32.mrf.mxu1 }
 0x10c   : > { %8173 = vst [vmem:[#allocation55_spill] sm:$0xff] %v6839_v57  ;;  %v6841_v20 = vpop.f32.mrf.mxu0  ;;  %4159 = vperm.xlu1 %5698, %v4033_v40   ;;  %v4036_v40 = vld [vmem:[%s6668_s18 + $0xb0] sm:$0xff]  ;;  %v4038_v57 = vld [vmem:[%s6668_s18 + $0xc0] sm:$0xff] }
 0x10d   : > { %v6847_v59 = vpop.f32.mrf.mxu1  ;;  %4164 = vperm.xlu0 %5697, %v4034_v29   ;;  %v3691_v29 = vsel %vm783_vm0, %v6577_v34, 0 }
 0x10e   : > { %8175 = vst [vmem:[#allocation56_spill] sm:$0xff] %v6847_v59  ;;  %v6849_v56 = vpop.f32.mrf.mxu0  ;;  %5429 = vmatmul.mubr.msk.bf16.gmra.mxu0 %vm710_vm2, %v2079_v22  ;;  %v6866_v22 = vld [vmem:[%s5983_s28 + $0x28] sm:$0xff]  }
 0x10f   : > { %5484 = vmatprep.mubr.msk.bf16.mxu0 %vm710_vm2, %v2435_v15  ;;  %v6860_v41 = vpop.f32.mrf.mxu1  ;;  %8178 = vst [vmem:[#allocation59_spill] sm:$0xff] %v6866_v22  ;;  %v2438_v6 = vrot.slane %v6866_v22, 2 }
 0x110   : > { %8177 = vst [vmem:[#allocation58_spill] sm:$0xff] %v6860_v41  ;;  %5379 = vmatmul.mubr.msk.bf16.gmra.mxu1 %vm710_vm2, %v1691_v2  ;;  %v6863_v12 = vpop.f32.mrf.mxu0  ;;  %v2437_v41 = vsel %vm2430_vm5, %v2434_v0, %v2436_v49  ;;  %4169 = vperm.xlu1 %5698, %v4035_v14   ;;  %v3291_v0 = vsel %vm783_vm0, %v6586_v21, 0  ;;  %v4037_v14 = vld [vmem:[%s6668_s18 + $0xb8] sm:$0xff] }
 0x111   : > { %5434 = vmatprep.mubr.msk.bf16.mxu1 %vm710_vm2, %v2433_v54  ;;  %v6870_v39 = vpop.f32.mrf.mxu1  ;;  %v2439_v54 = vsel %vm2430_vm5, %v2436_v49, %v2438_v6  ;;  %4174 = vperm.xlu0 %5697, %v4036_v40  }
 0x112   : > { %8179 = vst [vmem:[#allocation60_spill] sm:$0xff] %v6870_v39  ;;  %v6872_v19 = vpop.f32.mrf.mxu0 }
 0x113   : > { %v6877_v2 = vpop.f32.mrf.mxu1 }
 0x114   : > { %8180 = vst [vmem:[#allocation61_spill] sm:$0xff] %v6877_v2  ;;  %v6879_v59 = vpop.f32.mrf.mxu0  ;;  %v6892_v2 = vld [vmem:[%s5983_s28 + $0x30] sm:$0xff]   ;;  %4179 = vperm.xlu1 %5698, %v4037_v14  }
 0x115   : > { %v6884_v39 = vpop.f32.mrf.mxu1  ;;  %8182 = vst [vmem:[#allocation63_spill] sm:$0xff] %v6892_v2  ;;  %v2440_v34 = vrot.slane %v6892_v2, 2  ;;  %4184 = vperm.xlu0 %5697, %v4038_v57   ;;  %v4039_v2 = vld [vmem:[%s6668_s18 + $0xc8] sm:$0xff] }
 0x116   : > { %8181 = vst [vmem:[#allocation62_spill] sm:$0xff] %v6884_v39  ;;  %v5286_v22 = vpop.f32.mrf.mxu0  ;;  %5485 = vmatmul.mubr.msk.bf16.vlgmr.msra.gmra.mxu0 %vm710_vm2, %v2437_v41  ;;  %v6898_v39 = vld [vmem:[%s5983_s28 + $0x38] sm:$0xff]  }
 0x117   : > { %5583 = vmatpush3.bf16.msra.mxu0 %v3691_v29  ;;  %5488 = vmatprep.mubr.msk.bf16.mxu0 %vm710_vm2, %v2439_v54  ;;  %8183 = vst [vmem:[#allocation64_spill] sm:$0xff] %v6898_v39  ;;  %v2442_v17 = vrot.slane %v6898_v39, 2  ;;  %v2441_v3 = vsel %vm2430_vm5, %v2438_v6, %v2440_v34 }
 0x118   : > { %v5236_v49 = vpop.f32.mrf.mxu1  ;;  %5435 = vmatmul.mubr.msk.bf16.vlgmr.msra.gmra.mxu1 %vm710_vm2, %v2435_v15  ;;  %v1449_v40 = vpop.f32.mrf.mxu0  ;;  %4189 = vperm.xlu1 %5698, %v4039_v2  }
 0x119   : > { %v1106_v21 = vadd.f32 %v5236_v49, %v6670_v50  ;;  %5533 = vmatpush3.bf16.msra.mxu1 %v3291_v0  ;;  %5438 = vmatprep.mubr.msk.bf16.mxu1 %vm710_vm2, %v2437_v41  ;;  %v2443_v50 = vsel %vm2430_vm5, %v2440_v34, %v2442_v17  ;;  %v6920_v34 = vld [vmem:[%s5983_s28 + $0x40] sm:$0xff]  }
 0x11a   : > { %v1097_v29 = vpop.f32.mrf.mxu1  ;;  %v5287_v31 = vpop.f32.mrf.mxu0  ;;  %4194 = vperm.xlu0 %5697, %v4040_v46   ;;  %8184 = vst [vmem:[#allocation65_spill] sm:$0xff] %v6920_v34  ;;  %v2444_v2 = vrot.slane %v6920_v34, 2 }
 0x11b   : > { %v6904_v53 = vadd.f32 %v5286_v22, %v1106_v21  ;;  %v1098_v15 = vadd.f32 %v1097_v29, %v6679_v36  ;;  %v4041_v36 = vld [vmem:[%s6668_s18 + $0xd8] sm:$0xff] }
 0x11c   : > { %v5237_v39 = vpop.f32.mrf.mxu1  ;;  %v1452_v14 = vpop.f32.mrf.mxu0  ;;  %4199 = vperm.xlu1 %5698, %v4041_v36   ;;  %v2445_v34 = vsel %vm2430_vm5, %v2442_v17, %v2444_v2 }
 0x11d   : > { %v6910_v41 = vadd.f32 %v1449_v40, %v1098_v15  ;;  %v1109_v57 = vadd.f32 %v5237_v39, %v6685_v33  ;;  %v4042_v40 = vld [vmem:[%s6668_s18 + $0xe0] sm:$0xff]  ;;  %v6926_v39 = vld [vmem:[%s5983_s28 + $0x48] sm:$0xff]  }
 0x11e   : > { %v1100_v0 = vpop.f32.mrf.mxu1  ;;  %v5290_v22 = vpop.f32.mrf.mxu0  ;;  %5489 = vmatmul.mubr.msk.bf16.gmra.mxu0 %vm710_vm2, %v2441_v3  ;;  %8185 = vst [vmem:[#allocation66_spill] sm:$0xff] %v6926_v39  ;;  %v2446_v46 = vrot.slane %v6926_v39, 2  ;;  %4204 = vperm.xlu0 %5697, %v4042_v40   ;;  %v4044_v39 = vld [vmem:[%s6668_s18 + $0xf0] sm:$0xff] }
 0x11f   : > { %v6915_v6 = vadd.f32 %v5287_v31, %v1109_v57  ;;  %v1101_v49 = vadd.f32 %v1100_v0, %v6694_v63  ;;  %5492 = vmatprep.mubr.msk.bf16.mxu0 %vm710_vm2, %v2443_v50  ;;  %v4043_v57 = vld [vmem:[%s6668_s18 + $0xe8] sm:$0xff] }
 0x120   : > { %v5240_v21 = vpop.f32.mrf.mxu1  ;;  %5439 = vmatmul.mubr.msk.bf16.gmra.mxu1 %vm710_vm2, %v2439_v54  ;;  %v1465_v33 = vpop.f32.mrf.mxu0  ;;  %4209 = vperm.xlu1 %5698, %v4043_v57   ;;  %v6956_v57 = vld [vmem:[%s5983_s28 + $0x58] sm:$0xff]  }
 0x121   : > { %v6929_v31 = vadd.f32 %v1452_v14, %v1101_v49  ;;  %v1122_v63 = vadd.f32 %v5240_v21, %v6701_v9  ;;  %5442 = vmatprep.mubr.msk.bf16.mxu1 %vm710_vm2, %v2441_v3  ;;  %v2447_v9 = vsel %vm2430_vm5, %v2444_v2, %v2446_v46  ;;  %v6950_v2 = vld [vmem:[%s5983_s28 + $0x50] sm:$0xff]   ;;  %8187 = vst [vmem:[#allocation68_spill] sm:$0xff] %v6956_v57 }
 0x122   : > { %v1113_v29 = vpop.f32.mrf.mxu1  ;;  %v5291_v15 = vpop.f32.mrf.mxu0  ;;  %4214 = vperm.xlu0 %5697, %v4044_v39   ;;  %8186 = vst [vmem:[#allocation67_spill] sm:$0xff] %v6950_v2  ;;  %v2450_v39 = vrot.slane %v6956_v57, 2  ;;  %v4048_v57 = vld [vmem:[%s6668_s18 + $0x110] sm:$0xff] }
 0x123   : > { %v6934_v0 = vadd.f32 %v5290_v22, %v1122_v63  ;;  %v1114_v54 = vadd.f32 %v1113_v29, %v6711_v62  ;;  %v4045_v62 = vld [vmem:[%s6668_s18 + $0xf8] sm:$0xff]  ;;  %v4046_v63 = vld [vmem:[%s6668_s18 + $0x100] sm:$0xff] }
 0x124   : > { %v5241_v36 = vpop.f32.mrf.mxu1  ;;  %v1468_v14 = vpop.f32.mrf.mxu0  ;;  %4219 = vperm.xlu1 %5698, %v4045_v62  }
 0x125   : > { %v6940_v3 = vadd.f32 %v1465_v33, %v1114_v54  ;;  %v1125_v49 = vadd.f32 %v5241_v36, %v6719_v37  ;;  %v2448_v33 = vrot.slane %v6950_v2, 2 }
 0x126   : > { %v1116_v40 = vpop.f32.mrf.mxu1  ;;  %v5294_v22 = vpop.f32.mrf.mxu0  ;;  %5493 = vmatmul.mubr.msk.bf16.gmra.mxu0 %vm710_vm2, %v2445_v34  ;;  %4224 = vperm.xlu0 %5697, %v4046_v63  }
 0x127   : > { %v6945_v17 = vadd.f32 %v5291_v15, %v1125_v49  ;;  %v1117_v21 = vadd.f32 %v1116_v40, %v6728_v58  ;;  %5496 = vmatprep.mubr.msk.bf16.mxu0 %vm710_vm2, %v2447_v9  ;;  %v4047_v49 = vld [vmem:[%s6668_s18 + $0x108] sm:$0xff]  ;;  %v2449_v2 = vsel %vm2430_vm5, %v2446_v46, %v2448_v33 }
 0x128   : > { %v5244_v29 = vpop.f32.mrf.mxu1  ;;  %5443 = vmatmul.mubr.msk.bf16.gmra.mxu1 %vm710_vm2, %v2443_v50  ;;  %v1481_v37 = vpop.f32.mrf.mxu0  ;;  %4229 = vperm.xlu1 %5698, %v4047_v49   ;;  %v6986_v49 = vld [vmem:[%s5983_s28 + $0x68] sm:$0xff]  }
 0x129   : > { %v6959_v15 = vadd.f32 %v1468_v14, %v1117_v21  ;;  %v1138_v58 = vadd.f32 %v5244_v29, %v6737_v4  ;;  %5446 = vmatprep.mubr.msk.bf16.mxu1 %vm710_vm2, %v2445_v34  ;;  %v2451_v4 = vsel %vm2430_vm5, %v2448_v33, %v2450_v39  ;;  %v6980_v33 = vld [vmem:[%s5983_s28 + $0x60] sm:$0xff]   ;;  %8189 = vst [vmem:[#allocation70_spill] sm:$0xff] %v6986_v49 }
 0x12a   : > { %v1129_v54 = vpop.f32.mrf.mxu1  ;;  %v5295_v36 = vpop.f32.mrf.mxu0  ;;  %4234 = vperm.xlu0 %5697, %v4048_v57   ;;  %8188 = vst [vmem:[#allocation69_spill] sm:$0xff] %v6980_v33  ;;  %v2454_v57 = vrot.slane %v6986_v49, 2  ;;  %v4052_v49 = vld [vmem:[%s6668_s18 + $0x130] sm:$0xff] }
 0x12b   : > { %v6964_v40 = vadd.f32 %v5294_v22, %v1138_v58  ;;  %v1130_v50 = vadd.f32 %v1129_v54, %v6747_v8  ;;  %v4049_v8 = vld [vmem:[%s6668_s18 + $0x118] sm:$0xff]  ;;  %v4050_v58 = vld [vmem:[%s6668_s18 + $0x120] sm:$0xff] }
 0x12c   : > { %v5245_v62 = vpop.f32.mrf.mxu1  ;;  %v1484_v14 = vpop.f32.mrf.mxu0  ;;  %4239 = vperm.xlu1 %5698, %v4049_v8  }
 0x12d   : > { %v6970_v34 = vadd.f32 %v1481_v37, %v1130_v50  ;;  %v1141_v21 = vadd.f32 %v5245_v62, %v6754_v24  ;;  %v2452_v37 = vrot.slane %v6980_v33, 2 }
 0x12e   : > { %v1132_v63 = vpop.f32.mrf.mxu1  ;;  %v5298_v22 = vpop.f32.mrf.mxu0  ;;  %5497 = vmatmul.mubr.msk.bf16.gmra.mxu0 %vm710_vm2, %v2449_v2  ;;  %4244 = vperm.xlu0 %5697, %v4050_v58  }
 0x12f   : > { %v6975_v46 = vadd.f32 %v5295_v36, %v1141_v21  ;;  %v1133_v29 = vadd.f32 %v1132_v63, %v6766_v48  ;;  %5500 = vmatprep.mubr.msk.bf16.mxu0 %vm710_vm2, %v2451_v4  ;;  %v4051_v21 = vld [vmem:[%s6668_s18 + $0x128] sm:$0xff]  ;;  %v2453_v33 = vsel %vm2430_vm5, %v2450_v39, %v2452_v37 }
 0x130   : > { %v5248_v54 = vpop.f32.mrf.mxu1  ;;  %5447 = vmatmul.mubr.msk.bf16.gmra.mxu1 %vm710_vm2, %v2447_v9  ;;  %v1497_v24 = vpop.f32.mrf.mxu0  ;;  %4249 = vperm.xlu1 %5698, %v4051_v21   ;;  %v7016_v21 = vld [vmem:[%s5983_s28 + $0x78] sm:$0xff]  }
 0x131   : > { %v6989_v36 = vadd.f32 %v1484_v14, %v1133_v29  ;;  %v1154_v48 = vadd.f32 %v5248_v54, %v6774_v51  ;;  %5450 = vmatprep.mubr.msk.bf16.mxu1 %vm710_vm2, %v2449_v2  ;;  %v2455_v51 = vsel %vm2430_vm5, %v2452_v37, %v2454_v57  ;;  %v7010_v37 = vld [vmem:[%s5983_s28 + $0x70] sm:$0xff]   ;;  %8191 = vst [vmem:[#allocation72_spill] sm:$0xff] %v7016_v21 }
 0x132   : > { %v1145_v50 = vpop.f32.mrf.mxu1  ;;  %v5299_v62 = vpop.f32.mrf.mxu0  ;;  %4254 = vperm.xlu0 %5697, %v4052_v49   ;;  %8190 = vst [vmem:[#allocation71_spill] sm:$0xff] %v7010_v37  ;;  %v2458_v49 = vrot.slane %v7016_v21, 2  ;;  %v4056_v21 = vld [vmem:[%s6668_s18 + $0x150] sm:$0xff] }
 0x133   : > { %v6994_v63 = vadd.f32 %v5298_v22, %v1154_v48  ;;  %v1146_v9 = vadd.f32 %v1145_v50, %v6786_v44  ;;  %v4053_v44 = vld [vmem:[%s6668_s18 + $0x138] sm:$0xff]  ;;  %v4054_v48 = vld [vmem:[%s6668_s18 + $0x140] sm:$0xff] }
 0x134   : > { %v5249_v8 = vpop.f32.mrf.mxu1  ;;  %v1500_v14 = vpop.f32.mrf.mxu0  ;;  %4259 = vperm.xlu1 %5698, %v4053_v44  }
 0x135   : > { %v7000_v2 = vadd.f32 %v1497_v24, %v1146_v9  ;;  %v1157_v29 = vadd.f32 %v5249_v8, %v6792_v52  ;;  %v2456_v24 = vrot.slane %v7010_v37, 2 }
 0x136   : > { %v1148_v58 = vpop.f32.mrf.mxu1  ;;  %v5302_v22 = vpop.f32.mrf.mxu0  ;;  %5501 = vmatmul.mubr.msk.bf16.gmra.mxu0 %vm710_vm2, %v2453_v33  ;;  %4264 = vperm.xlu0 %5697, %v4054_v48  }
 0x137   : > { %v7005_v39 = vadd.f32 %v5299_v62, %v1157_v29  ;;  %v1149_v54 = vadd.f32 %v1148_v58, %v6803_v1  ;;  %5504 = vmatprep.mubr.msk.bf16.mxu0 %vm710_vm2, %v2455_v51  ;;  %v4055_v29 = vld [vmem:[%s6668_s18 + $0x148] sm:$0xff]  ;;  %v2457_v37 = vsel %vm2430_vm5, %v2454_v57, %v2456_v24 }
 0x138   : > { %v5252_v50 = vpop.f32.mrf.mxu1  ;;  %5451 = vmatmul.mubr.msk.bf16.gmra.mxu1 %vm710_vm2, %v2451_v4  ;;  %v1513_v52 = vpop.f32.mrf.mxu0  ;;  %4269 = vperm.xlu1 %5698, %v4055_v29   ;;  %v7046_v29 = vld [vmem:[%s5983_s28 + $0x88] sm:$0xff]  }
 0x139   : > { %v7019_v62 = vadd.f32 %v1500_v14, %v1149_v54  ;;  %v1170_v1 = vadd.f32 %v5252_v50, %v6808_v55  ;;  %5454 = vmatprep.mubr.msk.bf16.mxu1 %vm710_vm2, %v2453_v33  ;;  %v2459_v55 = vsel %vm2430_vm5, %v2456_v24, %v2458_v49  ;;  %v7040_v24 = vld [vmem:[%s5983_s28 + $0x80] sm:$0xff]   ;;  %8193 = vst [vmem:[#allocation74_spill] sm:$0xff] %v7046_v29 }
 0x13a   : > { %v1161_v9 = vpop.f32.mrf.mxu1  ;;  %v5303_v8 = vpop.f32.mrf.mxu0  ;;  %4274 = vperm.xlu0 %5697, %v4056_v21   ;;  %8192 = vst [vmem:[#allocation73_spill] sm:$0xff] %v7040_v24  ;;  %v2462_v21 = vrot.slane %v7046_v29, 2  ;;  %v4060_v29 = vld [vmem:[%s6668_s18 + $0x170] sm:$0xff] }
 0x13b   : > { %v7024_v58 = vadd.f32 %v5302_v22, %v1170_v1  ;;  %v1162_v4 = vadd.f32 %v1161_v9, %v6818_v45  ;;  %v4057_v45 = vld [vmem:[%s6668_s18 + $0x158] sm:$0xff]  ;;  %v4058_v1 = vld [vmem:[%s6668_s18 + $0x160] sm:$0xff] }
 0x13c   : > { %v5253_v44 = vpop.f32.mrf.mxu1  ;;  %v1516_v14 = vpop.f32.mrf.mxu0  ;;  %4279 = vperm.xlu1 %5698, %v4057_v45  }
 0x13d   : > { %v7030_v33 = vadd.f32 %v1513_v52, %v1162_v4  ;;  %v1173_v54 = vadd.f32 %v5253_v44, %v6833_v26  ;;  %v2460_v52 = vrot.slane %v7040_v24, 2 }
 0x13e   : > { %v1164_v48 = vpop.f32.mrf.mxu1  ;;  %v5306_v22 = vpop.f32.mrf.mxu0  ;;  %5505 = vmatmul.mubr.msk.bf16.gmra.mxu0 %vm710_vm2, %v2457_v37  ;;  %4284 = vperm.xlu0 %5697, %v4058_v1  }
 0x13f   : > { %v7035_v57 = vadd.f32 %v5303_v8, %v1173_v54  ;;  %v1165_v50 = vadd.f32 %v1164_v48, %v6841_v20  ;;  %5508 = vmatprep.mubr.msk.bf16.mxu0 %vm710_vm2, %v2459_v55  ;;  %v4059_v54 = vld [vmem:[%s6668_s18 + $0x168] sm:$0xff]  ;;  %v2461_v24 = vsel %vm2430_vm5, %v2458_v49, %v2460_v52 }
 0x140   : > { %v5256_v9 = vpop.f32.mrf.mxu1  ;;  %5455 = vmatmul.mubr.msk.bf16.gmra.mxu1 %vm710_vm2, %v2455_v51  ;;  %v1529_v26 = vpop.f32.mrf.mxu0  ;;  %4289 = vperm.xlu1 %5698, %v4059_v54  }
 0x141   : > { %v7049_v8 = vadd.f32 %v1516_v14, %v1165_v50  ;;  %v1186_v20 = vadd.f32 %v5256_v9, %v6849_v56  ;;  %5458 = vmatprep.mubr.msk.bf16.mxu1 %vm710_vm2, %v2457_v37  ;;  %v2463_v50 = vsel %vm2430_vm5, %v2460_v52, %v2462_v21 }
 0x142   : > { %v1177_v4 = vpop.f32.mrf.mxu1  ;;  %v5307_v44 = vpop.f32.mrf.mxu0  ;;  %4294 = vperm.xlu0 %5697, %v4060_v29  }
 0x143   : > { %v7054_v48 = vadd.f32 %v5306_v22, %v1186_v20  ;;  %v1178_v51 = vadd.f32 %v1177_v4, %v6863_v12  ;;  %v4061_v12 = vld [vmem:[%s6668_s18 + $0x178] sm:$0xff]  ;;  %v7070_v20 = vld [vmem:[%s5983_s28 + $0x90] sm:$0xff]  }
 0x144   : > { %v5257_v45 = vpop.f32.mrf.mxu1  ;;  %v1532_v14 = vpop.f32.mrf.mxu0  ;;  %8194 = vst [vmem:[#allocation75_spill] sm:$0xff] %v7070_v20  ;;  %v2464_v52 = vrot.slane %v7070_v20, 2  ;;  %v7075_v4 = vld [vmem:[%s5983_s28 + $0x98] sm:$0xff]   ;;  %4299 = vperm.xlu1 %5698, %v4061_v12  }
 0x145   : > { %v7060_v56 = vadd.f32 %v1529_v26, %v1178_v51  ;;  %v1189_v37 = vadd.f32 %v5257_v45, %v6872_v19  ;;  %v2466_v54 = vrot.slane %v7075_v4, 2 }
 0x146   : > { %v1180_v1 = vpop.f32.mrf.mxu1  ;;  %v5310_v9 = vpop.f32.mrf.mxu0  ;;  %5509 = vmatmul.mubr.msk.bf16.gmra.mxu0 %vm710_vm2, %v2461_v24 }
 0x147   : > { %v7065_v22 = vadd.f32 %v5307_v44, %v1189_v37  ;;  %v1181_v49 = vadd.f32 %v1180_v1, %v6879_v59  ;;  %5512 = vmatprep.mubr.msk.bf16.mxu0 %vm710_vm2, %v2463_v50  ;;  %v2467_v12 = vsel %vm2430_vm5, %v2464_v52, %v2466_v54 }
 0x148   : > { %v5260_v26 = vpop.f32.mrf.mxu1  ;;  %5459 = vmatmul.mubr.msk.bf16.gmra.mxu1 %vm710_vm2, %v2459_v55  ;;  %v1545_v19 = vpop.f32.mrf.mxu0  ;;  %v2465_v55 = vsel %vm2430_vm5, %v2462_v21, %v2464_v52 }
 0x149   : > { %v7078_v29 = vadd.f32 %v1532_v14, %v1181_v49  ;;  %v1202_v44 = vadd.f32 %v5260_v26, %v6675_v7  ;;  %5462 = vmatprep.mubr.msk.bf16.mxu1 %vm710_vm2, %v2461_v24 }
 0x14a   : > { %v1193_v59 = vpop.f32.mrf.mxu1  ;;  %v5311_v51 = vpop.f32.mrf.mxu0 }
 0x14b   : > { %v7082_v45 = vadd.f32 %v5310_v9, %v1202_v44  ;;  %v1194_v37 = vadd.f32 %v1193_v59, %v6683_v38  ;;  %v7096_v38 = vld [vmem:[%s5983_s28 + $0xa0] sm:$0xff]  }
 0x14c   : > { %v5261_v1 = vpop.f32.mrf.mxu1  ;;  %v1548_v20 = vpop.f32.mrf.mxu0  ;;  %8195 = vst [vmem:[#allocation76_spill] sm:$0xff] %v7096_v38  ;;  %v2468_v21 = vrot.slane %v7096_v38, 2 }
 0x14d   : > { %v7087_v14 = vadd.f32 %v1545_v19, %v1194_v37  ;;  %v1205_v7 = vadd.f32 %v5261_v1, %v6692_v18  ;;  %v7101_v19 = vld [vmem:[%s5983_s28 + $0xa8] sm:$0xff]  }
 0x14e   : > { %v1196_v49 = vpop.f32.mrf.mxu1  ;;  %v5314_v24 = vpop.f32.mrf.mxu0  ;;  %5513 = vmatmul.mubr.msk.bf16.gmra.mxu0 %vm710_vm2, %v2465_v55  ;;  %8196 = vst [vmem:[#allocation77_spill] sm:$0xff] %v7101_v19  ;;  %v2470_v18 = vrot.slane %v7101_v19, 2 }
 0x14f   : > { %v7091_v26 = vadd.f32 %v5311_v51, %v1205_v7  ;;  %v1197_v9 = vadd.f32 %v1196_v49, %v6699_v32  ;;  %5516 = vmatprep.mubr.msk.bf16.mxu0 %vm710_vm2, %v2467_v12 }
 0x150   : > { %v5264_v44 = vpop.f32.mrf.mxu1  ;;  %5463 = vmatmul.mubr.msk.bf16.gmra.mxu1 %vm710_vm2, %v2463_v50  ;;  %v1561_v52 = vpop.f32.mrf.mxu0  ;;  %v2469_v50 = vsel %vm2430_vm5, %v2466_v54, %v2468_v21  ;;  %v2471_v19 = vsel %vm2430_vm5, %v2468_v21, %v2470_v18 }
 0x151   : > { %v7104_v59 = vadd.f32 %v1548_v20, %v1197_v9  ;;  %v1218_v51 = vadd.f32 %v5264_v44, %v6707_v16  ;;  %5466 = vmatprep.mubr.msk.bf16.mxu1 %vm710_vm2, %v2465_v55 }
 0x152   : > { %v1209_v32 = vpop.f32.mrf.mxu1  ;;  %v5315_v37 = vpop.f32.mrf.mxu0 }
 0x153   : > { %v7108_v1 = vadd.f32 %v5314_v24, %v1218_v51  ;;  %v1210_v7 = vadd.f32 %v1209_v32, %v6717_v61  ;;  %v7122_v61 = vld [vmem:[%s5983_s28 + $0xb0] sm:$0xff]  }
 0x154   : > { %v5265_v49 = vpop.f32.mrf.mxu1  ;;  %v1564_v38 = vpop.f32.mrf.mxu0  ;;  %8198 = vst [vmem:[#allocation79_spill] sm:$0xff] %v7122_v61  ;;  %v2472_v54 = vrot.slane %v7122_v61, 2 }
 0x155   : > { %v7113_v20 = vadd.f32 %v1561_v52, %v1210_v7  ;;  %v1221_v16 = vadd.f32 %v5265_v49, %v6726_v47  ;;  %v7127_v52 = vld [vmem:[%s5983_s28 + $0xb8] sm:$0xff]   ;;  %s5644_s28 = smul.u32 384, %s7684_s11 }
 0x156   : > { %v1212_v9 = vpop.f32.mrf.mxu1  ;;  %v5318_v55 = vpop.f32.mrf.mxu0  ;;  %5517 = vmatmul.mubr.msk.bf16.gmra.mxu0 %vm710_vm2, %v2469_v50  ;;  %8199 = vst [vmem:[#allocation80_spill] sm:$0xff] %v7127_v52  ;;  %v2474_v47 = vrot.slane %v7127_v52, 2 }
 0x157   : > { %v7117_v44 = vadd.f32 %v5315_v37, %v1221_v16  ;;  %v1213_v24 = vadd.f32 %v1212_v9, %v6735_v25  ;;  %5520 = vmatprep.mubr.msk.bf16.mxu0 %vm710_vm2, %v2471_v19 }
 0x158   : > { %v5268_v51 = vpop.f32.mrf.mxu1  ;;  %5467 = vmatmul.mubr.msk.bf16.gmra.mxu1 %vm710_vm2, %v2467_v12  ;;  %v1577_v21 = vpop.f32.mrf.mxu0  ;;  %v2473_v12 = vsel %vm2430_vm5, %v2470_v18, %v2472_v54 }
 0x159   : > { %8197 = vst [vmem:[#allocation78_spill] sm:$0xff] %v7117_v44  ;;  %v7130_v32 = vadd.f32 %v1564_v38, %v1213_v24  ;;  %v1234_v37 = vadd.f32 %v5268_v51, %v6743_v60  ;;  %5470 = vmatprep.mubr.msk.bf16.mxu1 %vm710_vm2, %v2469_v50  ;;  %v2475_v44 = vsel %vm2430_vm5, %v2472_v54, %v2474_v47 }
 0x15a   : > { %v1225_v25 = vpop.f32.mrf.mxu1  ;;  %v5319_v7 = vpop.f32.mrf.mxu0 }
 0x15b   : > { %v7134_v49 = vadd.f32 %v5318_v55, %v1234_v37  ;;  %v1226_v16 = vadd.f32 %v1225_v25, %v6752_v27  ;;  %v7148_v27 = vld [vmem:[%s6257_s17] sm:$0xff]  }
 0x15c   : > { %v5269_v9 = vpop.f32.mrf.mxu1  ;;  %v1580_v61 = vpop.f32.mrf.mxu0  ;;  %8200 = vst [vmem:[#allocation81_spill] sm:$0xff] %v7148_v27  ;;  %v2476_v18 = vrot.slane %v7148_v27, 2 }
 0x15d   : > { %v7139_v52 = vadd.f32 %v1577_v21, %v1226_v16  ;;  %v1237_v38 = vadd.f32 %v5269_v9, %v6764_v5  ;;  %v2478_v5 = vrot.slane %v6762_v13, 2 }
 0x15e   : > { %v1228_v60 = vpop.f32.mrf.mxu1  ;;  %v5322_v24 = vpop.f32.mrf.mxu0  ;;  %5521 = vmatmul.mubr.msk.bf16.gmra.mxu0 %vm710_vm2, %v2473_v12  ;;  %v2477_v9 = vsel %vm2430_vm5, %v2474_v47, %v2476_v18  ;;  %v3117_v47 = vrot.slane %v6070_v42, 2  ;;  %v8210_v42 = vld [vmem:[#allocation51_spill] sm:$0xff] }
 0x15f   : > { %v7143_v50 = vadd.f32 %v5319_v7, %v1237_v38  ;;  %v1229_v55 = vadd.f32 %v1228_v60, %v6772_v43  ;;  %5524 = vmatprep.mubr.msk.bf16.mxu0 %vm710_vm2, %v2475_v44  ;;  %v7162_v38 = vld [vmem:[%s6257_s17 + $0x10] sm:$0xff]   ;;  %v2479_v27 = vsel %vm2430_vm5, %v2476_v18, %v2478_v5 }
 0x160   : > { %v5272_v54 = vpop.f32.mrf.mxu1  ;;  %5471 = vmatmul.mubr.msk.bf16.gmra.mxu1 %vm710_vm2, %v2471_v19  ;;  %v1593_v51 = vpop.f32.mrf.mxu0  ;;  %8203 = vst [vmem:[#allocation84_spill] sm:$0xff] %v7162_v38 }
 0x161   : > { %v7153_v21 = vadd.f32 %v1580_v61, %v1229_v55  ;;  %v1250_v37 = vadd.f32 %v5272_v54, %v6782_v11  ;;  %5474 = vmatprep.mubr.msk.bf16.mxu1 %vm710_vm2, %v2473_v12  ;;  %v3118_v54 = vrot.slane %v6055_v35, 3 }
 0x162   : > { %v1241_v43 = vpop.f32.mrf.mxu1  ;;  %v5323_v25 = vpop.f32.mrf.mxu0 }
 0x163   : > { %8201 = vst [vmem:[#allocation82_spill] sm:$0xff] %v7153_v21  ;;  %v7157_v7 = vadd.f32 %v5322_v24, %v1250_v37  ;;  %v1242_v16 = vadd.f32 %v1241_v43, %v6790_v10  ;;  %v3114_v24 = vrot.slane %v6037_v28, 2  ;;  %v3115_v10 = vrot.slane %v6026_v23, 3  ;;  %v8206_v43 = vld [vmem:[#allocation50_spill] sm:$0xff] }
 0x164   : > { %v5273_v19 = vpop.f32.mrf.mxu1  ;;  %v1596_v60 = vpop.f32.mrf.mxu0 }
 0x165   : > { %8202 = vst [vmem:[#allocation83_spill] sm:$0xff] %v7157_v7  ;;  %v7165_v61 = vadd.f32 %v1593_v51, %v1242_v16  ;;  %v1253_v11 = vadd.f32 %v5273_v19, %v6801_v30  ;;  %v2830_v30 = vrot.slane %v7162_v38, 2  ;;  %v8207_v19 = vld [vmem:[#allocation52_spill] sm:$0xff]  ;;  %v8211_v38 = vld [vmem:[#allocation54_spill] sm:$0xff] }
 0x166   : > { %v1244_v55 = vpop.f32.mrf.mxu1  ;;  %v5326_v12 = vpop.f32.mrf.mxu0  ;;  %5525 = vmatmul.mubr.msk.bf16.gmra.mxu0 %vm710_vm2, %v2477_v9  ;;  %v3569_v28 = vrot.slane %v8207_v19, 3 }
 0x167   : > { %8204 = vst [vmem:[#allocation85_spill] sm:$0xff] %v7165_v61  ;;  %v7173_v37 = vadd.f32 %v5323_v25, %v1253_v11  ;;  %v1245_v18 = vadd.f32 %v1244_v55, %v8206_v43  ;;  %5528 = vmatprep.mubr.msk.bf16.mxu0 %vm710_vm2, %v2479_v27  ;;  %v8208_v61 = vld [vmem:[#allocation53_spill] sm:$0xff]  ;;  %v3116_v55 = vor.u32 %v3115_v10, %v3114_v24 }
 0x168   : > { %v5276_v51 = vpop.f32.mrf.mxu1  ;;  %5475 = vmatmul.mubr.msk.bf16.gmra.mxu1 %vm710_vm2, %v2475_v44  ;;  %v1609_v16 = vpop.f32.mrf.mxu0  ;;  %v3570_v23 = vrot.slane %v8208_v61, 3  ;;  %v3119_v43 = vor.u32 %v3118_v54, %v3117_v47  ;;  %v2831_v21 = vsel %vm2430_vm5, %v2478_v5, %v2830_v30  ;;  %v8214_v24 = vld [vmem:[#allocation21_spill] sm:$0xff]  ;;  %v8217_v54 = vld [vmem:[#allocation56_spill] sm:$0xff] }
 0x169   : > { %8205 = vst [vmem:[#allocation86_spill] sm:$0xff] %v7173_v37  ;;  %v7181_v7 = vadd.f32 %v1596_v60, %v1245_v18  ;;  %v1266_v35 = vadd.f32 %v5276_v51, %v8210_v42  ;;  %5478 = vmatprep.mubr.msk.bf16.mxu1 %vm710_vm2, %v2477_v9  ;;  %v8213_v51 = vld [vmem:[#allocation55_spill] sm:$0xff]  ;;  %v3125_v10 = vrot.slane %v8214_v24, 2 }
 0x16a   : > { %v1257_v25 = vpop.f32.mrf.mxu1  ;;  %v5327_v11 = vpop.f32.mrf.mxu0  ;;  %v3571_v60 = vsel %vm3568_vm6, %v3569_v28, %v3570_v23 }
 0x16b   : > { %8209 = vst [vmem:[#allocation50_spill] sm:$0xff] %v7181_v7  ;;  %v7185_v37 = vadd.f32 %v5326_v12, %v1266_v35  ;;  %v1258_v44 = vadd.f32 %v1257_v25, %v8211_v38  ;;  %v3120_v12 = vsel %vm3113_vm7, %v3116_v55, %v3119_v43  ;;  %v8215_v38 = vld [vmem:[#allocation18_spill] sm:$0xff] }
 0x16c   : > { %v5277_v19 = vpop.f32.mrf.mxu1  ;;  %v1612_v61 = vpop.f32.mrf.mxu0  ;;  %v3126_v47 = vrot.slane %v8215_v38, 3  ;;  %v8221_v55 = vld [vmem:[#allocation58_spill] sm:$0xff] }
 0x16d   : > { %v7190_v18 = vadd.f32 %v1609_v16, %v1258_v44  ;;  %v1269_v9 = vadd.f32 %v5277_v19, %v8213_v51  ;;  %v8218_v16 = vld [vmem:[#allocation57_spill] sm:$0xff]  ;;  %v8219_v44 = vld [vmem:[#allocation59_spill] sm:$0xff] }
 0x16e   : > { %v1260_v42 = vpop.f32.mrf.mxu1  ;;  %v5330_v7 = vpop.f32.mrf.mxu0  ;;  %5529 = vmatmul.mubr.msk.bf16.gmra.mxu0 %vm710_vm2, %v2831_v21  ;;  %v3572_v28 = vrot.slane %v8218_v16, 3  ;;  %v3574_v21 = vrot.slane %v8219_v44, 3  ;;  %v3127_v24 = vor.u32 %v3126_v47, %v3125_v10  ;;  %v8228_v10 = vld [vmem:[#allocation22_spill] sm:$0xff] }
 0x16f   : > { %8212 = vst [vmem:[#allocation52_spill] sm:$0xff] %v7190_v18  ;;  %v7197_v5 = vadd.f32 %v5327_v11, %v1269_v9  ;;  %v1261_v30 = vadd.f32 %v1260_v42, %v8217_v54  ;;  %5584 = vmatprep.mubr.msk.bf16.mxu0 %vm710_vm2, %v3571_v60  ;;  %v8223_v60 = vld [vmem:[#allocation60_spill] sm:$0xff] }
 0x170   : > { %v5280_v35 = vpop.f32.mrf.mxu1  ;;  %5479 = vmatmul.mubr.msk.bf16.gmra.mxu1 %vm710_vm2, %v2479_v27  ;;  %v1625_v25 = vpop.f32.mrf.mxu0  ;;  %v3573_v54 = vsel %vm3568_vm6, %v3570_v23, %v3572_v28 }
 0x171   : > { %8216 = vst [vmem:[#allocation53_spill] sm:$0xff] %v7197_v5  ;;  %v7204_v19 = vadd.f32 %v1612_v61, %v1261_v30  ;;  %v1282_v51 = vadd.f32 %v5280_v35, %v8221_v55  ;;  %5534 = vmatprep.mubr.msk.bf16.mxu1 %vm710_vm2, %v3120_v12  ;;  %v8224_v5 = vld [vmem:[#allocation49_spill] sm:$0xff]  ;;  %v3575_v61 = vsel %vm3568_vm6, %v3572_v28, %v3574_v21 }
 0x172   : > { %v1273_v11 = vpop.f32.mrf.mxu1  ;;  %v5331_v9 = vpop.f32.mrf.mxu0  ;;  %v3124_v44 = vsel %vm3113_vm7, %v3119_v43, %v8224_v5  ;;  %v8226_v35 = vld [vmem:[#allocation61_spill] sm:$0xff]  ;;  %v3128_v23 = vsel %vm3113_vm7, %v8224_v5, %v3127_v24  ;;  %v8230_v43 = vld [vmem:[#allocation26_spill] sm:$0xff] }
 0x173   : > { %8220 = vst [vmem:[#allocation51_spill] sm:$0xff] %v7204_v19  ;;  %v7208_v42 = vadd.f32 %v5330_v7, %v1282_v51  ;;  %v1274_v38 = vadd.f32 %v1273_v11, %v8223_v60  ;;  %v8227_v55 = vld [vmem:[#allocation25_spill] sm:$0xff]  ;;  %v3130_v7 = vrot.slane %v8228_v10, 3  ;;  %v8229_v11 = vld [vmem:[#allocation30_spill] sm:$0xff] }
 0x174   : > { %v5281_v16 = vpop.f32.mrf.mxu1  ;;  %v1628_v27 = vpop.f32.mrf.mxu0  ;;  %v3129_v19 = vrot.slane %v8227_v55, 2  ;;  %v3133_v60 = vrot.slane %v8229_v11, 2 }
 0x175   : > { %8222 = vst [vmem:[#allocation54_spill] sm:$0xff] %v7208_v42  ;;  %v7215_v30 = vadd.f32 %v1625_v25, %v1274_v38  ;;  %v1285_v12 = vadd.f32 %v5281_v16, %v8226_v35  ;;  %v3134_v42 = vrot.slane %v8230_v43, 3  ;;  %v8231_v25 = vld [vmem:[#allocation62_spill] sm:$0xff]  ;;  %v8232_v16 = vld [vmem:[#allocation63_spill] sm:$0xff] }
 0x176   : > { %v1276_v47 = vpop.f32.mrf.mxu1  ;;  %v5386_v51 = vpop.f32.mrf.mxu0  ;;  %5585 = vmatmul.mubr.msk.bf16.vlgmr.msra.gmra.mxu0 %vm710_vm2, %v3573_v54  ;;  %v3576_v35 = vrot.slane %v8232_v16, 3  ;;  %v8233_v54 = vld [vmem:[#allocation64_spill] sm:$0xff] }
 0x177   : > { %8225 = vst [vmem:[#allocation55_spill] sm:$0xff] %v7215_v30  ;;  %v7225_v28 = vadd.f32 %v5331_v9, %v1285_v12  ;;  %v1277_v38 = vadd.f32 %v1276_v47, %v8231_v25  ;;  %5588 = vmatprep.mubr.msk.bf16.mxu0 %vm710_vm2, %v3575_v61  ;;  %v3578_v30 = vrot.slane %v8233_v54, 3  ;;  %v3131_v9 = vor.u32 %v3130_v7, %v3129_v19 }
 0x178   : > { %v5336_v55 = vpop.f32.mrf.mxu1  ;;  %5535 = vmatmul.mubr.msk.bf16.vlgmr.msra.gmra.mxu1 %vm710_vm2, %v3124_v44  ;;  %v2189_v10 = vpop.f32.mrf.mxu0  ;;  %v3135_v47 = vor.u32 %v3134_v42, %v3133_v60  ;;  %v3577_v25 = vsel %vm3568_vm6, %v3574_v21, %v3576_v35  ;;  %v8237_v21 = vld [vmem:[#allocation38_spill] sm:$0xff] }
 0x179   : > { %v7232_v18 = vadd.f32 %v1628_v27, %v1277_v38  ;;  %v1925_v5 = vadd.f32 %v5336_v55, %v6904_v53  ;;  %5538 = vmatprep.mubr.msk.bf16.mxu1 %vm710_vm2, %v3128_v23  ;;  %v3579_v54 = vsel %vm3568_vm6, %v3576_v35, %v3578_v30  ;;  %v8235_v27 = vld [vmem:[#allocation32_spill] sm:$0xff]  ;;  %v3132_v42 = vsel %vm3113_vm7, %v3127_v24, %v3131_v9  ;;  %v8238_v60 = vld [vmem:[#allocation34_spill] sm:$0xff] }
 0x17a   : > { %v1732_v12 = vpop.f32.mrf.mxu1  ;;  %v5387_v11 = vpop.f32.mrf.mxu0  ;;  %v3137_v38 = vrot.slane %v8235_v27, 2  ;;  %v3141_v23 = vrot.slane %v8237_v21, 2  ;;  %v3142_v35 = vrot.slane %v8238_v60, 3 }
 0x17b   : > { %8234 = vst [vmem:[#allocation21_spill] sm:$0xff] %v7232_v18  ;;  %v7236_v43 = vadd.f32 %v5386_v51, %v1925_v5  ;;  %v1923_v61 = vadd.f32 %v1732_v12, %v6910_v41  ;;  %v8236_v18 = vld [vmem:[#allocation29_spill] sm:$0xff]  ;;  %v3136_v41 = vsel %vm3113_vm7, %v3131_v9, %v3135_v47 }
 0x17c   : > { %v5337_v44 = vpop.f32.mrf.mxu1  ;;  %v2192_v16 = vpop.f32.mrf.mxu0  ;;  %v3138_v53 = vrot.slane %v8236_v18, 3 }
 0x17d   : > { %v7243_v55 = vadd.f32 %v2189_v10, %v1923_v61  ;;  %v1926_v19 = vadd.f32 %v5337_v44, %v6915_v6  ;;  %v8239_v10 = vld [vmem:[#allocation65_spill] sm:$0xff] }
 0x17e   : > { %v1735_v7 = vpop.f32.mrf.mxu1  ;;  %v5390_v51 = vpop.f32.mrf.mxu0  ;;  %5589 = vmatmul.mubr.msk.bf16.gmra.mxu0 %vm710_vm2, %v3577_v25  ;;  %v3580_v6 = vrot.slane %v8239_v10, 3  ;;  %v3139_v61 = vor.u32 %v3138_v53, %v3137_v38  ;;  %v8240_v25 = vld [vmem:[#allocation66_spill] sm:$0xff]  ;;  %v8242_v10 = vld [vmem:[#allocation37_spill] sm:$0xff] }
 0x17f   : > { %v7251_v5 = vadd.f32 %v5387_v11, %v1926_v19  ;;  %v1924_v18 = vadd.f32 %v1735_v7, %v6929_v31  ;;  %5592 = vmatprep.mubr.msk.bf16.mxu0 %vm710_vm2, %v3579_v54  ;;  %v3582_v44 = vrot.slane %v8240_v25, 3  ;;  %v3143_v31 = vor.u32 %v3142_v35, %v3141_v23  ;;  %v8244_v25 = vld [vmem:[#allocation41_spill] sm:$0xff] }
 0x180   : > { %v5340_v12 = vpop.f32.mrf.mxu1  ;;  %5539 = vmatmul.mubr.msk.bf16.gmra.mxu1 %vm710_vm2, %v3132_v42  ;;  %v2205_v24 = vpop.f32.mrf.mxu0  ;;  %v3581_v21 = vsel %vm3568_vm6, %v3578_v30, %v3580_v6  ;;  %v3140_v38 = vsel %vm3113_vm7, %v3135_v47, %v3139_v61  ;;  %v3146_v23 = vrot.slane %v8242_v10, 3  ;;  %v8243_v30 = vld [vmem:[#allocation46_spill] sm:$0xff]  ;;  %v3150_v47 = vrot.slane %v8244_v25, 3 }
 0x181   : > { %v7258_v9 = vadd.f32 %v2192_v16, %v1924_v18  ;;  %v1929_v27 = vadd.f32 %v5340_v12, %v6934_v0  ;;  %5542 = vmatprep.mubr.msk.bf16.mxu1 %vm710_vm2, %v3136_v41  ;;  %v3583_v16 = vsel %vm3568_vm6, %v3580_v6, %v3582_v44  ;;  %v8241_v41 = vld [vmem:[#allocation40_spill] sm:$0xff]  ;;  %v3149_v12 = vrot.slane %v8243_v30, 2 }
 0x182   : > { %v1748_v11 = vpop.f32.mrf.mxu1  ;;  %v5391_v19 = vpop.f32.mrf.mxu0  ;;  %v3145_v18 = vrot.slane %v8241_v41, 2 }
 0x183   : > { %v7262_v7 = vadd.f32 %v5390_v51, %v1929_v27  ;;  %v1927_v54 = vadd.f32 %v1748_v11, %v6940_v3  ;;  %v3144_v3 = vsel %vm3113_vm7, %v3139_v61, %v3143_v31 }
 0x184   : > { %v5341_v42 = vpop.f32.mrf.mxu1  ;;  %v2208_v60 = vpop.f32.mrf.mxu0 }
 0x185   : > { %v7268_v53 = vadd.f32 %v2205_v24, %v1927_v54  ;;  %v1930_v0 = vadd.f32 %v5341_v42, %v6945_v17  ;;  %v8245_v17 = vld [vmem:[#allocation67_spill] sm:$0xff]  ;;  %v8246_v42 = vld [vmem:[#allocation68_spill] sm:$0xff] }
 0x186   : > { %v1751_v51 = vpop.f32.mrf.mxu1  ;;  %v5394_v35 = vpop.f32.mrf.mxu0  ;;  %5593 = vmatmul.mubr.msk.bf16.gmra.mxu0 %vm710_vm2, %v3581_v21  ;;  %v3584_v24 = vrot.slane %v8245_v17, 3  ;;  %v3586_v21 = vrot.slane %v8246_v42, 3  ;;  %v8248_v42 = vld [vmem:[#allocation9_spill] sm:$0xff] }
 0x187   : > { %v7277_v27 = vadd.f32 %v5391_v19, %v1930_v0  ;;  %v1928_v6 = vadd.f32 %v1751_v51, %v6959_v15  ;;  %5596 = vmatprep.mubr.msk.bf16.mxu0 %vm710_vm2, %v3583_v16  ;;  %v3147_v19 = vor.u32 %v3146_v23, %v3145_v18  ;;  %v3151_v15 = vor.u32 %v3150_v47, %v3149_v12  ;;  %v8250_v47 = vld [vmem:[#allocation11_spill] sm:$0xff] }
 0x188   : > { %v5344_v11 = vpop.f32.mrf.mxu1  ;;  %5543 = vmatmul.mubr.msk.bf16.gmra.mxu1 %vm710_vm2, %v3140_v38  ;;  %v2221_v54 = vpop.f32.mrf.mxu0  ;;  %v3585_v30 = vsel %vm3568_vm6, %v3582_v44, %v3584_v24  ;;  %v3587_v17 = vsel %vm3568_vm6, %v3584_v24, %v3586_v21  ;;  %v8249_v44 = vld [vmem:[#allocation12_spill] sm:$0xff]  ;;  %v3158_v24 = vrot.slane %v8250_v47, 3 }
 0x189   : > { %v7284_v41 = vadd.f32 %v2208_v60, %v1928_v6  ;;  %v1933_v61 = vadd.f32 %v5344_v11, %v6964_v40  ;;  %5546 = vmatprep.mubr.msk.bf16.mxu1 %vm710_vm2, %v3144_v3  ;;  %v8247_v60 = vld [vmem:[#allocation10_spill] sm:$0xff]  ;;  %v3154_v40 = vrot.slane %v8248_v42, 3  ;;  %v3148_v23 = vsel %vm3113_vm7, %v3143_v31, %v3147_v19 }
 0x18a   : > { %v1764_v0 = vpop.f32.mrf.mxu1  ;;  %v5395_v10 = vpop.f32.mrf.mxu0  ;;  %v3153_v6 = vrot.slane %v8247_v60, 2  ;;  %v3157_v12 = vrot.slane %v8249_v44, 2 }
 0x18b   : > { %v7288_v51 = vadd.f32 %v5394_v35, %v1933_v61  ;;  %v1931_v16 = vadd.f32 %v1764_v0, %v6970_v34  ;;  %v3152_v34 = vsel %vm3113_vm7, %v3147_v19, %v3151_v15 }
 0x18c   : > { %v5345_v38 = vpop.f32.mrf.mxu1  ;;  %v2224_v25 = vpop.f32.mrf.mxu0 }
 0x18d   : > { %v7295_v11 = vadd.f32 %v2221_v54, %v1931_v16  ;;  %v1934_v18 = vadd.f32 %v5345_v38, %v6975_v46  ;;  %v8251_v54 = vld [vmem:[#allocation69_spill] sm:$0xff]  ;;  %v3155_v38 = vor.u32 %v3154_v40, %v3153_v6 }
 0x18e   : > { %v1767_v35 = vpop.f32.mrf.mxu1  ;;  %v5398_v3 = vpop.f32.mrf.mxu0  ;;  %5597 = vmatmul.mubr.msk.bf16.gmra.mxu0 %vm710_vm2, %v3585_v30  ;;  %v3588_v46 = vrot.slane %v8251_v54, 3  ;;  %v8252_v30 = vld [vmem:[#allocation70_spill] sm:$0xff]  ;;  %v8254_v54 = vld [vmem:[#allocation13_spill] sm:$0xff] }
 0x18f   : > { %v7303_v61 = vadd.f32 %v5395_v10, %v1934_v18  ;;  %v1932_v0 = vadd.f32 %v1767_v35, %v6989_v36  ;;  %5600 = vmatprep.mubr.msk.bf16.mxu0 %vm710_vm2, %v3587_v17  ;;  %v3590_v60 = vrot.slane %v8252_v30, 3  ;;  %v3159_v36 = vor.u32 %v3158_v24, %v3157_v12  ;;  %v8256_v30 = vld [vmem:[#allocation15_spill] sm:$0xff] }
 0x190   : > { %v5348_v16 = vpop.f32.mrf.mxu1  ;;  %5547 = vmatmul.mubr.msk.bf16.gmra.mxu1 %vm710_vm2, %v3148_v23  ;;  %v2237_v31 = vpop.f32.mrf.mxu0  ;;  %v3589_v44 = vsel %vm3568_vm6, %v3586_v21, %v3588_v46  ;;  %v3156_v6 = vsel %vm3113_vm7, %v3151_v15, %v3155_v38  ;;  %v3162_v12 = vrot.slane %v8254_v54, 3  ;;  %v8255_v21 = vld [vmem:[#allocation16_spill] sm:$0xff]  ;;  %v3166_v15 = vrot.slane %v8256_v30, 3 }
 0x191   : > { %v7310_v19 = vadd.f32 %v2224_v25, %v1932_v0  ;;  %v1937_v42 = vadd.f32 %v5348_v16, %v6994_v63  ;;  %5550 = vmatprep.mubr.msk.bf16.mxu1 %vm710_vm2, %v3152_v34  ;;  %v3591_v25 = vsel %vm3568_vm6, %v3588_v46, %v3590_v60  ;;  %v8253_v34 = vld [vmem:[#allocation14_spill] sm:$0xff]  ;;  %v3165_v16 = vrot.slane %v8255_v21, 2 }
 0x192   : > { %v1780_v10 = vpop.f32.mrf.mxu1  ;;  %v5399_v18 = vpop.f32.mrf.mxu0  ;;  %v3161_v0 = vrot.slane %v8253_v34, 2 }
 0x193   : > { %v7314_v35 = vadd.f32 %v5398_v3, %v1937_v42  ;;  %v1935_v17 = vadd.f32 %v1780_v10, %v7000_v2  ;;  %v3160_v2 = vsel %vm3113_vm7, %v3155_v38, %v3159_v36 }
 0x194   : > { %v5349_v23 = vpop.f32.mrf.mxu1  ;;  %v2240_v47 = vpop.f32.mrf.mxu0 }
 0x195   : > { %v7320_v40 = vadd.f32 %v2237_v31, %v1935_v17  ;;  %v1938_v63 = vadd.f32 %v5349_v23, %v7005_v39  ;;  %v8257_v39 = vld [vmem:[#allocation71_spill] sm:$0xff]  ;;  %v8258_v23 = vld [vmem:[#allocation72_spill] sm:$0xff] }
 0x196   : > { %v1783_v3 = vpop.f32.mrf.mxu1  ;;  %v5402_v24 = vpop.f32.mrf.mxu0  ;;  %5601 = vmatmul.mubr.msk.bf16.gmra.mxu0 %vm710_vm2, %v3589_v44  ;;  %v3592_v31 = vrot.slane %v8257_v39, 3  ;;  %v3594_v44 = vrot.slane %v8258_v23, 3  ;;  %v8260_v23 = vld [vmem:[#allocation17_spill] sm:$0xff] }
 0x197   : > { %v7329_v42 = vadd.f32 %v5399_v18, %v1938_v63  ;;  %v1936_v46 = vadd.f32 %v1783_v3, %v7019_v62  ;;  %5604 = vmatprep.mubr.msk.bf16.mxu0 %vm710_vm2, %v3591_v25  ;;  %v3163_v18 = vor.u32 %v3162_v12, %v3161_v0  ;;  %v3167_v62 = vor.u32 %v3166_v15, %v3165_v16  ;;  %v8262_v15 = vld [vmem:[#allocation20_spill] sm:$0xff] }
 0x198   : > { %v5352_v10 = vpop.f32.mrf.mxu1  ;;  %5551 = vmatmul.mubr.msk.bf16.gmra.mxu1 %vm710_vm2, %v3156_v6  ;;  %v2253_v17 = vpop.f32.mrf.mxu0  ;;  %v3593_v21 = vsel %vm3568_vm6, %v3590_v60, %v3592_v31  ;;  %v3595_v39 = vsel %vm3568_vm6, %v3592_v31, %v3594_v44  ;;  %v8261_v60 = vld [vmem:[#allocation23_spill] sm:$0xff]  ;;  %v3174_v31 = vrot.slane %v8262_v15, 3 }
 0x199   : > { %v7336_v34 = vadd.f32 %v2240_v47, %v1936_v46  ;;  %v1941_v38 = vadd.f32 %v5352_v10, %v7024_v58  ;;  %5554 = vmatprep.mubr.msk.bf16.mxu1 %vm710_vm2, %v3160_v2  ;;  %v8259_v47 = vld [vmem:[#allocation19_spill] sm:$0xff]  ;;  %v3170_v58 = vrot.slane %v8260_v23, 3  ;;  %v3164_v12 = vsel %vm3113_vm7, %v3159_v36, %v3163_v18 }
 0x19a   : > { %v1796_v63 = vpop.f32.mrf.mxu1  ;;  %v5403_v54 = vpop.f32.mrf.mxu0  ;;  %v3169_v46 = vrot.slane %v8259_v47, 2  ;;  %v3173_v16 = vrot.slane %v8261_v60, 2 }
 0x19b   : > { %v7340_v3 = vadd.f32 %v5402_v24, %v1941_v38  ;;  %v1939_v25 = vadd.f32 %v1796_v63, %v7030_v33  ;;  %v3168_v33 = vsel %vm3113_vm7, %v3163_v18, %v3167_v62 }
 0x19c   : > { %v5353_v6 = vpop.f32.mrf.mxu1  ;;  %v2256_v30 = vpop.f32.mrf.mxu0 }
 0x19d   : > { %v7347_v10 = vadd.f32 %v2253_v17, %v1939_v25  ;;  %v1942_v0 = vadd.f32 %v5353_v6, %v7035_v57  ;;  %v8263_v17 = vld [vmem:[#allocation73_spill] sm:$0xff]  ;;  %v3171_v6 = vor.u32 %v3170_v58, %v3169_v46 }
 0x19e   : > { %v1799_v24 = vpop.f32.mrf.mxu1  ;;  %v5406_v2 = vpop.f32.mrf.mxu0  ;;  %5605 = vmatmul.mubr.msk.bf16.gmra.mxu0 %vm710_vm2, %v3593_v21  ;;  %v3596_v57 = vrot.slane %v8263_v17, 3  ;;  %v8264_v21 = vld [vmem:[#allocation74_spill] sm:$0xff]  ;;  %v8266_v17 = vld [vmem:[#allocation24_spill] sm:$0xff] }
 0x19f   : > { %v7355_v38 = vadd.f32 %v5403_v54, %v1942_v0  ;;  %v1940_v63 = vadd.f32 %v1799_v24, %v7049_v8  ;;  %5608 = vmatprep.mubr.msk.bf16.mxu0 %vm710_vm2, %v3595_v39  ;;  %v3598_v47 = vrot.slane %v8264_v21, 3  ;;  %v3175_v8 = vor.u32 %v3174_v31, %v3173_v16  ;;  %v8268_v21 = vld [vmem:[#allocation28_spill] sm:$0xff] }
 0x1a0   : > { %v5356_v25 = vpop.f32.mrf.mxu1  ;;  %5555 = vmatmul.mubr.msk.bf16.gmra.mxu1 %vm710_vm2, %v3164_v12  ;;  %v2269_v36 = vpop.f32.mrf.mxu0  ;;  %v3597_v60 = vsel %vm3568_vm6, %v3594_v44, %v3596_v57  ;;  %v3172_v46 = vsel %vm3113_vm7, %v3167_v62, %v3171_v6  ;;  %v3178_v16 = vrot.slane %v8266_v17, 3  ;;  %v8267_v44 = vld [vmem:[#allocation33_spill] sm:$0xff]  ;;  %v3182_v62 = vrot.slane %v8268_v21, 3 }
 0x1a1   : > { %v7362_v18 = vadd.f32 %v2256_v30, %v1940_v63  ;;  %v1945_v23 = vadd.f32 %v5356_v25, %v7054_v48  ;;  %5558 = vmatprep.mubr.msk.bf16.mxu1 %vm710_vm2, %v3168_v33  ;;  %v3599_v30 = vsel %vm3568_vm6, %v3596_v57, %v3598_v47  ;;  %v8265_v33 = vld [vmem:[#allocation27_spill] sm:$0xff]  ;;  %v3181_v25 = vrot.slane %v8267_v44, 2 }
 0x1a2   : > { %v1812_v54 = vpop.f32.mrf.mxu1  ;;  %v5407_v0 = vpop.f32.mrf.mxu0  ;;  %v3177_v63 = vrot.slane %v8265_v33, 2 }
 0x1a3   : > { %v7366_v24 = vadd.f32 %v5406_v2, %v1945_v23  ;;  %v1943_v39 = vadd.f32 %v1812_v54, %v7060_v56  ;;  %v3176_v56 = vsel %vm3113_vm7, %v3171_v6, %v3175_v8 }
 0x1a4   : > { %v5357_v12 = vpop.f32.mrf.mxu1  ;;  %v2272_v15 = vpop.f32.mrf.mxu0 }
 0x1a5   : > { %v7372_v58 = vadd.f32 %v2269_v36, %v1943_v39  ;;  %v1946_v48 = vadd.f32 %v5357_v12, %v7065_v22  ;;  %v8269_v22 = vld [vmem:[#allocation75_spill] sm:$0xff] }
 0x1a6   : > { %v1815_v2 = vpop.f32.mrf.mxu1  ;;  %v5410_v31 = vpop.f32.mrf.mxu0  ;;  %5609 = vmatmul.mubr.msk.bf16.gmra.mxu0 %vm710_vm2, %v3597_v60  ;;  %v3600_v36 = vrot.slane %v8269_v22, 3  ;;  %v3602_v60 = vrot.slane %v7075_v4, 3 }
 0x1a7   : > { %v7381_v23 = vadd.f32 %v5407_v0, %v1946_v48  ;;  %v1944_v57 = vadd.f32 %v1815_v2, %v7078_v29  ;;  %5612 = vmatprep.mubr.msk.bf16.mxu0 %vm710_vm2, %v3599_v30  ;;  %v3179_v0 = vor.u32 %v3178_v16, %v3177_v63  ;;  %v3183_v29 = vor.u32 %v3182_v62, %v3181_v25  ;;  %v8273_v62 = vld [vmem:[#allocation36_spill] sm:$0xff] }
 0x1a8   : > { %v5360_v54 = vpop.f32.mrf.mxu1  ;;  %5559 = vmatmul.mubr.msk.bf16.gmra.mxu1 %vm710_vm2, %v3172_v46  ;;  %v2285_v39 = vpop.f32.mrf.mxu0  ;;  %v3601_v2 = vsel %vm3568_vm6, %v3598_v47, %v3600_v36  ;;  %v3603_v4 = vsel %vm3568_vm6, %v3600_v36, %v3602_v60  ;;  %v8272_v47 = vld [vmem:[#allocation42_spill] sm:$0xff]  ;;  %v3190_v36 = vrot.slane %v8273_v62, 3 }
 0x1a9   : > { %v7388_v12 = vadd.f32 %v2272_v15, %v1944_v57  ;;  %v1949_v6 = vadd.f32 %v5360_v54, %v7082_v45  ;;  %5562 = vmatprep.mubr.msk.bf16.mxu1 %vm710_vm2, %v3176_v56  ;;  %v8270_v15 = vld [vmem:[#allocation35_spill] sm:$0xff]  ;;  %v3180_v16 = vsel %vm3113_vm7, %v3175_v8, %v3179_v0  ;;  %v3189_v25 = vrot.slane %v8272_v47, 2 }
 0x1aa   : > { %v1828_v48 = vpop.f32.mrf.mxu1  ;;  %v5411_v33 = vpop.f32.mrf.mxu0  ;;  %v3185_v21 = vrot.slane %v8270_v15, 2  ;;  %v8271_v57 = vld [vmem:[#allocation31_spill] sm:$0xff] }
 0x1ab   : > { %v7392_v17 = vadd.f32 %v5410_v31, %v1949_v6  ;;  %v1947_v30 = vadd.f32 %v1828_v48, %v7087_v14  ;;  %v3186_v45 = vrot.slane %v8271_v57, 3  ;;  %v3184_v14 = vsel %vm3113_vm7, %v3179_v0, %v3183_v29 }
 0x1ac   : > { %v5361_v46 = vpop.f32.mrf.mxu1  ;;  %v2288_v44 = vpop.f32.mrf.mxu0 }
 0x1ad   : > { %v7399_v22 = vadd.f32 %v2285_v39, %v1947_v30  ;;  %v1950_v63 = vadd.f32 %v5361_v46, %v7091_v26  ;;  %v8274_v39 = vld [vmem:[#allocation76_spill] sm:$0xff]  ;;  %v3187_v30 = vor.u32 %v3186_v45, %v3185_v21 }
 0x1ae   : > { %v1831_v31 = vpop.f32.mrf.mxu1  ;;  %v5414_v56 = vpop.f32.mrf.mxu0  ;;  %5613 = vmatmul.mubr.msk.bf16.gmra.mxu0 %vm710_vm2, %v3601_v2  ;;  %v3604_v26 = vrot.slane %v8274_v39, 3  ;;  %v8275_v2 = vld [vmem:[#allocation77_spill] sm:$0xff]  ;;  %v8278_v39 = vld [vmem:[#allocation39_spill] sm:$0xff] }
 0x1af   : > { %v7407_v54 = vadd.f32 %v5411_v33, %v1950_v63  ;;  %v1948_v6 = vadd.f32 %v1831_v31, %v7104_v59  ;;  %5616 = vmatprep.mubr.msk.bf16.mxu0 %vm710_vm2, %v3603_v4  ;;  %v3606_v46 = vrot.slane %v8275_v2, 3  ;;  %v3191_v59 = vor.u32 %v3190_v36, %v3189_v25  ;;  %v8280_v2 = vld [vmem:[#allocation44_spill] sm:$0xff] }
 0x1b0   : > { %v5364_v48 = vpop.f32.mrf.mxu1  ;;  %5563 = vmatmul.mubr.msk.bf16.gmra.mxu1 %vm710_vm2, %v3180_v16  ;;  %v2301_v8 = vpop.f32.mrf.mxu0  ;;  %v3605_v31 = vsel %vm3568_vm6, %v3602_v60, %v3604_v26  ;;  %v3188_v21 = vsel %vm3113_vm7, %v3183_v29, %v3187_v30  ;;  %v3194_v25 = vrot.slane %v8278_v39, 3  ;;  %v8279_v60 = vld [vmem:[#allocation47_spill] sm:$0xff]  ;;  %v3198_v29 = vrot.slane %v8280_v2, 3 }
 0x1b1   : > { %v7414_v0 = vadd.f32 %v2288_v44, %v1948_v6  ;;  %v1953_v15 = vadd.f32 %v5364_v48, %v7108_v1  ;;  %5566 = vmatprep.mubr.msk.bf16.mxu1 %vm710_vm2, %v3184_v14  ;;  %v3607_v44 = vsel %vm3568_vm6, %v3604_v26, %v3606_v46  ;;  %v8276_v1 = vld [vmem:[#allocation78_spill] sm:$0xff]  ;;  %v8277_v14 = vld [vmem:[#allocation43_spill] sm:$0xff]  ;;  %v3197_v48 = vrot.slane %v8279_v60, 2 }
 0x1b2   : > { %v1844_v33 = vpop.f32.mrf.mxu1  ;;  %v5415_v57 = vpop.f32.mrf.mxu0  ;;  %v3193_v6 = vrot.slane %v8277_v14, 2 }
 0x1b3   : > { %v7418_v63 = vadd.f32 %v5414_v56, %v1953_v15  ;;  %v1951_v4 = vadd.f32 %v1844_v33, %v7113_v20  ;;  %v3192_v20 = vsel %vm3113_vm7, %v3187_v30, %v3191_v59 }
 0x1b4   : > { %v5365_v16 = vpop.f32.mrf.mxu1  ;;  %v2304_v47 = vpop.f32.mrf.mxu0 }
 0x1b5   : > { %v7424_v45 = vadd.f32 %v2301_v8, %v1951_v4  ;;  %v1954_v62 = vadd.f32 %v5365_v16, %v8276_v1  ;;  %v8281_v8 = vld [vmem:[#allocation79_spill] sm:$0xff]  ;;  %v8282_v1 = vld [vmem:[#allocation80_spill] sm:$0xff] }
 0x1b6   : > { %v1847_v56 = vpop.f32.mrf.mxu1  ;;  %v5418_v36 = vpop.f32.mrf.mxu0  ;;  %5617 = vmatmul.mubr.msk.bf16.gmra.mxu0 %vm710_vm2, %v3605_v31  ;;  %v3608_v33 = vrot.slane %v8281_v8, 3  ;;  %v3610_v31 = vrot.slane %v8282_v1, 3 }
 0x1b7   : > { %v7433_v15 = vadd.f32 %v5415_v57, %v1954_v62  ;;  %v1952_v26 = vadd.f32 %v1847_v56, %v7130_v32  ;;  %5620 = vmatprep.mubr.msk.bf16.mxu0 %vm710_vm2, %v3607_v44  ;;  %v3195_v57 = vor.u32 %v3194_v25, %v3193_v6  ;;  %v3199_v32 = vor.u32 %v3198_v29, %v3197_v48 }
 0x1b8   : > { %v5368_v4 = vpop.f32.mrf.mxu1  ;;  %5567 = vmatmul.mubr.msk.bf16.gmra.mxu1 %vm710_vm2, %v3188_v21  ;;  %v2317_v16 = vpop.f32.mrf.mxu0  ;;  %v3609_v60 = vsel %vm3568_vm6, %v3606_v46, %v3608_v33  ;;  %v3611_v8 = vsel %vm3568_vm6, %v3608_v33, %v3610_v31  ;;  %v8288_v48 = vshrl.u32 %v6762_v13, 16  ;;  %v8289_v33 = vshll.u32 %v6762_v13, 16 }
 0x1b9   : > { %v7440_v14 = vadd.f32 %v2304_v47, %v1952_v26  ;;  %v1957_v30 = vadd.f32 %v5368_v4, %v7134_v49  ;;  %5570 = vmatprep.mubr.msk.bf16.mxu1 %vm710_vm2, %v3192_v20  ;;  %v8284_v47 = vld [vmem:[#allocation45_spill] sm:$0xff]  ;;  %v8286_v49 = vld [vmem:[#allocation48_spill] sm:$0xff]  ;;  %v3196_v25 = vsel %vm3113_vm7, %v3191_v59, %v3195_v57  ;;  %v3200_v46 = vsel %vm3113_vm7, %v3195_v57, %v3199_v32 }
 0x1ba   : > { %v1860_v62 = vpop.f32.mrf.mxu1  ;;  %v5419_v39 = vpop.f32.mrf.mxu0  ;;  %v8285_v26 = vshrl.u32 %v8284_v47, 16  ;;  %v3202_v4 = vrot.slane %v8286_v49, 3  ;;  %v3205_v29 = vrot.slane %v8288_v48, 2  ;;  %v5750_v57 = vld [vmem:[%s6257_s17 + $0x8] sm:$0xff]   ;;  %v8294_v48 = vld [vmem:[#allocation83_spill] sm:$0xff]  ;;  %s7705_s17 = scalar_lea.vmem [#allocation2], %s5644_s28 }
 0x1bb   : > { %v7444_v56 = vadd.f32 %v5418_v36, %v1957_v30  ;;  %v1955_v44 = vadd.f32 %v1860_v62, %v7139_v52  ;;  %v3206_v30 = vrot.slane %v8289_v33, 3  ;;  %s4528_s20 = sshll.u32 %s7705_s17, 4  ;;  %s7877_s20 = int_to_ptr.vmem [resolvable:$true] %s4528_s20 }
 0x1bc   : > { %v5369_v21 = vpop.f32.mrf.mxu1  ;;  %v2320_v2 = vpop.f32.mrf.mxu0  ;;  %v3201_v1 = vrot.slane %v8285_v26, 2  ;;  %v3614_v26 = vrot.slane %v5750_v57, 3  ;;  %v8297_v57 = vld [vmem:[#allocation86_spill] sm:$0xff]  ;;  %s5751_s13 = scalar_lea.vmem %s7877_s20, 6144  ;;  %p5758_p2 = scmp.lt.s32.totalorder %s7877_s20, %s5756_s15 }
 0x1bd   : > { %8283 = vst [vmem:[#allocation18_spill] sm:$0xff] %v7444_v56  ;;  %v7452_v20 = vadd.f32 %v2317_v16, %v1955_v44  ;;  %v1958_v6 = vadd.f32 %v5369_v21, %v7143_v50  ;;  %v8291_v16 = vld [vmem:[#allocation82_spill] sm:$0xff]  ;;  %v8292_v50 = vld [vmem:[#allocation81_spill] sm:$0xff]  ;;  %p5752_p13 = scmp.ne.s32.totalorder %s7877_s20, %s5751_s13  ;;  %p5759_p3 = scmp.lt.s32.totalorder %s5757_s16, %s5751_s13 }
 0x1be   : > { %v1863_v36 = vpop.f32.mrf.mxu1  ;;  %v5422_v52 = vpop.f32.mrf.mxu0  ;;  %5621 = vmatmul.mubr.msk.bf16.gmra.mxu0 %vm710_vm2, %v3609_v60  ;;  %v3612_v59 = vrot.slane %v8292_v50, 3  ;;  %v3203_v47 = vor.u32 %v3202_v4, %v3201_v1 }
 0x1bf   : > { %8287 = vst [vmem:[#allocation56_spill] sm:$0xff] %v7452_v20  ;;  %v7462_v62 = vadd.f32 %v5419_v39, %v1958_v6  ;;  %v1956_v44 = vadd.f32 %v1863_v36, %v8291_v16  ;;  %5624 = vmatprep.mubr.msk.bf16.mxu0 %vm710_vm2, %v3611_v8  ;;  %v8295_v39 = vld [vmem:[#allocation84_spill] sm:$0xff]  ;;  %v3207_v16 = vor.u32 %v3206_v30, %v3205_v29  ;;  %p5753_p0 = pnand %p5752_p13, %p5950_p5  ;;  %p5760_p4 = por %p5759_p3, %p5758_p2 }
 0x1c0   : > { %v5372_v21 = vpop.f32.mrf.mxu1  ;;  %5571 = vmatmul.mubr.msk.bf16.gmra.mxu1 %vm710_vm2, %v3196_v25  ;;  %v2333_v60 = vpop.f32.mrf.mxu0  ;;  %v3210_v6 = vshrl.u32 %v8295_v39, 16  ;;  %v3213_v36 = vshll.u32 %v8295_v39, 16  ;;  %v8296_v25 = vld [vmem:[#allocation85_spill] sm:$0xff]  ;;  %v3613_v1 = vsel %vm3568_vm6, %v3610_v31, %v3612_v59  ;;  %v8298_v31 = vld [vmem:[#allocation50_spill] sm:$0xff] }
 0x1c1   : > { %8290 = vst [vmem:[#allocation57_spill] sm:$0xff] %v7462_v62  ;;  %v7469_v49 = vadd.f32 %v2320_v2, %v1956_v44  ;;  %v1961_v13 = vadd.f32 %v5372_v21, %v8294_v48  ;;  %5574 = vmatprep.mubr.msk.bf16.mxu1 %vm710_vm2, %v3200_v46  ;;  %v3204_v44 = vsel %vm3113_vm7, %v3199_v32, %v3203_v47  ;;  %v3616_v32 = vrot.slane %v8295_v39, 3  ;;  %p5754_p1 = pneg %p5753_p0 }
 0x1c2   : > { %v1876_v8 = vpop.f32.mrf.mxu1  ;;  %v5423_v33 = vpop.f32.mrf.mxu0  ;;  %v3615_v21 = vsel %vm3568_vm6, %v3612_v59, %v3614_v26  ;;  %v3215_v20 = vrot.slane %v3213_v36, 3 }
 0x1c3   : > { %8293 = vst [vmem:[#allocation59_spill] sm:$0xff] %v7469_v49  ;;  %v7475_v50 = vadd.f32 %v5422_v52, %v1961_v13  ;;  %v1959_v62 = vadd.f32 %v1876_v8, %v8296_v25  ;;  %v3212_v49 = vrot.slane %v3210_v6, 2  ;;  %v3208_v52 = vsel %vm3113_vm7, %v3203_v47, %v3207_v16  ;;  %p5761_p7 = pnand %p5760_p4, %p5754_p1 }
 0x1c4   : > { %v5373_v4 = vpop.f32.mrf.mxu1  ;;  %v2336_v2 = vpop.f32.mrf.mxu0 }
 0x1c5   : > { %v7481_v46 = vadd.f32 %v2333_v60, %v1959_v62  ;;  %v1962_v48 = vadd.f32 %v5373_v4, %v8297_v57  ;;  %v3216_v36 = vor.u32 %v3215_v20, %v3212_v49  ;;  %v8301_v49 = vld [vmem:[#allocation51_spill] sm:$0xff] }
 0x1c6   : > { %v1879_v56 = vpop.f32.mrf.mxu1  ;;  %v5426_v29 = vpop.f32.mrf.mxu0  ;;  %5625 = vmatmul.mubr.msk.bf16.gmra.mxu0 %vm710_vm2, %v3613_v1  ;;  %v3617_v1 = vsel %vm3568_vm6, %v3614_v26, %v3616_v32 }
 0x1c7   : > { %v7486_v30 = vadd.f32 %v5423_v33, %v1962_v48  ;;  %v1960_v13 = vadd.f32 %v1879_v56, %v8298_v31  ;;  %5628 = vmatprep.mubr.msk.bf16.mxu0 %vm710_vm2, %v3615_v21  ;;  %v8299_v56 = vld [vmem:[#allocation52_spill] sm:$0xff]  ;;  %v3217_v57 = vsel %vm3113_vm7, %v3207_v16, %v3216_v36  ;;  %v8303_v16 = vld [vmem:[#allocation55_spill] sm:$0xff] }
 0x1c8   : > { %v5376_v62 = vpop.f32.mrf.mxu1  ;;  %5575 = vmatmul.mubr.msk.bf16.gmra.mxu1 %vm710_vm2, %v3204_v44  ;;  %v2349_v59 = vpop.f32.mrf.mxu0  ;;  %v8300_v44 = vld [vmem:[#allocation53_spill] sm:$0xff] }
 0x1c9   : > { %v7492_v60 = vadd.f32 %v2336_v2, %v1960_v13  ;;  %v1965_v6 = vadd.f32 %v5376_v62, %v7185_v37  ;;  %5578 = vmatprep.mubr.msk.bf16.mxu1 %vm710_vm2, %v3208_v52  ;;  %v8302_v13 = vld [vmem:[#allocation54_spill] sm:$0xff] }
 0x1ca   : > { %v1892_v47 = vpop.f32.mrf.mxu1  ;;  %v5427_v8 = vpop.f32.mrf.mxu0 }
 0x1cb   : > { %v7496_v33 = vadd.f32 %v5426_v29, %v1965_v6  ;;  %v1963_v25 = vadd.f32 %v1892_v47, %v8299_v56 }
 0x1cc   : > { %v5377_v39 = vpop.f32.mrf.mxu1  ;;  %v2352_v4 = vpop.f32.mrf.mxu0 }
 0x1cd   : > { %v7500_v21 = vadd.f32 %v2349_v59, %v1963_v25  ;;  %v1966_v2 = vadd.f32 %v5377_v39, %v8300_v44 }
 0x1ce   : > { %v1895_v37 = vpop.f32.mrf.mxu1  ;;  %v5430_v48 = vpop.f32.mrf.mxu0  ;;  %5629 = vmatmul.mubr.msk.bf16.gmra.mxu0 %vm710_vm2, %v3617_v1 }
 0x1cf   : > { %v7505_v20 = vadd.f32 %v5427_v8, %v1966_v2  ;;  %v1964_v29 = vadd.f32 %v1895_v37, %v8301_v49 }
 0x1d0   : > { %v5380_v52 = vpop.f32.mrf.mxu1  ;;  %5579 = vmatmul.mubr.msk.bf16.gmra.mxu1 %vm710_vm2, %v3217_v57  ;;  %v2365_v26 = vpop.f32.mrf.mxu0 }
 0x1d1   : > { %v7509_v31 = vadd.f32 %v2352_v4, %v1964_v29  ;;  %v1969_v32 = vadd.f32 %v5380_v52, %v8302_v13  ;;  %v8304_v4 = vld [vmem:[#allocation21_spill] sm:$0xff] }
 0x1d2   : > { %v1908_v62 = vpop.f32.mrf.mxu1  ;;  %v5431_v59 = vpop.f32.mrf.mxu0 }
 0x1d3   : > { %v7512_v6 = vadd.f32 %v5430_v48, %v1969_v32  ;;  %v1967_v36 = vadd.f32 %v1908_v62, %v8303_v16 }
 0x1d4   : > { %v5381_v47 = vpop.f32.mrf.mxu1  ;;  %v2368_v56 = vpop.f32.mrf.mxu0 }
 0x1d5   : > { %v7515_v8 = vadd.f32 %v2365_v26, %v1967_v36  ;;  %v1970_v25 = vadd.f32 %v5381_v47, %v7225_v28 }
 0x1d6   : > { %v1911_v1 = vpop.f32.mrf.mxu1  ;;  %v5486_v39 = vpop.f32.mrf.mxu0 }
 0x1d7   : > { %v7518_v44 = vadd.f32 %v5431_v59, %v1970_v25  ;;  %v1968_v2 = vadd.f32 %v1911_v1, %v8304_v4 }
 0x1d8   : > { %v5436_v57 = vpop.f32.mrf.mxu1  ;;  %v2872_v37 = vpop.f32.mrf.mxu0 }
 0x1d9   : > { %v7521_v49 = vadd.f32 %v2368_v56, %v1968_v2  ;;  %v2782_v48 = vadd.f32 %v5436_v57, %v7236_v43 }
 0x1da   : > { %v2589_v29 = vpop.f32.mrf.mxu1  ;;  %v5487_v52 = vpop.f32.mrf.mxu0 }
 0x1db   : > { %v7524_v13 = vadd.f32 %v5486_v39, %v2782_v48  ;;  %v2780_v26 = vadd.f32 %v2589_v29, %v7243_v55 }
 0x1dc   : > { %v5437_v32 = vpop.f32.mrf.mxu1  ;;  %v2875_v28 = vpop.f32.mrf.mxu0 }
 0x1dd   : > { %v7527_v62 = vadd.f32 %v2872_v37, %v2780_v26  ;;  %v2783_v59 = vadd.f32 %v5437_v32, %v7251_v5 }
 0x1de   : > { %v2592_v16 = vpop.f32.mrf.mxu1  ;;  %v5490_v36 = vpop.f32.mrf.mxu0 }
 0x1df   : > { %v7530_v47 = vadd.f32 %v5487_v52, %v2783_v59  ;;  %v2781_v56 = vadd.f32 %v2592_v16, %v7258_v9 }
 0x1e0   : > { %v5440_v25 = vpop.f32.mrf.mxu1  ;;  %v2888_v43 = vpop.f32.mrf.mxu0 }
 0x1e1   : > { %v7533_v1 = vadd.f32 %v2875_v28, %v2781_v56  ;;  %v2786_v39 = vadd.f32 %v5440_v25, %v7262_v7 }
 0x1e2   : > { %v2605_v4 = vpop.f32.mrf.mxu1  ;;  %v5491_v55 = vpop.f32.mrf.mxu0 }
 0x1e3   : > { %v7536_v2 = vadd.f32 %v5490_v36, %v2786_v39  ;;  %v2784_v57 = vadd.f32 %v2605_v4, %v7268_v53 }
 0x1e4   : > { %v5441_v37 = vpop.f32.mrf.mxu1  ;;  %v2891_v5 = vpop.f32.mrf.mxu0 }
 0x1e5   : > { %v7539_v48 = vadd.f32 %v2888_v43, %v2784_v57  ;;  %v2787_v29 = vadd.f32 %v5441_v37, %v7277_v27 }
 0x1e6   : > { %v2608_v52 = vpop.f32.mrf.mxu1  ;;  %v5494_v9 = vpop.f32.mrf.mxu0 }
 0x1e7   : > { %v7542_v26 = vadd.f32 %v5491_v55, %v2787_v29  ;;  %v2785_v32 = vadd.f32 %v2608_v52, %v7284_v41 }
 0x1e8   : > { %v5444_v28 = vpop.f32.mrf.mxu1  ;;  %v2904_v7 = vpop.f32.mrf.mxu0 }
 0x1e9   : > { %v7545_v59 = vadd.f32 %v2891_v5, %v2785_v32  ;;  %v2790_v16 = vadd.f32 %v5444_v28, %v7288_v51 }
 0x1ea   : > { %v2621_v36 = vpop.f32.mrf.mxu1  ;;  %v5495_v53 = vpop.f32.mrf.mxu0 }
 0x1eb   : > { %v7548_v56 = vadd.f32 %v5494_v9, %v2790_v16  ;;  %v2788_v25 = vadd.f32 %v2621_v36, %v7295_v11 }
 0x1ec   : > { %v5445_v43 = vpop.f32.mrf.mxu1  ;;  %v2907_v27 = vpop.f32.mrf.mxu0 }
 0x1ed   : > { %v7551_v39 = vadd.f32 %v2904_v7, %v2788_v25  ;;  %v2791_v4 = vadd.f32 %v5445_v43, %v7303_v61 }
 0x1ee   : > { %v2624_v55 = vpop.f32.mrf.mxu1  ;;  %v5498_v41 = vpop.f32.mrf.mxu0 }
 0x1ef   : > { %v7554_v57 = vadd.f32 %v5495_v53, %v2791_v4  ;;  %v2789_v37 = vadd.f32 %v2624_v55, %v7310_v19 }
 0x1f0   : > { %v5448_v5 = vpop.f32.mrf.mxu1  ;;  %v2920_v51 = vpop.f32.mrf.mxu0 }
 0x1f1   : > { %v7557_v29 = vadd.f32 %v2907_v27, %v2789_v37  ;;  %v2794_v52 = vadd.f32 %v5448_v5, %v7314_v35 }
 0x1f2   : > { %v2637_v9 = vpop.f32.mrf.mxu1  ;;  %v5499_v11 = vpop.f32.mrf.mxu0 }
 0x1f3   : > { %v7560_v32 = vadd.f32 %v5498_v41, %v2794_v52  ;;  %v2792_v28 = vadd.f32 %v2637_v9, %v7320_v40 }
 0x1f4   : > { %v5449_v7 = vpop.f32.mrf.mxu1  ;;  %v2923_v61 = vpop.f32.mrf.mxu0 }
 0x1f5   : > { %v7563_v16 = vadd.f32 %v2920_v51, %v2792_v28  ;;  %v2795_v36 = vadd.f32 %v5449_v7, %v7329_v42 }
 0x1f6   : > { %v2640_v53 = vpop.f32.mrf.mxu1  ;;  %v5502_v19 = vpop.f32.mrf.mxu0 }
 0x1f7   : > { %v7566_v25 = vadd.f32 %v5499_v11, %v2795_v36  ;;  %v2793_v43 = vadd.f32 %v2640_v53, %v7336_v34 }
 0x1f8   : > { %v5452_v27 = vpop.f32.mrf.mxu1  ;;  %v2936_v35 = vpop.f32.mrf.mxu0 }
 0x1f9   : > { %v7569_v4 = vadd.f32 %v2923_v61, %v2793_v43  ;;  %v2798_v55 = vadd.f32 %v5452_v27, %v7340_v3 }
 0x1fa   : > { %v2653_v41 = vpop.f32.mrf.mxu1  ;;  %v5503_v40 = vpop.f32.mrf.mxu0 }
 0x1fb   : > { %v7572_v37 = vadd.f32 %v5502_v19, %v2798_v55  ;;  %v2796_v5 = vadd.f32 %v2653_v41, %v7347_v10 }
 0x1fc   : > { %v5453_v51 = vpop.f32.mrf.mxu1  ;;  %v2939_v42 = vpop.f32.mrf.mxu0 }
 0x1fd   : > { %v7575_v52 = vadd.f32 %v2936_v35, %v2796_v5  ;;  %v2799_v9 = vadd.f32 %v5453_v51, %v7355_v38 }
 0x1fe   : > { %v2656_v11 = vpop.f32.mrf.mxu1  ;;  %v5506_v34 = vpop.f32.mrf.mxu0 }
 0x1ff   : > { %v7578_v28 = vadd.f32 %v5503_v40, %v2799_v9  ;;  %v2797_v7 = vadd.f32 %v2656_v11, %v7362_v18 }
 0x200   : > { %v5456_v61 = vpop.f32.mrf.mxu1  ;;  %v2952_v3 = vpop.f32.mrf.mxu0 }
 0x201   : > { %v7581_v36 = vadd.f32 %v2939_v42, %v2797_v7  ;;  %v2802_v53 = vadd.f32 %v5456_v61, %v7366_v24 }
 0x202   : > { %v2669_v19 = vpop.f32.mrf.mxu1  ;;  %v5507_v10 = vpop.f32.mrf.mxu0 }
 0x203   : > { %v7584_v43 = vadd.f32 %v5506_v34, %v2802_v53  ;;  %v2800_v27 = vadd.f32 %v2669_v19, %v7372_v58 }
 0x204   : > { %v5457_v35 = vpop.f32.mrf.mxu1  ;;  %v2955_v38 = vpop.f32.mrf.mxu0 }
 0x205   : > { %v7587_v55 = vadd.f32 %v2952_v3, %v2800_v27  ;;  %v2803_v41 = vadd.f32 %v5457_v35, %v7381_v23 }
 0x206   : > { %v2672_v40 = vpop.f32.mrf.mxu1  ;;  %v5510_v18 = vpop.f32.mrf.mxu0 }
 0x207   : > { %v7590_v5 = vadd.f32 %v5507_v10, %v2803_v41  ;;  %v2801_v51 = vadd.f32 %v2672_v40, %v7388_v12  ;;  %v7605_v41 = vpop.permute.xlu0 %4064 }
 0x208   : > { %v5460_v42 = vpop.f32.mrf.mxu1  ;;  %v2968_v24 = vpop.f32.mrf.mxu0 }
 0x209   : > { %v7593_v9 = vadd.f32 %v2955_v38, %v2801_v51  ;;  %v2806_v11 = vadd.f32 %v5460_v42, %v7392_v17  ;;  %v7610_v42 = vpop.permute.xlu1 %4074 }
 0x20a   : > { %v2685_v34 = vpop.f32.mrf.mxu1  ;;  %v5511_v58 = vpop.f32.mrf.mxu0 }
 0x20b   : > { %v7596_v7 = vadd.f32 %v5510_v18, %v2806_v11  ;;  %v2804_v61 = vadd.f32 %v2685_v34, %v7399_v22 }
 0x20c   : > { %v5461_v3 = vpop.f32.mrf.mxu1  ;;  %v2971_v23 = vpop.f32.mrf.mxu0 }
 0x20d   : > { %v7599_v53 = vadd.f32 %v2968_v24, %v2804_v61  ;;  %v2807_v19 = vadd.f32 %v5461_v3, %v7407_v54 }
 0x20e   : > { %v2688_v10 = vpop.f32.mrf.mxu1  ;;  %v5514_v12 = vpop.f32.mrf.mxu0 }
 0x20f   : > { %v7602_v27 = vadd.f32 %v5511_v58, %v2807_v19  ;;  %v2805_v35 = vadd.f32 %v2688_v10, %v7414_v0 }
 0x210   : > { %v5464_v38 = vpop.f32.mrf.mxu1  ;;  %v2984_v17 = vpop.f32.mrf.mxu0 }
 0x211   : > { %v7607_v40 = vadd.f32 %v2971_v23, %v2805_v35  ;;  %v2810_v22 = vadd.f32 %v5464_v38, %v7418_v63  ;;  %v7618_v23 = vpop.permute.xlu0 %4069 }
 0x212   : > { %v2701_v18 = vpop.f32.mrf.mxu1  ;;  %v5515_v51 = vpop.f32.mrf.mxu0 }
 0x213   : > { %8305 = vst [vmem:[#allocation58_spill] sm:$0xff] %v7607_v40  ;;  %v7612_v24 = vadd.f32 %v5514_v12, %v2810_v22  ;;  %v2808_v54 = vadd.f32 %v2701_v18, %v7424_v45  ;;  %v7623_v12 = vpop.permute.xlu1 %4079  ;;  %v8310_v45 = vld [vmem:[#allocation18_spill] sm:$0xff] }
 0x214   : > { %v5465_v11 = vpop.f32.mrf.mxu1  ;;  %v2987_v34 = vpop.f32.mrf.mxu0 }
 0x215   : > { %8306 = vst [vmem:[#allocation60_spill] sm:$0xff] %v7612_v24  ;;  %v7615_v58 = vadd.f32 %v2984_v17, %v2808_v54  ;;  %v2811_v0 = vadd.f32 %v5465_v11, %v7433_v15  ;;  %v8312_v15 = vld [vmem:[#allocation56_spill] sm:$0xff] }
 0x216   : > { %v2704_v61 = vpop.f32.mrf.mxu1  ;;  %v5518_v3 = vpop.f32.mrf.mxu0 }
 0x217   : > { %8307 = vst [vmem:[#allocation49_spill] sm:$0xff] %v7615_v58  ;;  %v7620_v19 = vadd.f32 %v5515_v51, %v2811_v0  ;;  %v2809_v63 = vadd.f32 %v2704_v61, %v7440_v14  ;;  %v7631_v51 = vpop.permute.xlu0 %4084  ;;  %v8314_v14 = vld [vmem:[#allocation57_spill] sm:$0xff] }
 0x218   : > { %v5468_v10 = vpop.f32.mrf.mxu1  ;;  %v3000_v35 = vpop.f32.mrf.mxu0 }
 0x219   : > { %8308 = vst [vmem:[#allocation61_spill] sm:$0xff] %v7620_v19  ;;  %v7625_v38 = vadd.f32 %v2987_v34, %v2809_v63  ;;  %v2814_v22 = vadd.f32 %v5468_v10, %v8310_v45  ;;  %v7636_v34 = vpop.permute.xlu1 %4089  ;;  %v8315_v10 = vld [vmem:[#allocation59_spill] sm:$0xff] }
 0x21a   : > { %v2717_v17 = vpop.f32.mrf.mxu1  ;;  %v5519_v18 = vpop.f32.mrf.mxu0 }
 0x21b   : > { %8309 = vst [vmem:[#allocation25_spill] sm:$0xff] %v7625_v38  ;;  %v7628_v54 = vadd.f32 %v5518_v3, %v2814_v22  ;;  %v2812_v11 = vadd.f32 %v2717_v17, %v8312_v15 }
 0x21c   : > { %v5469_v58 = vpop.f32.mrf.mxu1  ;;  %v3003_v24 = vpop.f32.mrf.mxu0 }
 0x21d   : > { %8311 = vst [vmem:[#allocation22_spill] sm:$0xff] %v7628_v54  ;;  %v7633_v0 = vadd.f32 %v3000_v35, %v2812_v11  ;;  %v2815_v61 = vadd.f32 %v5469_v58, %v8314_v14  ;;  %v7644_v35 = vpop.permute.xlu0 %4094 }
 0x21e   : > { %v2720_v19 = vpop.f32.mrf.mxu1  ;;  %v5522_v40 = vpop.f32.mrf.mxu0 }
 0x21f   : > { %8313 = vst [vmem:[#allocation30_spill] sm:$0xff] %v7633_v0  ;;  %v7638_v63 = vadd.f32 %v5519_v18, %v2815_v61  ;;  %v2813_v45 = vadd.f32 %v2720_v19, %v8315_v10  ;;  %v7649_v18 = vpop.permute.xlu1 %4099 }
 0x220   : > { %v5472_v3 = vpop.f32.mrf.mxu1  ;;  %v3016_v22 = vpop.f32.mrf.mxu0 }
 0x221   : > { %v7641_v54 = vadd.f32 %v3003_v24, %v2813_v45  ;;  %v2818_v17 = vadd.f32 %v5472_v3, %v7475_v50 }
 0x222   : > { %v2733_v15 = vpop.f32.mrf.mxu1  ;;  %v5523_v38 = vpop.f32.mrf.mxu0 }
 0x223   : > { %8316 = vst [vmem:[#allocation26_spill] sm:$0xff] %v7641_v54  ;;  %v7646_v11 = vadd.f32 %v5522_v40, %v2818_v17  ;;  %v2816_v58 = vadd.f32 %v2733_v15, %v7481_v46  ;;  %v7657_v40 = vpop.permute.xlu0 %4104 }
 0x224   : > { %v5473_v14 = vpop.f32.mrf.mxu1  ;;  %v3019_v0 = vpop.f32.mrf.mxu0 }
 0x225   : > { %8317 = vst [vmem:[#allocation62_spill] sm:$0xff] %v7646_v11  ;;  %v7651_v61 = vadd.f32 %v3016_v22, %v2816_v58  ;;  %v2819_v19 = vadd.f32 %v5473_v14, %v7486_v30  ;;  %v7662_v22 = vpop.permute.xlu1 %4109 }
 0x226   : > { %v2736_v24 = vpop.f32.mrf.mxu1  ;;  %v5526_v10 = vpop.f32.mrf.mxu0 }
 0x227   : > { %8318 = vst [vmem:[#allocation63_spill] sm:$0xff] %v7651_v61  ;;  %v7654_v45 = vadd.f32 %v5523_v38, %v2819_v19  ;;  %v2817_v50 = vadd.f32 %v2736_v24, %v7492_v60 }
 0x228   : > { %v5476_v3 = vpop.f32.mrf.mxu1  ;;  %v3032_v54 = vpop.f32.mrf.mxu0 }
 0x229   : > { %8319 = vst [vmem:[#allocation64_spill] sm:$0xff] %v7654_v45  ;;  %v7659_v17 = vadd.f32 %v3019_v0, %v2817_v50  ;;  %v2822_v46 = vadd.f32 %v5476_v3, %v7496_v33  ;;  %v7670_v50 = vpop.permute.xlu0 %4114 }
 0x22a   : > { %v2749_v15 = vpop.f32.mrf.mxu1  ;;  %v5527_v11 = vpop.f32.mrf.mxu0 }
 0x22b   : > { %8320 = vst [vmem:[#allocation32_spill] sm:$0xff] %v7659_v17  ;;  %v7664_v58 = vadd.f32 %v5526_v10, %v2822_v46  ;;  %v2820_v30 = vadd.f32 %v2749_v15, %v7500_v21  ;;  %v7675_v46 = vpop.permute.xlu1 %4119 }
 0x22c   : > { %v5477_v38 = vpop.f32.mrf.mxu1  ;;  %v3035_v14 = vpop.f32.mrf.mxu0 }
 0x22d   : > { %8321 = vst [vmem:[#allocation29_spill] sm:$0xff] %v7664_v58  ;;  %v7667_v19 = vadd.f32 %v3032_v54, %v2820_v30  ;;  %v2823_v60 = vadd.f32 %v5477_v38, %v7505_v20 }
 0x22e   : > { %v2752_v24 = vpop.f32.mrf.mxu1  ;;  %v5530_v0 = vpop.f32.mrf.mxu0 }
 0x22f   : > { %8322 = vst [vmem:[#allocation38_spill] sm:$0xff] %v7667_v19  ;;  %v7672_v33 = vadd.f32 %v5527_v11, %v2823_v60  ;;  %v2821_v3 = vadd.f32 %v2752_v24, %v7509_v31  ;;  %v7686_v31 = vpop.permute.xlu0 %4124 }
 0x230   : > { %v5480_v17 = vpop.f32.mrf.mxu1  ;;  %v3048_v10 = vpop.f32.mrf.mxu0 }
 0x231   : > { %8323 = vst [vmem:[#allocation34_spill] sm:$0xff] %v7672_v33  ;;  %v7677_v21 = vadd.f32 %v3035_v14, %v2821_v3  ;;  %v2826_v54 = vadd.f32 %v5480_v17, %v7512_v6  ;;  %v7692_v17 = vpop.permute.xlu1 %4129 }
 0x232   : > { %v2765_v15 = vpop.f32.mrf.mxu1  ;;  %v5531_v30 = vpop.f32.mrf.mxu0 }
 0x233   : > { %8324 = vst [vmem:[#allocation65_spill] sm:$0xff] %v7677_v21  ;;  %v7680_v19 = vadd.f32 %v5530_v0, %v2826_v54  ;;  %v2824_v20 = vadd.f32 %v2765_v15, %v7515_v8 }
 0x234   : > { %v5481_v11 = vpop.f32.mrf.mxu1  ;;  %v3051_v38 = vpop.f32.mrf.mxu0 }
 0x235   : > { %8325 = vst [vmem:[#allocation66_spill] sm:$0xff] %v7680_v19  ;;  %v7688_v60 = vadd.f32 %v3048_v10, %v2824_v20  ;;  %v2827_v14 = vadd.f32 %v5481_v11, %v7518_v44  ;;  %v7700_v20 = vpop.permute.xlu0 %4134  ;;  %v7703_v58 = vpop.permute.xlu1 %4139 }
 0x236   : > { %v2768_v24 = vpop.f32.mrf.mxu1  ;;  %v5586_v6 = vpop.f32.mrf.mxu0 }
 0x237   : > { %8326 = vst [vmem:[#allocation40_spill] sm:$0xff] %v7688_v60  ;;  %v7694_v0 = vadd.f32 %v5531_v30, %v2827_v14  ;;  %v2825_v8 = vadd.f32 %v2768_v24, %v7521_v49 }
 0x238   : > { %v5536_v3 = vpop.f32.mrf.mxu1  ;;  %v3727_v54 = vpop.f32.mrf.mxu0 }
 0x239   : > { %8327 = vst [vmem:[#allocation37_spill] sm:$0xff] %v7694_v0  ;;  %v7697_v15 = vadd.f32 %v3051_v38, %v2825_v8  ;;  %v3520_v19 = vadd.f32 %v5536_v3, %v7524_v13 }
 0x23a   : > { %v3327_v21 = vpop.f32.mrf.mxu1  ;;  %v5587_v10 = vpop.f32.mrf.mxu0 }
 0x23b   : > { %8328 = vst [vmem:[#allocation46_spill] sm:$0xff] %v7697_v15  ;;  %v3920_v44 = vadd.f32 %v5586_v6, %v3520_v19  ;;  %v3518_v11 = vadd.f32 %v3327_v21, %v7527_v62  ;;  %v7712_v6 = vpop.permute.xlu0 %4144 }
 0x23c   : > { %v5537_v60 = vpop.f32.mrf.mxu1  ;;  %v3730_v33 = vpop.f32.mrf.mxu0 }
 0x23d   : > { %3968 = vst [vmem:[%s7705_s17 + $0x10] sm:$0xff] %v3920_v44  ;;  %v3918_v49 = vadd.f32 %v3727_v54, %v3518_v11  ;;  %v3521_v13 = vadd.f32 %v5537_v60, %v7530_v47  ;;  %v7716_v60 = vpop.permute.xlu1 %4149  ;;  %v4304_v11 = vmul.f32 %v7610_v42, %v3920_v44 }
 0x23e   : > { %v3330_v30 = vpop.f32.mrf.mxu1  ;;  %v5590_v38 = vpop.f32.mrf.mxu0 }
 0x23f   : > { %3966 = vst [vmem:[%s7705_s17] sm:$0xff] %v3918_v49  ;;  %v3921_v19 = vadd.f32 %v5587_v10, %v3521_v13  ;;  %v3519_v62 = vadd.f32 %v3330_v30, %v7533_v1  ;;  %v4302_v21 = vmul.f32 %v7605_v41, %v3918_v49  ;;  %v7725_v61 = vpop.permute.xlu0 %4154 }
 0x240   : > { %v5540_v14 = vpop.f32.mrf.mxu1  ;;  %v3743_v24 = vpop.f32.mrf.mxu0 }
 0x241   : > { %3969 = vst [vmem:[%s7705_s17 + $0x18] sm:$0xff] %v3921_v19  ;;  %v3919_v8 = vadd.f32 %v3730_v33, %v3519_v62  ;;  %v3524_v3 = vadd.f32 %v5540_v14, %v7536_v2  ;;  %v4404_v13 = vmul.f32 %v4302_v21, %v3918_v49  ;;  %v4305_v33 = vmul.f32 %v7623_v12, %v3921_v19 }
 0x242   : > { %v3343_v54 = vpop.f32.mrf.mxu1  ;;  %v5591_v47 = vpop.f32.mrf.mxu0 }
 0x243   : > { %3967 = vst [vmem:[%s7705_s17 + $0x8] sm:$0xff] %v3919_v8  ;;  %v4303_v1 = vmul.f32 %v7618_v23, %v3919_v8  ;;  %v3924_v10 = vadd.f32 %v5590_v38, %v3524_v3  ;;  %v3522_v41 = vadd.f32 %v3343_v54, %v7539_v48  ;;  %v4406_v23 = vmul.f32 %v4304_v11, %v3920_v44 }
 0x244   : > { %v5541_v30 = vpop.f32.mrf.mxu1  ;;  %v3746_v15 = vpop.f32.mrf.mxu0 }
 0x245   : > { %v4350_v62 = vadd.f32 %v4303_v1, %v4302_v21  ;;  %v4405_v2 = vmul.f32 %v4303_v1, %v3919_v8  ;;  %3972 = vst [vmem:[%s7705_s17 + $0x30] sm:$0xff] %v3924_v10  ;;  %v3922_v14 = vadd.f32 %v3743_v24, %v3522_v41  ;;  %v3525_v0 = vadd.f32 %v5541_v30, %v7542_v26  ;;  %v7730_v24 = vpop.permute.xlu1 %4159 }
 0x246   : > { %v3346_v45 = vpop.f32.mrf.mxu1  ;;  %v5594_v42 = vpop.f32.mrf.mxu0  ;;  %v4407_v26 = vmul.f32 %v4305_v33, %v3921_v19 }
 0x247   : > { %v4351_v38 = vadd.f32 %v4350_v62, %v4304_v11  ;;  %v4452_v48 = vadd.f32 %v4405_v2, %v4404_v13  ;;  %3970 = vst [vmem:[%s7705_s17 + $0x20] sm:$0xff] %v3922_v14  ;;  %v4306_v49 = vmul.f32 %v7631_v51, %v3922_v14  ;;  %v3925_v3 = vadd.f32 %v5591_v47, %v3525_v0 }
 0x248   : > { %v3523_v12 = vadd.f32 %v3346_v45, %v7545_v59  ;;  %v5544_v21 = vpop.f32.mrf.mxu1  ;;  %v3759_v8 = vpop.f32.mrf.mxu0  ;;  %v4308_v45 = vmul.f32 %v7644_v35, %v3924_v10 }
 0x249   : > { %v4453_v54 = vadd.f32 %v4452_v48, %v4406_v23  ;;  %v4352_v1 = vadd.f32 %v4351_v38, %v4305_v33  ;;  %v3528_v41 = vadd.f32 %v5544_v21, %v7548_v56  ;;  %v4408_v30 = vmul.f32 %v4306_v49, %v3922_v14  ;;  %3973 = vst [vmem:[%s7705_s17 + $0x38] sm:$0xff] %v3925_v3  ;;  %v7738_v56 = vpop.permute.xlu0 %4164  ;;  %v7743_v48 = vpop.permute.xlu1 %4169 }
 0x24a   : > { %v3923_v44 = vadd.f32 %v3746_v15, %v3523_v12  ;;  %v3359_v11 = vpop.f32.mrf.mxu1  ;;  %v5595_v13 = vpop.f32.mrf.mxu0  ;;  %v4410_v12 = vmul.f32 %v4308_v45, %v3924_v10 }
 0x24b   : > { %v4353_v51 = vadd.f32 %v4352_v1, %v4306_v49  ;;  %v4454_v0 = vadd.f32 %v4453_v54, %v4407_v26  ;;  %v3928_v47 = vadd.f32 %v5594_v42, %v3528_v41  ;;  %v3526_v59 = vadd.f32 %v3359_v11, %v7551_v39 }
 0x24c   : > { %3971 = vst [vmem:[%s7705_s17 + $0x28] sm:$0xff] %v3923_v44  ;;  %v4307_v19 = vmul.f32 %v7636_v34, %v3923_v44  ;;  %v5545_v33 = vpop.f32.mrf.mxu1  ;;  %v3762_v62 = vpop.f32.mrf.mxu0  ;;  %v4309_v42 = vmul.f32 %v7649_v18, %v3925_v3 }
 0x24d   : > { %v4455_v2 = vadd.f32 %v4454_v0, %v4408_v30  ;;  %3976 = vst [vmem:[%s7705_s17 + $0x50] sm:$0xff] %v3928_v47  ;;  %v3926_v15 = vadd.f32 %v3759_v8, %v3526_v59  ;;  %v3529_v14 = vadd.f32 %v5545_v33, %v7554_v57  ;;  %v4312_v0 = vmul.f32 %v7670_v50, %v3928_v47  ;;  %v7756_v33 = vpop.permute.xlu1 %4179 }
 0x24e   : > { %v4354_v23 = vadd.f32 %v4353_v51, %v4307_v19  ;;  %v4409_v39 = vmul.f32 %v4307_v19, %v3923_v44  ;;  %v3362_v38 = vpop.f32.mrf.mxu1  ;;  %v5598_v35 = vpop.f32.mrf.mxu0  ;;  %v4411_v41 = vmul.f32 %v4309_v42, %v3925_v3 }
 0x24f   : > { %3974 = vst [vmem:[%s7705_s17 + $0x40] sm:$0xff] %v3926_v15  ;;  %v3929_v34 = vadd.f32 %v5595_v13, %v3529_v14  ;;  %v3527_v49 = vadd.f32 %v3362_v38, %v7557_v29  ;;  %v4310_v8 = vmul.f32 %v7657_v40, %v3926_v15  ;;  %v7750_v51 = vpop.permute.xlu0 %4174  ;;  %v4414_v38 = vmul.f32 %v4312_v0, %v3928_v47 }
 0x250   : > { %v4355_v21 = vadd.f32 %v4354_v23, %v4308_v45  ;;  %v4456_v26 = vadd.f32 %v4455_v2, %v4409_v39  ;;  %v5548_v57 = vpop.f32.mrf.mxu1  ;;  %v3775_v54 = vpop.f32.mrf.mxu0 }
 0x251   : > { %3977 = vst [vmem:[%s7705_s17 + $0x58] sm:$0xff] %v3929_v34  ;;  %v3927_v18 = vadd.f32 %v3762_v62, %v3527_v49  ;;  %v3532_v1 = vadd.f32 %v5548_v57, %v7560_v32  ;;  %v4412_v45 = vmul.f32 %v4310_v8, %v3926_v15  ;;  %v7768_v47 = vpop.permute.xlu1 %4189 }
 0x252   : > { %v4457_v30 = vadd.f32 %v4456_v26, %v4410_v12  ;;  %v4356_v44 = vadd.f32 %v4355_v21, %v4309_v42  ;;  %v3375_v11 = vpop.f32.mrf.mxu1  ;;  %v5599_v13 = vpop.f32.mrf.mxu0  ;;  %v4313_v42 = vmul.f32 %v7675_v46, %v3929_v34 }
 0x253   : > { %3975 = vst [vmem:[%s7705_s17 + $0x48] sm:$0xff] %v3927_v18  ;;  %v4311_v29 = vmul.f32 %v7662_v22, %v3927_v18  ;;  %v3932_v10 = vadd.f32 %v5598_v35, %v3532_v1  ;;  %v3530_v40 = vadd.f32 %v3375_v11, %v7563_v16 }
 0x254   : > { %v4357_v59 = vadd.f32 %v4356_v44, %v4310_v8  ;;  %v4458_v32 = vadd.f32 %v4457_v30, %v4411_v41  ;;  %v5549_v3 = vpop.f32.mrf.mxu1  ;;  %v3778_v19 = vpop.f32.mrf.mxu0  ;;  %v4415_v57 = vmul.f32 %v4313_v42, %v3929_v34 }
 0x255   : > { %v4413_v62 = vmul.f32 %v4311_v29, %v3927_v18  ;;  %3980 = vst [vmem:[%s7705_s17 + $0x70] sm:$0xff] %v3932_v10  ;;  %v3930_v2 = vadd.f32 %v3775_v54, %v3530_v40  ;;  %v3533_v14 = vadd.f32 %v5549_v3, %v7566_v25  ;;  %v7764_v25 = vpop.permute.xlu0 %4184  ;;  %v4316_v44 = vmul.f32 %v7700_v20, %v3932_v10 }
 0x256   : > { %v4459_v22 = vadd.f32 %v4458_v32, %v4412_v45  ;;  %v4358_v16 = vadd.f32 %v4357_v59, %v4311_v29  ;;  %v3378_v23 = vpop.f32.mrf.mxu1  ;;  %v5602_v50 = vpop.f32.mrf.mxu0 }
 0x257   : > { %3978 = vst [vmem:[%s7705_s17 + $0x60] sm:$0xff] %v3930_v2  ;;  %v3933_v39 = vadd.f32 %v5599_v13, %v3533_v14  ;;  %v3531_v15 = vadd.f32 %v3378_v23, %v7569_v4  ;;  %v4314_v12 = vmul.f32 %v7686_v31, %v3930_v2  ;;  %v7782_v23 = vpop.permute.xlu1 %4199 }
 0x258   : > { %v4359_v35 = vadd.f32 %v4358_v16, %v4312_v0  ;;  %v4460_v49 = vadd.f32 %v4459_v22, %v4413_v62  ;;  %v5552_v21 = vpop.f32.mrf.mxu1  ;;  %v3791_v26 = vpop.f32.mrf.mxu0 }
 0x259   : > { %3981 = vst [vmem:[%s7705_s17 + $0x78] sm:$0xff] %v3933_v39  ;;  %v3931_v8 = vadd.f32 %v3778_v19, %v3531_v15  ;;  %v3536_v46 = vadd.f32 %v5552_v21, %v7572_v37  ;;  %v4416_v13 = vmul.f32 %v4314_v12, %v3930_v2  ;;  %v7777_v19 = vpop.permute.xlu0 %4194  ;;  %v4418_v2 = vmul.f32 %v4316_v44, %v3932_v10 }
 0x25a   : > { %v4461_v54 = vadd.f32 %v4460_v49, %v4414_v38  ;;  %v4360_v18 = vadd.f32 %v4359_v35, %v4313_v42  ;;  %v3391_v1 = vpop.f32.mrf.mxu1  ;;  %v5603_v4 = vpop.f32.mrf.mxu0 }
 0x25b   : > { %3979 = vst [vmem:[%s7705_s17 + $0x68] sm:$0xff] %v3931_v8  ;;  %v4315_v41 = vmul.f32 %v7692_v17, %v3931_v8  ;;  %v3936_v31 = vadd.f32 %v5602_v50, %v3536_v46  ;;  %v3534_v30 = vadd.f32 %v3391_v1, %v7575_v52  ;;  %v4317_v17 = vmul.f32 %v7703_v58, %v3933_v39 }
 0x25c   : > { %v4361_v11 = vadd.f32 %v4360_v18, %v4314_v12  ;;  %v4462_v37 = vadd.f32 %v4461_v54, %v4415_v57  ;;  %v5553_v34 = vpop.f32.mrf.mxu1  ;;  %v3794_v29 = vpop.f32.mrf.mxu0 }
 0x25d   : > { %v4417_v40 = vmul.f32 %v4315_v41, %v3931_v8  ;;  %3984 = vst [vmem:[%s7705_s17 + $0x90] sm:$0xff] %v3936_v31  ;;  %v3934_v0 = vadd.f32 %v3791_v26, %v3534_v30  ;;  %v3537_v59 = vadd.f32 %v5553_v34, %v7578_v28  ;;  %v4419_v15 = vmul.f32 %v4317_v17, %v3933_v39  ;;  %v7790_v39 = vpop.permute.xlu0 %4204  ;;  %v7795_v30 = vpop.permute.xlu1 %4209 }
 0x25e   : > { %v4463_v45 = vadd.f32 %v4462_v37, %v4416_v13  ;;  %v4362_v32 = vadd.f32 %v4361_v11, %v4315_v41  ;;  %v3394_v3 = vpop.f32.mrf.mxu1  ;;  %v5606_v52 = vpop.f32.mrf.mxu0  ;;  %v4320_v21 = vmul.f32 %v7725_v61, %v3936_v31 }
 0x25f   : > { %3982 = vst [vmem:[%s7705_s17 + $0x80] sm:$0xff] %v3934_v0  ;;  %v3937_v20 = vadd.f32 %v5603_v4, %v3537_v59  ;;  %v3535_v62 = vadd.f32 %v3394_v3, %v7581_v36  ;;  %v4318_v42 = vmul.f32 %v7712_v6, %v3934_v0 }
 0x260   : > { %v4363_v14 = vadd.f32 %v4362_v32, %v4316_v44  ;;  %v4464_v22 = vadd.f32 %v4463_v45, %v4417_v40  ;;  %v5556_v28 = vpop.f32.mrf.mxu1  ;;  %v3807_v16 = vpop.f32.mrf.mxu0  ;;  %v4422_v13 = vmul.f32 %v4320_v21, %v3936_v31 }
 0x261   : > { %3985 = vst [vmem:[%s7705_s17 + $0x98] sm:$0xff] %v3937_v20  ;;  %v3935_v58 = vadd.f32 %v3794_v29, %v3535_v62  ;;  %v3540_v50 = vadd.f32 %v5556_v28, %v7584_v43  ;;  %v4420_v8 = vmul.f32 %v4318_v42, %v3934_v0  ;;  %v4321_v4 = vmul.f32 %v7730_v24, %v3937_v20 }
 0x262   : > { %v4465_v38 = vadd.f32 %v4464_v22, %v4418_v2  ;;  %v4364_v35 = vadd.f32 %v4363_v14, %v4317_v17  ;;  %v3407_v49 = vpop.f32.mrf.mxu1  ;;  %v5607_v36 = vpop.f32.mrf.mxu0 }
 0x263   : > { %3983 = vst [vmem:[%s7705_s17 + $0x88] sm:$0xff] %v3935_v58  ;;  %v4319_v10 = vmul.f32 %v7716_v60, %v3935_v58  ;;  %v3940_v12 = vadd.f32 %v5606_v52, %v3540_v50  ;;  %v3538_v6 = vadd.f32 %v3407_v49, %v7587_v55  ;;  %v4423_v59 = vmul.f32 %v4321_v4, %v3937_v20  ;;  %v7802_v52 = vpop.permute.xlu0 %4214 }
 0x264   : > { %v4365_v26 = vadd.f32 %v4364_v35, %v4318_v42  ;;  %v4466_v46 = vadd.f32 %v4465_v38, %v4419_v15  ;;  %v5557_v57 = vpop.f32.mrf.mxu1  ;;  %v3810_v43 = vpop.f32.mrf.mxu0  ;;  %v8329_v35 = vld [vmem:[#allocation58_spill] sm:$0xff] }
 0x265   : > { %v4421_v54 = vmul.f32 %v4319_v10, %v3935_v58  ;;  %3988 = vst [vmem:[%s7705_s17 + $0xb0] sm:$0xff] %v3940_v12  ;;  %v3938_v18 = vadd.f32 %v3807_v16, %v3538_v6  ;;  %v3541_v1 = vadd.f32 %v5557_v57, %v7590_v5  ;;  %v4324_v62 = vmul.f32 %v7750_v51, %v3940_v12  ;;  %v7808_v42 = vpop.permute.xlu1 %4219 }
 0x266   : > { %v4467_v60 = vadd.f32 %v4466_v46, %v4420_v8  ;;  %v4366_v55 = vadd.f32 %v4365_v26, %v4319_v10  ;;  %v3410_v41 = vpop.f32.mrf.mxu1  ;;  %v5610_v61 = vpop.f32.mrf.mxu0 }
 0x267   : > { %3986 = vst [vmem:[%s7705_s17 + $0xa0] sm:$0xff] %v3938_v18  ;;  %v3941_v44 = vadd.f32 %v5607_v36, %v3541_v1  ;;  %v3539_v11 = vadd.f32 %v3410_v41, %v7593_v9  ;;  %v4322_v29 = vmul.f32 %v7738_v56, %v3938_v18  ;;  %v4426_v36 = vmul.f32 %v4324_v62, %v3940_v12 }
 0x268   : > { %v4367_v37 = vadd.f32 %v4366_v55, %v4320_v21  ;;  %v4468_v34 = vadd.f32 %v4467_v60, %v4421_v54  ;;  %v5560_v5 = vpop.f32.mrf.mxu1  ;;  %v3823_v40 = vpop.f32.mrf.mxu0  ;;  %v8331_v55 = vld [vmem:[#allocation49_spill] sm:$0xff] }
 0x269   : > { %3989 = vst [vmem:[%s7705_s17 + $0xb8] sm:$0xff] %v3941_v44  ;;  %v3939_v0 = vadd.f32 %v3810_v43, %v3539_v11  ;;  %v3544_v24 = vadd.f32 %v5560_v5, %v7596_v7  ;;  %v4424_v14 = vmul.f32 %v4322_v29, %v3938_v18  ;;  %v4325_v50 = vmul.f32 %v7756_v33, %v3941_v44  ;;  %v8330_v33 = vld [vmem:[#allocation60_spill] sm:$0xff]  ;;  %v7820_v12 = vpop.permute.xlu1 %4229 }
 0x26a   : > { %v4469_v45 = vadd.f32 %v4468_v34, %v4422_v13  ;;  %v4368_v17 = vadd.f32 %v4367_v37, %v4321_v4  ;;  %v3423_v32 = vpop.f32.mrf.mxu1  ;;  %v5611_v3 = vpop.f32.mrf.mxu0 }
 0x26b   : > { %3987 = vst [vmem:[%s7705_s17 + $0xa8] sm:$0xff] %v3939_v0  ;;  %v4323_v9 = vmul.f32 %v7743_v48, %v3939_v0  ;;  %v3944_v31 = vadd.f32 %v5610_v61, %v3544_v24  ;;  %v3542_v56 = vadd.f32 %v3423_v32, %v7599_v53  ;;  %v4427_v43 = vmul.f32 %v4325_v50, %v3941_v44 }
 0x26c   : > { %v4369_v2 = vadd.f32 %v4368_v17, %v4322_v29  ;;  %v4470_v7 = vadd.f32 %v4469_v45, %v4423_v59  ;;  %v5561_v20 = vpop.f32.mrf.mxu1  ;;  %v3826_v22 = vpop.f32.mrf.mxu0 }
 0x26d   : > { %v4425_v28 = vmul.f32 %v4323_v9, %v3939_v0  ;;  %3992 = vst [vmem:[%s7705_s17 + $0xd0] sm:$0xff] %v3944_v31  ;;  %v3942_v16 = vadd.f32 %v3823_v40, %v3542_v56  ;;  %v3545_v58 = vadd.f32 %v5561_v20, %v7602_v27  ;;  %v7816_v27 = vpop.permute.xlu0 %4224  ;;  %v4328_v61 = vmul.f32 %v7777_v19, %v3944_v31  ;;  %v8332_v40 = vld [vmem:[#allocation61_spill] sm:$0xff] }
 0x26e   : > { %v4471_v48 = vadd.f32 %v4470_v7, %v4424_v14  ;;  %v4370_v53 = vadd.f32 %v4369_v2, %v4323_v9  ;;  %v3426_v15 = vpop.f32.mrf.mxu1  ;;  %v5614_v51 = vpop.f32.mrf.mxu0 }
 0x26f   : > { %3990 = vst [vmem:[%s7705_s17 + $0xc0] sm:$0xff] %v3942_v16  ;;  %v3945_v38 = vadd.f32 %v5611_v3, %v3545_v58  ;;  %v3543_v49 = vadd.f32 %v3426_v15, %v8329_v35  ;;  %v4326_v21 = vmul.f32 %v7764_v25, %v3942_v16  ;;  %v8333_v3 = vld [vmem:[#allocation25_spill] sm:$0xff]  ;;  %v4430_v56 = vmul.f32 %v4328_v61, %v3944_v31  ;;  %v8335_v35 = vld [vmem:[#allocation30_spill] sm:$0xff] }
 0x270   : > { %v4371_v10 = vadd.f32 %v4370_v53, %v4324_v62  ;;  %v4472_v6 = vadd.f32 %v4471_v48, %v4425_v28  ;;  %v5564_v26 = vpop.f32.mrf.mxu1  ;;  %v3839_v8 = vpop.f32.mrf.mxu0  ;;  %v8334_v28 = vld [vmem:[#allocation22_spill] sm:$0xff] }
 0x271   : > { %3993 = vst [vmem:[%s7705_s17 + $0xd8] sm:$0xff] %v3945_v38  ;;  %v3943_v46 = vadd.f32 %v3826_v22, %v3543_v49  ;;  %v3548_v57 = vadd.f32 %v5564_v26, %v8330_v33  ;;  %v4428_v13 = vmul.f32 %v4326_v21, %v3942_v16  ;;  %v4235_v32 = vpop.permute.xlu0 %4234  ;;  %v7832_v22 = vpop.permute.xlu1 %4239 }
 0x272   : > { %v4473_v54 = vadd.f32 %v4472_v6, %v4426_v36  ;;  %v4372_v18 = vadd.f32 %v4371_v10, %v4325_v50  ;;  %v3439_v1 = vpop.f32.mrf.mxu1  ;;  %v5615_v60 = vpop.f32.mrf.mxu0 }
 0x273   : > { %3991 = vst [vmem:[%s7705_s17 + $0xc8] sm:$0xff] %v3943_v46  ;;  %v4327_v4 = vmul.f32 %v7768_v47, %v3943_v46  ;;  %v3948_v25 = vadd.f32 %v5614_v51, %v3548_v57  ;;  %v3546_v41 = vadd.f32 %v3439_v1, %v8331_v55  ;;  %v4329_v47 = vmul.f32 %v7782_v23, %v3945_v38 }
 0x274   : > { %v4373_v11 = vadd.f32 %v4372_v18, %v4326_v21  ;;  %v4474_v37 = vadd.f32 %v4473_v54, %v4427_v43  ;;  %v5565_v44 = vpop.f32.mrf.mxu1  ;;  %v3842_v34 = vpop.f32.mrf.mxu0 }
 0x275   : > { %v4429_v29 = vmul.f32 %v4327_v4, %v3943_v46  ;;  %3996 = vst [vmem:[%s7705_s17 + $0xf0] sm:$0xff] %v3948_v25  ;;  %v3946_v5 = vadd.f32 %v3839_v8, %v3546_v41  ;;  %v3549_v0 = vadd.f32 %v5565_v44, %v8332_v40  ;;  %v4431_v58 = vmul.f32 %v4329_v47, %v3945_v38  ;;  %v4245_v38 = vpop.permute.xlu0 %4244  ;;  %v8337_v44 = vld [vmem:[#allocation62_spill] sm:$0xff] }
 0x276   : > { %v4475_v24 = vadd.f32 %v4474_v37, %v4428_v13  ;;  %v4374_v59 = vadd.f32 %v4373_v11, %v4327_v4  ;;  %v3442_v45 = vpop.f32.mrf.mxu1  ;;  %v5618_v17 = vpop.f32.mrf.mxu0  ;;  %v4332_v49 = vmul.f32 %v7802_v52, %v3948_v25 }
 0x277   : > { %3994 = vst [vmem:[%s7705_s17 + $0xe0] sm:$0xff] %v3946_v5  ;;  %v3949_v19 = vadd.f32 %v5615_v60, %v3549_v0  ;;  %v3547_v9 = vadd.f32 %v3442_v45, %v8333_v3  ;;  %v4330_v14 = vmul.f32 %v7790_v39, %v3946_v5  ;;  %v4250_v52 = vpop.permute.xlu1 %4249  ;;  %v8336_v60 = vld [vmem:[#allocation26_spill] sm:$0xff] }
 0x278   : > { %v4375_v62 = vadd.f32 %v4374_v59, %v4328_v61  ;;  %v4476_v2 = vadd.f32 %v4475_v24, %v4429_v29  ;;  %v5568_v7 = vpop.f32.mrf.mxu1  ;;  %v3855_v20 = vpop.f32.mrf.mxu0  ;;  %v4434_v55 = vmul.f32 %v4332_v49, %v3948_v25  ;;  %v8338_v59 = vld [vmem:[#allocation63_spill] sm:$0xff] }
 0x279   : > { %3997 = vst [vmem:[%s7705_s17 + $0xf8] sm:$0xff] %v3949_v19  ;;  %v3947_v23 = vadd.f32 %v3842_v34, %v3547_v9  ;;  %v3552_v16 = vadd.f32 %v5568_v7, %v8334_v28  ;;  %v4432_v10 = vmul.f32 %v4330_v14, %v3946_v5  ;;  %v4255_v24 = vpop.permute.xlu0 %4254  ;;  %v8339_v7 = vld [vmem:[#allocation64_spill] sm:$0xff] }
 0x27a   : > { %v4477_v48 = vadd.f32 %v4476_v2, %v4430_v56  ;;  %v4376_v50 = vadd.f32 %v4375_v62, %v4329_v47  ;;  %v3455_v53 = vpop.f32.mrf.mxu1  ;;  %v5619_v15 = vpop.f32.mrf.mxu0 }
 0x27b   : > { %3995 = vst [vmem:[%s7705_s17 + $0xe8] sm:$0xff] %v3947_v23  ;;  %v4331_v31 = vmul.f32 %v7795_v30, %v3947_v23  ;;  %v3952_v51 = vadd.f32 %v5618_v17, %v3552_v16  ;;  %v3550_v39 = vadd.f32 %v3455_v53, %v8335_v35  ;;  %v4333_v30 = vmul.f32 %v7808_v42, %v3949_v19 }
 0x27c   : > { %v4377_v36 = vadd.f32 %v4376_v50, %v4330_v14  ;;  %v4478_v6 = vadd.f32 %v4477_v48, %v4431_v58  ;;  %v5569_v21 = vpop.f32.mrf.mxu1  ;;  %v3858_v26 = vpop.f32.mrf.mxu0  ;;  %v8340_v48 = vld [vmem:[#allocation32_spill] sm:$0xff] }
 0x27d   : > { %v4433_v8 = vmul.f32 %v4331_v31, %v3947_v23  ;;  %4000 = vst [vmem:[%s7705_s17 + $0x110] sm:$0xff] %v3952_v51  ;;  %v3950_v46 = vadd.f32 %v3855_v20, %v3550_v39  ;;  %v3553_v33 = vadd.f32 %v5569_v21, %v7638_v63  ;;  %v4435_v34 = vmul.f32 %v4333_v30, %v3949_v19  ;;  %v4260_v19 = vpop.permute.xlu1 %4259 }
 0x27e   : > { %v4479_v57 = vadd.f32 %v4478_v6, %v4432_v10  ;;  %v4378_v43 = vadd.f32 %v4377_v36, %v4331_v31  ;;  %v3458_v54 = vpop.f32.mrf.mxu1  ;;  %v5622_v18 = vpop.f32.mrf.mxu0  ;;  %v8341_v6 = vld [vmem:[#allocation29_spill] sm:$0xff] }
 0x27f   : > { %3998 = vst [vmem:[%s7705_s17 + $0x100] sm:$0xff] %v3950_v46  ;;  %v3953_v1 = vadd.f32 %v5619_v15, %v3553_v33  ;;  %v3551_v4 = vadd.f32 %v3458_v54, %v8336_v60  ;;  %v4334_v11 = vmul.f32 %v7816_v27, %v3950_v46  ;;  %v4336_v27 = vmul.f32 %v4235_v32, %v3952_v51  ;;  %v4265_v36 = vpop.permute.xlu0 %4264 }
 0x280   : > { %v4379_v41 = vadd.f32 %v4378_v43, %v4332_v49  ;;  %v4480_v61 = vadd.f32 %v4479_v57, %v4433_v8  ;;  %v5572_v13 = vpop.f32.mrf.mxu1  ;;  %v3871_v63 = vpop.f32.mrf.mxu0  ;;  %v8342_v43 = vld [vmem:[#allocation38_spill] sm:$0xff] }
 0x281   : > { %4001 = vst [vmem:[%s7705_s17 + $0x118] sm:$0xff] %v3953_v1  ;;  %v3951_v37 = vadd.f32 %v3858_v26, %v3551_v4  ;;  %v3556_v42 = vadd.f32 %v5572_v13, %v8337_v44  ;;  %v4436_v3 = vmul.f32 %v4334_v11, %v3950_v46  ;;  %v4438_v53 = vmul.f32 %v4336_v27, %v3952_v51  ;;  %v4270_v57 = vpop.permute.xlu1 %4269 }
 0x282   : > { %v4481_v29 = vadd.f32 %v4480_v61, %v4434_v55  ;;  %v4380_v5 = vadd.f32 %v4379_v41, %v4333_v30  ;;  %v3471_v40 = vpop.f32.mrf.mxu1  ;;  %v5623_v0 = vpop.f32.mrf.mxu0 }
 0x283   : > { %3999 = vst [vmem:[%s7705_s17 + $0x108] sm:$0xff] %v3951_v37  ;;  %v4335_v25 = vmul.f32 %v7820_v12, %v3951_v37  ;;  %v3956_v47 = vadd.f32 %v5622_v18, %v3556_v42  ;;  %v3554_v45 = vadd.f32 %v3471_v40, %v8338_v59  ;;  %v4337_v12 = vmul.f32 %v7832_v22, %v3953_v1 }
 0x284   : > { %v4381_v17 = vadd.f32 %v4380_v5, %v4334_v11  ;;  %v4482_v9 = vadd.f32 %v4481_v29, %v4435_v34  ;;  %v5573_v56 = vpop.f32.mrf.mxu1  ;;  %v3874_v62 = vpop.f32.mrf.mxu0  ;;  %v8343_v11 = vld [vmem:[#allocation34_spill] sm:$0xff]  ;;  %v8344_v5 = vld [vmem:[#allocation65_spill] sm:$0xff] }
 0x285   : > { %v4437_v2 = vmul.f32 %v4335_v25, %v3951_v37  ;;  %4004 = vst [vmem:[%s7705_s17 + $0x130] sm:$0xff] %v3956_v47  ;;  %v3954_v14 = vadd.f32 %v3871_v63, %v3554_v45  ;;  %v3557_v20 = vadd.f32 %v5573_v56, %v8339_v7  ;;  %v4439_v22 = vmul.f32 %v4337_v12, %v3953_v1  ;;  %v4275_v34 = vpop.permute.xlu0 %4274 }
 0x286   : > { %v4483_v23 = vadd.f32 %v4482_v9, %v4436_v3  ;;  %v4382_v28 = vadd.f32 %v4381_v17, %v4335_v25  ;;  %v3474_v16 = vpop.f32.mrf.mxu1  ;;  %v5626_v58 = vpop.f32.mrf.mxu0  ;;  %v8345_v9 = vld [vmem:[#allocation66_spill] sm:$0xff] }
 0x287   : > { %4002 = vst [vmem:[%s7705_s17 + $0x120] sm:$0xff] %v3954_v14  ;;  %v3957_v32 = vadd.f32 %v5623_v0, %v3557_v20  ;;  %v3555_v50 = vadd.f32 %v3474_v16, %v8340_v48  ;;  %v4338_v35 = vmul.f32 %v4245_v38, %v3954_v14  ;;  %v4340_v38 = vmul.f32 %v4255_v24, %v3956_v47  ;;  %v4280_v17 = vpop.permute.xlu1 %4279  ;;  %v8346_v20 = vld [vmem:[#allocation40_spill] sm:$0xff] }
 0x288   : > { %v4383_v15 = vadd.f32 %v4382_v28, %v4336_v27  ;;  %v4484_v31 = vadd.f32 %v4483_v23, %v4437_v2  ;;  %v5576_v39 = vpop.f32.mrf.mxu1  ;;  %v3887_v49 = vpop.f32.mrf.mxu0 }
 0x289   : > { %4005 = vst [vmem:[%s7705_s17 + $0x138] sm:$0xff] %v3957_v32  ;;  %v3955_v10 = vadd.f32 %v3874_v62, %v3555_v50  ;;  %v3560_v21 = vadd.f32 %v5576_v39, %v8341_v6  ;;  %v4440_v60 = vmul.f32 %v4338_v35, %v3954_v14  ;;  %v4341_v37 = vmul.f32 %v4260_v19, %v3957_v32 }
 0x28a   : > { %v4485_v26 = vadd.f32 %v4484_v31, %v4438_v53  ;;  %v4384_v8 = vadd.f32 %v4383_v15, %v4337_v12  ;;  %v3487_v46 = vpop.f32.mrf.mxu1  ;;  %v5627_v33 = vpop.f32.mrf.mxu0  ;;  %v4442_v0 = vmul.f32 %v4340_v38, %v3956_v47  ;;  %v8347_v31 = vld [vmem:[#allocation37_spill] sm:$0xff] }
 0x28b   : > { %4003 = vst [vmem:[%s7705_s17 + $0x128] sm:$0xff] %v3955_v10  ;;  %v4339_v51 = vmul.f32 %v4250_v52, %v3955_v10  ;;  %v3960_v30 = vadd.f32 %v5626_v58, %v3560_v21  ;;  %v3558_v54 = vadd.f32 %v3487_v46, %v8342_v43  ;;  %v4443_v62 = vmul.f32 %v4341_v37, %v3957_v32  ;;  %v4285_v32 = vpop.permute.xlu0 %4284  ;;  %v4290_v6 = vpop.permute.xlu1 %4289 }
 0x28c   : > { %v4385_v18 = vadd.f32 %v4384_v8, %v4338_v35  ;;  %v4486_v4 = vadd.f32 %v4485_v26, %v4439_v22  ;;  %v5577_v55 = vpop.f32.mrf.mxu1  ;;  %v3890_v41 = vpop.f32.mrf.mxu0  ;;  %v8348_v22 = vld [vmem:[#allocation46_spill] sm:$0xff] }
 0x28d   : > { %v4441_v61 = vmul.f32 %v4339_v51, %v3955_v10  ;;  %4008 = vst [vmem:[%s7705_s17 + $0x150] sm:$0xff] %v3960_v30  ;;  %v3958_v1 = vadd.f32 %v3887_v49, %v3558_v54  ;;  %v3561_v13 = vadd.f32 %v5577_v55, %v8343_v11  ;;  %v4344_v12 = vmul.f32 %v4275_v34, %v3960_v30 }
 0x28e   : > { %v4487_v63 = vadd.f32 %v4486_v4, %v4440_v60  ;;  %v4386_v44 = vadd.f32 %v4385_v18, %v4339_v51  ;;  %v3490_v52 = vpop.f32.mrf.mxu1  ;;  %v5630_v42 = vpop.f32.mrf.mxu0 }
 0x28f   : > { %4006 = vst [vmem:[%s7705_s17 + $0x140] sm:$0xff] %v3958_v1  ;;  %v3961_v29 = vadd.f32 %v5627_v33, %v3561_v13  ;;  %v3559_v40 = vadd.f32 %v3490_v52, %v8344_v5  ;;  %v4342_v59 = vmul.f32 %v4265_v36, %v3958_v1  ;;  %v4446_v8 = vmul.f32 %v4344_v12, %v3960_v30  ;;  %v4295_v18 = vpop.permute.xlu0 %4294 }
 0x290   : > { %v4387_v24 = vadd.f32 %v4386_v44, %v4340_v38  ;;  %v4488_v25 = vadd.f32 %v4487_v63, %v4441_v61  ;;  %v5580_v45 = vpop.f32.mrf.mxu1  ;;  %v3903_v27 = vpop.f32.mrf.mxu0 }
 0x291   : > { %4009 = vst [vmem:[%s7705_s17 + $0x158] sm:$0xff] %v3961_v29  ;;  %v3959_v3 = vadd.f32 %v3890_v41, %v3559_v40  ;;  %v3564_v56 = vadd.f32 %v5580_v45, %v8345_v9  ;;  %v4444_v16 = vmul.f32 %v4342_v59, %v3958_v1  ;;  %v4345_v49 = vmul.f32 %v4280_v17, %v3961_v29 }
 0x292   : > { %v4489_v19 = vadd.f32 %v4488_v25, %v4442_v0  ;;  %v4388_v2 = vadd.f32 %v4387_v24, %v4341_v37  ;;  %v3503_v14 = vpop.f32.mrf.mxu1  ;;  %v5631_v50 = vpop.f32.mrf.mxu0 }
 0x293   : > { %4007 = vst [vmem:[%s7705_s17 + $0x148] sm:$0xff] %v3959_v3  ;;  %v4343_v7 = vmul.f32 %v4270_v57, %v3959_v3  ;;  %v7867_v47 = vadd.f32 %v5630_v42, %v3564_v56  ;;  %v3562_v23 = vadd.f32 %v3503_v14, %v8346_v20  ;;  %v4447_v54 = vmul.f32 %v4345_v49, %v3961_v29 }
 0x294   : > { %v4389_v28 = vadd.f32 %v4388_v2, %v4342_v59  ;;  %v4490_v58 = vadd.f32 %v4489_v19, %v4443_v62  ;;  %v5581_v48 = vpop.f32.mrf.mxu1  ;;  %v3906_v51 = vpop.f32.mrf.mxu0 }
 0x295   : > { %v4445_v53 = vmul.f32 %v4343_v7, %v3959_v3  ;;  %4012 = vst [vmem:[%s7705_s17 + $0x170] sm:$0xff] %v7867_v47  ;;  %v3962_v15 = vadd.f32 %v3903_v27, %v3562_v23  ;;  %v3565_v35 = vadd.f32 %v5581_v48, %v8347_v31  ;;  %v4348_v4 = vmul.f32 %v4295_v18, %v7867_v47 }
 0x296   : > { %v4491_v39 = vadd.f32 %v4490_v58, %v4444_v16  ;;  %v4390_v36 = vadd.f32 %v4389_v28, %v4343_v7  ;;  %v3506_v10 = vpop.f32.mrf.mxu1 }
 0x297   : > { %4010 = vst [vmem:[%s7705_s17 + $0x160] sm:$0xff] %v3962_v15  ;;  %v3965_v21 = vadd.f32 %v5631_v50, %v3565_v35  ;;  %v3563_v26 = vadd.f32 %v3506_v10, %v8348_v22  ;;  %v4346_v57 = vmul.f32 %v4285_v32, %v3962_v15 }
 0x298   : > { %v4391_v46 = vadd.f32 %v4390_v36, %v4344_v12  ;;  %v4492_v33 = vadd.f32 %v4491_v39, %v4445_v53 }
 0x299   : > { %4013 = vst [vmem:[%s7705_s17 + $0x178] sm:$0xff] %v3965_v21  ;;  %v3963_v43 = vadd.f32 %v3906_v51, %v3563_v26  ;;  %v4448_v41 = vmul.f32 %v4346_v57, %v3962_v15 }
 0x29a   : > { %v4493_v38 = vadd.f32 %v4492_v33, %v4446_v8  ;;  %v4392_v30 = vadd.f32 %v4391_v46, %v4345_v49 }
 0x29b   : > { %4011 = vst [vmem:[%s7705_s17 + $0x168] sm:$0xff] %v3963_v43  ;;  %v4347_v60 = vmul.f32 %v4290_v6, %v3963_v43 }
 0x29c   : > { %v4393_v55 = vadd.f32 %v4392_v30, %v4346_v57  ;;  %v4494_v61 = vadd.f32 %v4493_v38, %v4447_v54 }
 0x29d   : > { %5764 = shalt.err (!%p5761_p7)
}
 0x29e   : > { %s5765_s18 = scalar_lea.hbm %s7883_s10, 6144  ;;  %s5769_s19 = scalar_lea.hbm %s8000_s4, 12288 }
 0x29f   : > { %p5766_p8 = scmp.ne.s32.totalorder %s7883_s10, %s5765_s18  ;;  %p5770_p11 = scmp.lt.s32.totalorder %s7883_s10, %s8000_s4 }
 0x2a0   : > { %p5771_p12 = scmp.lt.s32.totalorder %s5769_s19, %s5765_s18 }
 0x2a1   : > { %p5767_p9 = pnand %p5766_p8, %p5950_p5 }
 0x2a2   : > { %p5772_p13 = por %p5771_p12, %p5770_p11 }
 0x2a3   : > { %p5768_p10 = pneg %p5767_p9 }
 0x2a5   : > { %p5773_p0 = pnand %p5772_p13, %p5768_p10 }
 0x2a7   : > { %5776 = shalt.err (!%p5773_p0)
}
 0x2a8   : > { %s5871_s13 = smov 128   ;;  %s5872_s14 = smov 8   ;;  %v4300_v1 = vpop.permute.xlu1 %4299  ;;  %v4449_v11 = vmul.f32 %v4347_v60, %v3963_v43  ;;  %v4495_v13 = vadd.f32 %v4494_v61, %v4448_v41  ;;  %v4394_v37 = vadd.f32 %v4393_v55, %v4347_v60  ;;  %v4450_v44 = vmul.f32 %v4348_v4, %v7867_v47 }
 0x2a9   : > { %5645 = dma.vmem_to_hbm [thread:$0]  (%p5950_p5), %s7877_s20, 6144, %s7883_s10, %s4507_s12, %s5871_s13, %s5871_s13, %s5872_s14   ;;  %v4349_v63 = vmul.f32 %v4300_v1, %v3965_v21 }
 0x2aa   : > { %v4395_v52 = vadd.f32 %v4394_v37, %v4348_v4  ;;  %v4496_v42 = vadd.f32 %v4495_v13, %v4449_v11  ;;  %s4511_s20 = sand.u32 1, %s5931_s25   ;;  %s4952_s10 = sshll.u32 %s5931_s25, 4 }
 0x2ab   : > { %v4451_v34 = vmul.f32 %v4349_v63, %v3965_v21  ;;  %s292_s12 = scalar_lea.vmem [#allocation4], %s7684_s11  ;;  %s298_s16 = scalar_lea.vmem [#allocation6], %s7684_s11 }
 0x2ac   : > { %v4396_v29 = vadd.f32 %v4395_v52, %v4349_v63  ;;  %v4497_v5 = vadd.f32 %v4496_v42, %v4450_v44  ;;  %s4544_s15 = sshll.u32 %s292_s12, 4  ;;  %s4557_s18 = sshll.u32 %s298_s16, 4  ;;  %s7922_s15 = int_to_ptr.vmem [resolvable:$true] %s4544_s15  ;;  %s7929_s18 = int_to_ptr.vmem [resolvable:$true] %s4557_s18 }
 0x2ad   : > { %s7920_s19 = scalar_lea.hbm %s8001_s5, %s4952_s10  ;;  %s7927_s9 = scalar_lea.hbm %s8002_s6, %s4952_s10 }
 0x2ae   : > { %v4498_v40 = vadd.f32 %v4497_v5, %v4451_v34  ;;  %v4397_v0 = vrot.slane %v4396_v29, 4  ;;  %s7931_s13 = scalar_lea.sflag [#allocation5], %s4511_s20  ;;  %s5777_s14 = scalar_lea.vmem %s7922_s15, 16 }
 0x2af   : > { %p5778_p1 = scmp.ne.s32.totalorder %s7922_s15, %s5777_s14  ;;  %s5873_s28 = smov [#allocation4]  }
 0x2b0   : > { %v4499_v24 = vrot.slane %v4498_v40, 4  ;;  %v4398_v25 = vadd.f32 %v4397_v0, %v4396_v29  ;;  %s5781_s17 = sshll.u32 %s5873_s28, 4  ;;  %s5782_s17 = int_to_ptr.vmem [resolvable:$false] %s5781_s17 }
 0x2b1   : > { %p5779_p2 = pnand %p5778_p1, %p5950_p5  ;;  %s5783_s26 = scalar_lea.vmem %s5782_s17, 32 }
 0x2b2   : > { %v4399_v59 = vrot.slane %v4398_v25, 2  ;;  %v4500_v45 = vadd.f32 %v4499_v24, %v4498_v40  ;;  %p5784_p4 = scmp.lt.s32.totalorder %s7922_s15, %s5782_s17  ;;  %p5785_p7 = scmp.lt.s32.totalorder %s5783_s26, %s5777_s14 }
 0x2b3   : > { %p5780_p3 = pneg %p5779_p2 }
 0x2b4   : > { %v4400_v27 = vadd.f32 %v4399_v59, %v4398_v25  ;;  %v4501_v17 = vrot.slane %v4500_v45, 2  ;;  %p5786_p8 = por %p5785_p7, %p5784_p4 }
 0x2b6   : > { %v4401_v3 = vrot.slane %v4400_v27, 1  ;;  %v4502_v9 = vadd.f32 %v4501_v17, %v4500_v45  ;;  %p5787_p9 = pnand %p5786_p8, %p5780_p3 }
 0x2b8   : > { %v4402_v56 = vadd.f32 %v4401_v3, %v4400_v27  ;;  %v4503_v62 = vrot.slane %v4502_v9, 1 }
 0x2ba   : > { %4403 = vst [vmem:[%s292_s12] sm:$0x1] %v4402_v56  ;;  %v4504_v19 = vadd.f32 %v4503_v62, %v4502_v9 }
 0x2bb   : > { %5790 = shalt.err (!%p5787_p9)
}
 0x2bc   : > { %s5791_s20 = scalar_lea.hbm %s7920_s19, 16  ;;  %s5795_s25 = scalar_lea.hbm %s8001_s5, 32 }
 0x2bd   : > { %p5792_p10 = scmp.ne.s32.totalorder %s7920_s19, %s5791_s20  ;;  %p5796_p13 = scmp.lt.s32.totalorder %s7920_s19, %s8001_s5 }
 0x2be   : > { %p5797_p0 = scmp.lt.s32.totalorder %s5795_s25, %s5791_s20 }
 0x2bf   : > { %p5793_p11 = pnand %p5792_p10, %p5950_p5 }
 0x2c0   : > { %p5798_p1 = por %p5797_p0, %p5796_p13 }
 0x2c1   : > { %p5794_p12 = pneg %p5793_p11 }
 0x2c3   : > { %p5799_p2 = pnand %p5798_p1, %p5794_p12 }
 0x2c5   : > { %5802 = shalt.err (!%p5799_p2)
}
 0x2c6   : > { %5646 = dma.vmem_to_hbm [thread:$0]  (%p5950_p5), %s7922_s15, 16, %s7920_s19, %s7931_s13   ;;  %4505 = vst [vmem:[%s298_s16] sm:$0x1] %v4504_v19 }
 0x2c7   : > { %s5803_s26 = scalar_lea.vmem %s7929_s18, 16  ;;  %s5874_s14 = smov [#allocation6]  }
 0x2c8   : > { %p5804_p3 = scmp.ne.s32.totalorder %s7929_s18, %s5803_s26  ;;  %s5807_s17 = sshll.u32 %s5874_s14, 4  ;;  %s5808_s17 = int_to_ptr.vmem [resolvable:$false] %s5807_s17 }
 0x2c9   : > { %s5809_s20 = scalar_lea.vmem %s5808_s17, 32  ;;  %p5810_p8 = scmp.lt.s32.totalorder %s7929_s18, %s5808_s17 }
 0x2ca   : > { %p5805_p4 = pnand %p5804_p3, %p5950_p5  ;;  %p5811_p9 = scmp.lt.s32.totalorder %s5809_s20, %s5803_s26 }
 0x2cc   : > { %p5806_p7 = pneg %p5805_p4  ;;  %p5812_p10 = por %p5811_p9, %p5810_p8 }
 0x2ce   : > { %p5813_p11 = pnand %p5812_p10, %p5806_p7 }
 0x2d0   : > { %5816 = shalt.err (!%p5813_p11)
}
 0x2d1   : > { %s5817_s11 = scalar_lea.hbm %s7927_s9, 16  ;;  %s5821_s19 = scalar_lea.hbm %s8002_s6, 32 }
 0x2d2   : > { %p5818_p12 = scmp.ne.s32.totalorder %s7927_s9, %s5817_s11  ;;  %p5822_p1 = scmp.lt.s32.totalorder %s7927_s9, %s8002_s6 }
 0x2d3   : > { %p5823_p2 = scmp.lt.s32.totalorder %s5821_s19, %s5817_s11 }
 0x2d4   : > { %p5819_p13 = pnand %p5818_p12, %p5950_p5 }
 0x2d5   : > { %p5824_p3 = por %p5823_p2, %p5822_p1 }
 0x2d6   : > { %p5820_p0 = pneg %p5819_p13 }
 0x2d8   : > { %p5825_p4 = pnand %p5824_p3, %p5820_p0 }
 0x2da   : > { %5828 = shalt.err (!%p5825_p4)
}
 0x2db   : > { %5647 = dma.vmem_to_hbm [thread:$0]  (%p5950_p5), %s7929_s18, 16, %s7927_s9, %s7931_s13  }
 0x2dc PF: > { %p5661_p7 = scmp.ge.s32.totalorder %s5867_s24, 2  ;;  %s4569_s25 = sand.u32 1, %s5855_s21  }
 0x2dd   : > { %s4570_s29 = scalar_lea.sflag [#allocation3], %s4569_s25 }
 0x2de   : > { %p5652_p8 = pnand %p5661_p7, %p5954_p6 }
 0x2e0   : > { %p5653_p9 = pneg %p5652_p8 }
 0x2e2   : > { %5846 = dma.done.wait (%p5653_p9), %s4570_s29, 6144  }
 0x2e3   : > { %5848 = vsyncadd (%p5653_p9), %s4570_s29, 4294961152  ;;  %s8349_s28 = sadd.s32 4294967294, %s5867_s24  }
 0x2e4   : > { %s4578_s26 = sand.u32 1, %s8349_s28  }
 0x2e5   : > { %s4579_s7 = scalar_lea.sflag [#allocation5], %s4578_s26 }
 0x2e6   : > { %5850 = dma.done.wait (%p5653_p9), %s4579_s7, 32  }
 0x2e7   : > { %5852 = vsyncadd (%p5653_p9), %s4579_s7, 4294967264  ;;  %p20_p5 = scmp.ge.s32.totalorder %s5935_s27, 4   ;;  %s8350_s21 = smov %s5859_s22 }
 0x2e8   : > { %s8351_s22 = smov %s5863_s23  ;;  %s8352_s23 = smov %s5948_s30 }
 0x2e9   : > { %s8353_s24 = smov %s5935_s27  ;;  %22 = sbr.rel (!%p20_p5) target bundleno = 5 (0x5), region = 117 }
 0x2ee   :  { %4591 = vsyncpa [#allocation3], 1 }
 0x2ef   :  { %4593 = vsyncpa [#allocation3 + $0x1], 1 }
 0x2f0   :  { %4594 = vsyncpa [#allocation5], 1 }
 0x2f1   :  { %4596 = vsyncpa [#allocation5 + $0x1], 1 }

</bundles_post_ra>
